<compile_context>
chip_gen: v5e
topology: v5e:2x2
jax: 0.10.0
libtpu: 0.0.40
codegen_flags: <defaults>
</compile_context>

<pallas_src>
import functools
import math

import jax
import jax.numpy as jnp
from jax.experimental import pallas as pl
from jax.experimental.pallas import tpu as pltpu

# ---- TinyBERT-L-2 architecture constants (hidden fixed by the LSTM input_size=128) ----
HIDDEN = 128
N_HEADS = 2
HEAD_DIM = HIDDEN // N_HEADS          # 64
HEAD_PAD = 128                        # each head's Q/K/V zero-padded to a 128-lane tile
INTERMEDIATE = 512
N_LAYERS = 2
VOCAB = 1000                          # synthetic small vocab (real checkpoint: 30522)
MAX_POS = 64
LN_EPS = 1e-12
VEC_W = 3 * N_HEADS * HEAD_PAD        # 768: width of the per-layer packed-vector slab
MISC_W = 4 * HIDDEN                   # 512: width of the misc packed-vector slab

VMEM_SPEC = pl.BlockSpec(memory_space=pltpu.MemorySpace.VMEM)


def _bf16(x):
    return x.astype(jnp.bfloat16)


def _gelu_tanh(x):
    # TODO(synk): HF BERT uses exact erf-GELU; tanh approximation used (erf lowering risk).
    return 0.5 * x * (1.0 + jnp.tanh(0.7978845608028654 * (x + 0.044715 * x * x * x)))


def _sigmoid(x):
    # reciprocal on the EUP slot instead of a VPU divide
    return pl.reciprocal(1.0 + jnp.exp(-x), approx=True)


def _layer_norm(x, g, b, eps=LN_EPS):
    mu = jnp.mean(x, axis=-1, keepdims=True)
    xc = x - mu
    var = jnp.mean(xc * xc, axis=-1, keepdims=True)
    return xc * jax.lax.rsqrt(var + eps) * g + b


# ---------------------------- The single fused kernel ----------------------------

def _fused_forward_kernel(x_ref, bias_ref,
                          qkv_w_ref, ao_w_ref, i_w_ref, o_w_ref, vecs_ref,
                          lstm_w_ref, cls_w_ref, misc_ref,
                          o_ref, *, batch, seq):
    """Whole bertLSTM forward on a (B*S, 128) slab, everything VMEM-resident.

    misc slab (8, 512) f32: row0 = [emb_ln_g | emb_ln_b | cls_b_pad | pad], row1 = lstm_b.
    per-layer vecs slab (8, 768) f32:
        row0 = qkv bias, per-head zero-padded, Q part pre-scaled by 1/sqrt(head_dim)
        row1 = [ffn_in_b(512) | attn_out_b(128) | ffn_out_b(128)]
        row2 = [ln1_g | ln1_b | ln2_g | ln2_b | pad(256)]
    """
    H = HIDDEN

    misc = misc_ref[...]
    emb_g = misc[0:1, 0 * H:1 * H]
    emb_b = misc[0:1, 1 * H:2 * H]
    cls_b = misc[0:1, 2 * H:3 * H]
    lstm_b = misc[1:2, :]

    # ---- embedding LayerNorm prologue ----
    h = _layer_norm(x_ref[...].astype(jnp.float32), emb_g, emb_b)      # (B*S, H) f32
    bias = bias_ref[...]                                               # (B, S) additive mask

    # ---- two fused encoder layers (statically unrolled; tiny M) ----
    # TODO(synk): at production sizes add a row grid (TILE_M >= 256 on v6e/v7x, sized
    # against v7x's 64 MiB VMEM, dimension_semantics=("parallel",)) and replace the
    # static per-batch/per-head Python loops with grid axes / fori_loop.
    for li in range(N_LAYERS):
        last = li == N_LAYERS - 1

        qkv_w = qkv_w_ref[li]                                          # (128, 768) bf16
        ao_w = ao_w_ref[li]                                            # (256, 128) bf16
        i_w = i_w_ref[li]                                              # (128, 512) bf16
        o_w = o_w_ref[li]                                              # (512, 128) bf16
        vecs = vecs_ref[li]                                            # (8, 768) f32

        qkv_b = vecs[0:1, :]
        i_b = vecs[1:2, 0:INTERMEDIATE]
        ao_b = vecs[1:2, INTERMEDIATE:INTERMEDIATE + H]
        o_b = vecs[1:2, INTERMEDIATE + H:INTERMEDIATE + 2 * H]
        ln1_g = vecs[2:3, 0 * H:1 * H]
        ln1_b = vecs[2:3, 1 * H:2 * H]
        ln2_g = vecs[2:3, 2 * H:3 * H]
        ln2_b = vecs[2:3, 3 * H:4 * H]

        # Fused, per-head padded Q|K|V projection: one (M,128)x(128,768) bf16 MXU matmul.
        # Column layout: [Q_h0 | Q_h1 | K_h0 | K_h1 | V_h0 | V_h1], 128 lanes per head
        # (real data in the first 64 lanes of each tile, zeros elsewhere). The attention
        # scale is already folded into the Q columns.
        qkv = jnp.dot(_bf16(h), qkv_w, preferred_element_type=jnp.float32) + qkv_b

        # Last layer: only first-token query rows feed the LSTM/classifier head
        # (K/V still come from all positions via the full QKV matmul above).
        nq = 1 if last else seq

        ctx_rows = []
        for b in range(batch):                       # B*N_HEADS tiny tiles, static unroll
            r0 = b * seq
            bias_row = bias[b:b + 1, :]              # (1, S) additive (1-mask)*-1e4
            head_ctx = []
            for n in range(N_HEADS):
                qh = qkv[r0:r0 + nq, (0 * N_HEADS + n) * HEAD_PAD:(0 * N_HEADS + n + 1) * HEAD_PAD]
                kh = qkv[r0:r0 + seq, (1 * N_HEADS + n) * HEAD_PAD:(1 * N_HEADS + n + 1) * HEAD_PAD]
                vh = qkv[r0:r0 + seq, (2 * N_HEADS + n) * HEAD_PAD:(2 * N_HEADS + n + 1) * HEAD_PAD]
                # Zero-padded lanes contribute 0 to the contraction -> scores are exact.
                s = jax.lax.dot_general(_bf16(qh), _bf16(kh), (((1,), (1,)), ((), ())),
                                        preferred_element_type=jnp.float32)
                s = s + bias_row
                s = s - jnp.max(s, axis=-1, keepdims=True)
                p = jnp.exp(s)
                p = p * pl.reciprocal(jnp.sum(p, axis=-1, keepdims=True), approx=True)
                head_ctx.append(jnp.dot(_bf16(p), _bf16(vh),
                                        preferred_element_type=jnp.float32))   # (nq, 128)
            ctx_rows.append(jnp.concatenate(head_ctx, axis=-1))                # (nq, 256)
        ctx = jnp.concatenate(ctx_rows, axis=0) if batch > 1 else ctx_rows[0]  # (B*nq, 256)

        if last:  # residual stream restricted to the first-token rows
            h_res = jnp.concatenate([h[b * seq:b * seq + 1, :] for b in range(batch)], axis=0)
        else:
            h_res = h

        # Output projection: ao_w rows are per-head zero-padded so the padded ctx lanes
        # multiply zero rows (exact result, fully lane-dense).
        attn_out = jnp.dot(_bf16(ctx), ao_w, preferred_element_type=jnp.float32) + ao_b
        h1 = _layer_norm(attn_out + h_res, ln1_g, ln1_b)

        inter = _gelu_tanh(jnp.dot(_bf16(h1), i_w, preferred_element_type=jnp.float32) + i_b)
        ffn = jnp.dot(_bf16(inter), o_w, preferred_element_type=jnp.float32) + o_b
        h = _layer_norm(ffn + h1, ln2_g, ln2_b)      # (B*S, H) or (B, H) on the last layer

    # ---- LSTM first-timestep + classifier epilogue ----
    # lstm_output[:, 0, :] depends only on x_0: h_0 = c_0 = 0, so the h @ W_hh term and
    # the f-gate * c_0 term are exactly zero and are omitted (bit-identical result).
    gates = jnp.dot(_bf16(h), lstm_w_ref[...],
                    preferred_element_type=jnp.float32) + lstm_b       # (B, 4H) [i,f,g,o]
    i_g = _sigmoid(gates[:, 0 * H:1 * H])
    g_g = jnp.tanh(gates[:, 2 * H:3 * H])
    o_g = _sigmoid(gates[:, 3 * H:4 * H])
    c1 = i_g * g_g
    h_lstm = o_g * jnp.tanh(c1)
    # Classifier fused in; cls_w zero-padded to 128 output lanes -> lane-dense store.
    logits = jnp.dot(_bf16(h_lstm), cls_w_ref[...],
                     preferred_element_type=jnp.float32) + cls_b
    o_ref[...] = logits.astype(o_ref.dtype)


def pallas_bert_lstm(params, x, attn_bias, batch, seq):
    kernel = functools.partial(_fused_forward_kernel, batch=batch, seq=seq)
    return pl.pallas_call(
        kernel,
        out_shape=jax.ShapeDtypeStruct((batch, HIDDEN), jnp.float32),
        in_specs=[VMEM_SPEC] * 10,
        out_specs=VMEM_SPEC,
    )(x, attn_bias,
      params["qkv_w"], params["ao_w"], params["i_w"], params["o_w"], params["vecs"],
      params["lstm_wih_t"], params["cls_w_pad"], params["misc"])


# ---------------------------- Parameters ----------------------------

def init_params(key):
    keys = iter(jax.random.split(key, 64))

    def nrm(shape, scale=0.02):
        return scale * jax.random.normal(next(keys), shape, dtype=jnp.float32)

    def uni(shape, bound):
        return jax.random.uniform(next(keys), shape, jnp.float32, -bound, bound)

    att_scale = 1.0 / math.sqrt(HEAD_DIM)        # 1/8, exact in fp32; folded into Q

    def pad_head_cols(w):                        # (H, H) -> (H, N_HEADS*128), zero-padded heads
        parts = []
        for n in range(N_HEADS):
            parts.append(w[:, n * HEAD_DIM:(n + 1) * HEAD_DIM])
            parts.append(jnp.zeros((HIDDEN, HEAD_PAD - HEAD_DIM), jnp.float32))
        return jnp.concatenate(parts, axis=1)

    def pad_head_vec(v):                         # (H,) -> (N_HEADS*128,)
        parts = []
        for n in range(N_HEADS):
            parts.append(v[n * HEAD_DIM:(n + 1) * HEAD_DIM])
            parts.append(jnp.zeros((HEAD_PAD - HEAD_DIM,), jnp.float32))
        return jnp.concatenate(parts)

    def pad_head_rows(w):                        # (H, H) -> (N_HEADS*128, H)
        parts = []
        for n in range(N_HEADS):
            parts.append(w[n * HEAD_DIM:(n + 1) * HEAD_DIM, :])
            parts.append(jnp.zeros((HEAD_PAD - HEAD_DIM, HIDDEN), jnp.float32))
        return jnp.concatenate(parts, axis=0)

    qkv_ws, ao_ws, i_ws, o_ws, vec_slabs = [], [], [], [], []
    for _ in range(N_LAYERS):
        q_w, k_w, v_w = nrm((HIDDEN, HIDDEN)), nrm((HIDDEN, HIDDEN)), nrm((HIDDEN, HIDDEN))
        q_b = jnp.zeros((HIDDEN,), jnp.float32)   # (attention scale also folded into q_b)
        k_b = jnp.zeros((HIDDEN,), jnp.float32)
        v_b = jnp.zeros((HIDDEN,), jnp.float32)
        ao_w, ao_b = nrm((HIDDEN, HIDDEN)), jnp.zeros((HIDDEN,), jnp.float32)
        i_w, i_b = nrm((HIDDEN, INTERMEDIATE)), jnp.zeros((INTERMEDIATE,), jnp.float32)
        o_w, o_b = nrm((INTERMEDIATE, HIDDEN)), jnp.zeros((HIDDEN,), jnp.float32)
        ln1_g = jnp.ones((HIDDEN,), jnp.float32)
        ln1_b = jnp.zeros((HIDDEN,), jnp.float32)
        ln2_g = jnp.ones((HIDDEN,), jnp.float32)
        ln2_b = jnp.zeros((HIDDEN,), jnp.float32)

        qkv_w = jnp.concatenate([pad_head_cols(q_w * att_scale),
                                 pad_head_cols(k_w),
                                 pad_head_cols(v_w)], axis=1)           # (128, 768)
        qkv_b = jnp.concatenate([pad_head_vec(q_b * att_scale),
                                 pad_head_vec(k_b),
                                 pad_head_vec(v_b)])                    # (768,)

        qkv_ws.append(qkv_w.astype(jnp.bfloat16))
        ao_ws.append(pad_head_rows(ao_w).astype(jnp.bfloat16))          # (256, 128)
        i_ws.append(i_w.astype(jnp.bfloat16))
        o_ws.append(o_w.astype(jnp.bfloat16))

        row0 = qkv_b
        row1 = jnp.concatenate([i_b, ao_b, o_b])
        row2 = jnp.concatenate([ln1_g, ln1_b, ln2_g, ln2_b,
                                jnp.zeros((VEC_W - 4 * HIDDEN,), jnp.float32)])
        slab = jnp.zeros((8, VEC_W), jnp.float32)
        slab = slab.at[0].set(row0).at[1].set(row1).at[2].set(row2)
        vec_slabs.append(slab)

    params = {
        "word_emb": nrm((VOCAB, HIDDEN)),
        "pos_emb": nrm((MAX_POS, HIDDEN)),
        "tok_emb": nrm((2, HIDDEN)),
        "qkv_w": jnp.stack(qkv_ws),    # (L, 128, 768) bf16
        "ao_w": jnp.stack(ao_ws),      # (L, 256, 128) bf16
        "i_w": jnp.stack(i_ws),        # (L, 128, 512) bf16
        "o_w": jnp.stack(o_ws),        # (L, 512, 128) bf16
        "vecs": jnp.stack(vec_slabs),  # (L, 8, 768) f32
    }

    bound = 1.0 / math.sqrt(HIDDEN)
    params["lstm_wih_t"] = uni((HIDDEN, 4 * HIDDEN), bound).astype(jnp.bfloat16)  # W_ih.T
    # W_hh kept for parameter parity with nn.LSTM; it contributes exactly zero to
    # lstm_output[:, 0, :] (h_0 == 0) so the fused kernel never reads it.
    params["lstm_whh_t"] = uni((HIDDEN, 4 * HIDDEN), bound)
    lstm_b = uni((4 * HIDDEN,), bound) + uni((4 * HIDDEN,), bound)                # b_ih + b_hh

    cls_w = nrm((HIDDEN, 2))                                                      # classifier W.T
    cls_b = jnp.zeros((2,), jnp.float32)
    params["cls_w_pad"] = jnp.pad(cls_w, ((0, 0), (0, HIDDEN - 2))).astype(jnp.bfloat16)
    cls_b_pad = jnp.pad(cls_b, (0, HIDDEN - 2))

    misc = jnp.zeros((8, MISC_W), jnp.float32)
    misc = misc.at[0, 0:HIDDEN].set(jnp.ones((HIDDEN,), jnp.float32))   # emb LN gamma
    # emb LN beta (zeros) lives at misc[0, 128:256]
    misc = misc.at[0, 2 * HIDDEN:3 * HIDDEN].set(cls_b_pad)
    misc = misc.at[1].set(lstm_b)
    params["misc"] = misc
    return params


# ---------------------------- Forward pass ----------------------------

@jax.jit
def bert_lstm_forward(params, input_ids, attention_mask, token_type_ids):
    B, S = input_ids.shape

    # --- BERT embeddings (gathers + adds are glue) ---
    we = jnp.take(params["word_emb"], input_ids, axis=0)
    pe = params["pos_emb"][:S][None, :, :]
    te = jnp.take(params["tok_emb"], token_type_ids, axis=0)
    x = (we + pe + te).reshape(B * S, HIDDEN)
    attn_bias = (1.0 - attention_mask.astype(jnp.float32)) * -10000.0   # (B, S)

    # --- one fused pallas_call for the whole model ---
    logits_pad = pallas_bert_lstm(params, x, attn_bias, B, S)           # (B, 128)
    return logits_pad[:, :2]


# ---------------------------- Main ----------------------------

if __name__ == "__main__":
    key = jax.random.PRNGKey(0)
    pkey, ikey, tkey = jax.random.split(key, 3)

    B, S = 2, 8
    params = init_params(pkey)
    input_ids = jax.random.randint(ikey, (B, S), 0, VOCAB, dtype=jnp.int32)
    token_type_ids = jax.random.randint(tkey, (B, S), 0, 2, dtype=jnp.int32)
    attention_mask = jnp.ones((B, S), jnp.int32).at[1, 6:].set(0)  # some padding on batch 1

    logits = bert_lstm_forward(params, input_ids, attention_mask, token_type_ids)
    jax.block_until_ready(logits)
    assert logits.shape == (B, 2) and logits.dtype == jnp.float32
    assert bool(jnp.all(jnp.isfinite(logits)))
    print("KERNEL_OK")
</pallas_src>

<mosaic_0001>
module attributes {stable_mosaic.version = 11 : i64} {
  func.func @_fused_forward_kernel(%arg0: memref<16x128xf32, #tpu.memory_space<vmem>>, %arg1: memref<2x8xf32, #tpu.memory_space<vmem>>, %arg2: memref<2x128x768xbf16, #tpu.memory_space<vmem>>, %arg3: memref<2x256x128xbf16, #tpu.memory_space<vmem>>, %arg4: memref<2x128x512xbf16, #tpu.memory_space<vmem>>, %arg5: memref<2x512x128xbf16, #tpu.memory_space<vmem>>, %arg6: memref<2x8x768xf32, #tpu.memory_space<vmem>>, %arg7: memref<128x512xbf16, #tpu.memory_space<vmem>>, %arg8: memref<128x128xbf16, #tpu.memory_space<vmem>>, %arg9: memref<8x512xf32, #tpu.memory_space<vmem>>, %arg10: memref<2x128xf32, #tpu.memory_space<vmem>>) attributes {dimension_semantics = [], scalar_prefetch = 0 : i64, scratch_operands = 0 : i64, tpu.core_type = #tpu.core_type<tc>} {
    %c0 = arith.constant 0 : index
    %c0_0 = arith.constant 0 : index
    %0 = vector.load %arg9[%c0, %c0_0] : memref<8x512xf32, #tpu.memory_space<vmem>>, vector<8x512xf32>
    %1 = vector.extract_strided_slice %0 {offsets = [0, 0], sizes = [1, 128], strides = [1, 1]} : vector<8x512xf32> to vector<1x128xf32>
    %2 = vector.extract_strided_slice %0 {offsets = [0, 128], sizes = [1, 128], strides = [1, 1]} : vector<8x512xf32> to vector<1x128xf32>
    %3 = vector.extract_strided_slice %0 {offsets = [0, 256], sizes = [1, 128], strides = [1, 1]} : vector<8x512xf32> to vector<1x128xf32>
    %4 = vector.extract_strided_slice %0 {offsets = [1, 0], sizes = [1, 512], strides = [1, 1]} : vector<8x512xf32> to vector<1x512xf32>
    %c0_1 = arith.constant 0 : index
    %c0_2 = arith.constant 0 : index
    %5 = vector.load %arg0[%c0_1, %c0_2] : memref<16x128xf32, #tpu.memory_space<vmem>>, vector<16x128xf32>
    %cst = arith.constant dense<0.000000e+00> : vector<16xf32>
    %6 = vector.multi_reduction <add>, %5, %cst [1] : vector<16x128xf32> to vector<16xf32>
    %7 = vector.shape_cast %6 : vector<16xf32> to vector<16x1xf32>
    %cst_3 = arith.constant 1.280000e+02 : f32
    %8 = vector.broadcast %cst_3 : f32 to vector<16x1xf32>
    %9 = arith.divf %7, %8 : vector<16x1xf32>
    %10 = vector.broadcast %9 : vector<16x1xf32> to vector<16x128xf32>
    %11 = arith.subf %5, %10 : vector<16x128xf32>
    %12 = arith.mulf %11, %11 : vector<16x128xf32>
    %cst_4 = arith.constant dense<0.000000e+00> : vector<16xf32>
    %13 = vector.multi_reduction <add>, %12, %cst_4 [1] : vector<16x128xf32> to vector<16xf32>
    %14 = vector.shape_cast %13 : vector<16xf32> to vector<16x1xf32>
    %cst_5 = arith.constant 1.280000e+02 : f32
    %15 = vector.broadcast %cst_5 : f32 to vector<16x1xf32>
    %16 = arith.divf %14, %15 : vector<16x1xf32>
    %cst_6 = arith.constant 9.99999996E-13 : f32
    %17 = vector.broadcast %cst_6 : f32 to vector<16x1xf32>
    %18 = arith.addf %16, %17 : vector<16x1xf32>
    %19 = math.rsqrt %18 : vector<16x1xf32>
    %20 = vector.broadcast %19 : vector<16x1xf32> to vector<16x128xf32>
    %21 = arith.mulf %11, %20 : vector<16x128xf32>
    %22 = vector.broadcast %1 : vector<1x128xf32> to vector<16x128xf32>
    %23 = arith.mulf %21, %22 : vector<16x128xf32>
    %24 = vector.broadcast %2 : vector<1x128xf32> to vector<16x128xf32>
    %25 = arith.addf %23, %24 : vector<16x128xf32>
    %c0_7 = arith.constant 0 : index
    %c0_8 = arith.constant 0 : index
    %26 = vector.load %arg1[%c0_7, %c0_8] : memref<2x8xf32, #tpu.memory_space<vmem>>, vector<2x8xf32>
    %c0_9 = arith.constant 0 : index
    %c0_10 = arith.constant 0 : index
    %c0_11 = arith.constant 0 : index
    %27 = vector.load %arg2[%c0_9, %c0_10, %c0_11] : memref<2x128x768xbf16, #tpu.memory_space<vmem>>, vector<1x128x768xbf16>
    %28 = vector.shape_cast %27 : vector<1x128x768xbf16> to vector<128x768xbf16>
    %c0_12 = arith.constant 0 : index
    %c0_13 = arith.constant 0 : index
    %c0_14 = arith.constant 0 : index
    %29 = vector.load %arg3[%c0_12, %c0_13, %c0_14] : memref<2x256x128xbf16, #tpu.memory_space<vmem>>, vector<1x256x128xbf16>
    %30 = vector.shape_cast %29 : vector<1x256x128xbf16> to vector<256x128xbf16>
    %c0_15 = arith.constant 0 : index
    %c0_16 = arith.constant 0 : index
    %c0_17 = arith.constant 0 : index
    %31 = vector.load %arg4[%c0_15, %c0_16, %c0_17] : memref<2x128x512xbf16, #tpu.memory_space<vmem>>, vector<1x128x512xbf16>
    %32 = vector.shape_cast %31 : vector<1x128x512xbf16> to vector<128x512xbf16>
    %c0_18 = arith.constant 0 : index
    %c0_19 = arith.constant 0 : index
    %c0_20 = arith.constant 0 : index
    %33 = vector.load %arg5[%c0_18, %c0_19, %c0_20] : memref<2x512x128xbf16, #tpu.memory_space<vmem>>, vector<1x512x128xbf16>
    %34 = vector.shape_cast %33 : vector<1x512x128xbf16> to vector<512x128xbf16>
    %c0_21 = arith.constant 0 : index
    %c0_22 = arith.constant 0 : index
    %c0_23 = arith.constant 0 : index
    %35 = vector.load %arg6[%c0_21, %c0_22, %c0_23] : memref<2x8x768xf32, #tpu.memory_space<vmem>>, vector<1x8x768xf32>
    %36 = vector.shape_cast %35 : vector<1x8x768xf32> to vector<8x768xf32>
    %37 = vector.extract_strided_slice %36 {offsets = [0, 0], sizes = [1, 768], strides = [1, 1]} : vector<8x768xf32> to vector<1x768xf32>
    %38 = vector.extract_strided_slice %36 {offsets = [1, 0], sizes = [1, 512], strides = [1, 1]} : vector<8x768xf32> to vector<1x512xf32>
    %39 = vector.extract_strided_slice %36 {offsets = [1, 512], sizes = [1, 128], strides = [1, 1]} : vector<8x768xf32> to vector<1x128xf32>
    %40 = vector.extract_strided_slice %36 {offsets = [1, 640], sizes = [1, 128], strides = [1, 1]} : vector<8x768xf32> to vector<1x128xf32>
    %41 = vector.extract_strided_slice %36 {offsets = [2, 0], sizes = [1, 128], strides = [1, 1]} : vector<8x768xf32> to vector<1x128xf32>
    %42 = vector.extract_strided_slice %36 {offsets = [2, 128], sizes = [1, 128], strides = [1, 1]} : vector<8x768xf32> to vector<1x128xf32>
    %43 = vector.extract_strided_slice %36 {offsets = [2, 256], sizes = [1, 128], strides = [1, 1]} : vector<8x768xf32> to vector<1x128xf32>
    %44 = vector.extract_strided_slice %36 {offsets = [2, 384], sizes = [1, 128], strides = [1, 1]} : vector<8x768xf32> to vector<1x128xf32>
    %45 = arith.truncf %25 : vector<16x128xf32> to vector<16x128xbf16>
    %cst_24 = arith.constant dense<0.000000e+00> : vector<16x768xf32>
    %46 = tpu.matmul %45, %28, %cst_24 {dimension_numbers = #tpu.dot_dimension_numbers<[1], [0], [0], [1], [0, 0, 1, 1], [], []>} : vector<16x128xbf16>, vector<128x768xbf16>, vector<16x768xf32> -> vector<16x768xf32>
    %47 = vector.broadcast %37 : vector<1x768xf32> to vector<16x768xf32>
    %48 = arith.addf %46, %47 : vector<16x768xf32>
    %49 = vector.extract_strided_slice %26 {offsets = [0, 0], sizes = [1, 8], strides = [1, 1]} : vector<2x8xf32> to vector<1x8xf32>
    %50 = vector.extract_strided_slice %48 {offsets = [0, 0], sizes = [8, 128], strides = [1, 1]} : vector<16x768xf32> to vector<8x128xf32>
    %51 = vector.extract_strided_slice %48 {offsets = [0, 256], sizes = [8, 128], strides = [1, 1]} : vector<16x768xf32> to vector<8x128xf32>
    %52 = vector.extract_strided_slice %48 {offsets = [0, 512], sizes = [8, 128], strides = [1, 1]} : vector<16x768xf32> to vector<8x128xf32>
    %53 = arith.truncf %50 : vector<8x128xf32> to vector<8x128xbf16>
    %54 = arith.truncf %51 : vector<8x128xf32> to vector<8x128xbf16>
    %cst_25 = arith.constant dense<0.000000e+00> : vector<8x8xf32>
    %55 = tpu.matmul %53, %54, %cst_25 {dimension_numbers = #tpu.dot_dimension_numbers<[1], [1], [0], [0], [0, 0, 1, 0], [], []>} : vector<8x128xbf16>, vector<8x128xbf16>, vector<8x8xf32> -> vector<8x8xf32>
    %56 = vector.broadcast %49 : vector<1x8xf32> to vector<8x8xf32>
    %57 = arith.addf %55, %56 : vector<8x8xf32>
    %cst_26 = arith.constant dense<0xFF800000> : vector<8xf32>
    %58 = vector.multi_reduction <maximumf>, %57, %cst_26 [1] : vector<8x8xf32> to vector<8xf32>
    %59 = vector.shape_cast %58 : vector<8xf32> to vector<8x1xf32>
    %60 = vector.broadcast %59 : vector<8x1xf32> to vector<8x8xf32>
    %61 = arith.subf %57, %60 : vector<8x8xf32>
    %62 = math.exp %61 : vector<8x8xf32>
    %cst_27 = arith.constant dense<0.000000e+00> : vector<8xf32>
    %63 = vector.multi_reduction <add>, %62, %cst_27 [1] : vector<8x8xf32> to vector<8xf32>
    %64 = vector.shape_cast %63 : vector<8xf32> to vector<8x1xf32>
    %65 = tpu.reciprocal %64 {approx = true} : vector<8x1xf32> -> vector<8x1xf32>
    %66 = vector.broadcast %65 : vector<8x1xf32> to vector<8x8xf32>
    %67 = arith.mulf %62, %66 : vector<8x8xf32>
    %68 = arith.truncf %67 : vector<8x8xf32> to vector<8x8xbf16>
    %69 = arith.truncf %52 : vector<8x128xf32> to vector<8x128xbf16>
    %cst_28 = arith.constant dense<0.000000e+00> : vector<8x128xf32>
    %70 = tpu.matmul %68, %69, %cst_28 {dimension_numbers = #tpu.dot_dimension_numbers<[1], [0], [0], [1], [0, 0, 1, 1], [], []>} : vector<8x8xbf16>, vector<8x128xbf16>, vector<8x128xf32> -> vector<8x128xf32>
    %71 = vector.extract_strided_slice %48 {offsets = [0, 128], sizes = [8, 128], strides = [1, 1]} : vector<16x768xf32> to vector<8x128xf32>
    %72 = vector.extract_strided_slice %48 {offsets = [0, 384], sizes = [8, 128], strides = [1, 1]} : vector<16x768xf32> to vector<8x128xf32>
    %73 = vector.extract_strided_slice %48 {offsets = [0, 640], sizes = [8, 128], strides = [1, 1]} : vector<16x768xf32> to vector<8x128xf32>
    %74 = arith.truncf %71 : vector<8x128xf32> to vector<8x128xbf16>
    %75 = arith.truncf %72 : vector<8x128xf32> to vector<8x128xbf16>
    %cst_29 = arith.constant dense<0.000000e+00> : vector<8x8xf32>
    %76 = tpu.matmul %74, %75, %cst_29 {dimension_numbers = #tpu.dot_dimension_numbers<[1], [1], [0], [0], [0, 0, 1, 0], [], []>} : vector<8x128xbf16>, vector<8x128xbf16>, vector<8x8xf32> -> vector<8x8xf32>
    %77 = vector.broadcast %49 : vector<1x8xf32> to vector<8x8xf32>
    %78 = arith.addf %76, %77 : vector<8x8xf32>
    %cst_30 = arith.constant dense<0xFF800000> : vector<8xf32>
    %79 = vector.multi_reduction <maximumf>, %78, %cst_30 [1] : vector<8x8xf32> to vector<8xf32>
    %80 = vector.shape_cast %79 : vector<8xf32> to vector<8x1xf32>
    %81 = vector.broadcast %80 : vector<8x1xf32> to vector<8x8xf32>
    %82 = arith.subf %78, %81 : vector<8x8xf32>
    %83 = math.exp %82 : vector<8x8xf32>
    %cst_31 = arith.constant dense<0.000000e+00> : vector<8xf32>
    %84 = vector.multi_reduction <add>, %83, %cst_31 [1] : vector<8x8xf32> to vector<8xf32>
    %85 = vector.shape_cast %84 : vector<8xf32> to vector<8x1xf32>
    %86 = tpu.reciprocal %85 {approx = true} : vector<8x1xf32> -> vector<8x1xf32>
    %87 = vector.broadcast %86 : vector<8x1xf32> to vector<8x8xf32>
    %88 = arith.mulf %83, %87 : vector<8x8xf32>
    %89 = arith.truncf %88 : vector<8x8xf32> to vector<8x8xbf16>
    %90 = arith.truncf %73 : vector<8x128xf32> to vector<8x128xbf16>
    %cst_32 = arith.constant dense<0.000000e+00> : vector<8x128xf32>
    %91 = tpu.matmul %89, %90, %cst_32 {dimension_numbers = #tpu.dot_dimension_numbers<[1], [0], [0], [1], [0, 0, 1, 1], [], []>} : vector<8x8xbf16>, vector<8x128xbf16>, vector<8x128xf32> -> vector<8x128xf32>
    %92 = tpu.concatenate %70, %91 in 1 : vector<8x128xf32>, vector<8x128xf32> -> vector<8x256xf32>
    %93 = vector.extract_strided_slice %26 {offsets = [1, 0], sizes = [1, 8], strides = [1, 1]} : vector<2x8xf32> to vector<1x8xf32>
    %94 = vector.extract_strided_slice %48 {offsets = [8, 0], sizes = [8, 128], strides = [1, 1]} : vector<16x768xf32> to vector<8x128xf32>
    %95 = vector.extract_strided_slice %48 {offsets = [8, 256], sizes = [8, 128], strides = [1, 1]} : vector<16x768xf32> to vector<8x128xf32>
    %96 = vector.extract_strided_slice %48 {offsets = [8, 512], sizes = [8, 128], strides = [1, 1]} : vector<16x768xf32> to vector<8x128xf32>
    %97 = arith.truncf %94 : vector<8x128xf32> to vector<8x128xbf16>
    %98 = arith.truncf %95 : vector<8x128xf32> to vector<8x128xbf16>
    %cst_33 = arith.constant dense<0.000000e+00> : vector<8x8xf32>
    %99 = tpu.matmul %97, %98, %cst_33 {dimension_numbers = #tpu.dot_dimension_numbers<[1], [1], [0], [0], [0, 0, 1, 0], [], []>} : vector<8x128xbf16>, vector<8x128xbf16>, vector<8x8xf32> -> vector<8x8xf32>
    %100 = vector.broadcast %93 : vector<1x8xf32> to vector<8x8xf32>
    %101 = arith.addf %99, %100 : vector<8x8xf32>
    %cst_34 = arith.constant dense<0xFF800000> : vector<8xf32>
    %102 = vector.multi_reduction <maximumf>, %101, %cst_34 [1] : vector<8x8xf32> to vector<8xf32>
    %103 = vector.shape_cast %102 : vector<8xf32> to vector<8x1xf32>
    %104 = vector.broadcast %103 : vector<8x1xf32> to vector<8x8xf32>
    %105 = arith.subf %101, %104 : vector<8x8xf32>
    %106 = math.exp %105 : vector<8x8xf32>
    %cst_35 = arith.constant dense<0.000000e+00> : vector<8xf32>
    %107 = vector.multi_reduction <add>, %106, %cst_35 [1] : vector<8x8xf32> to vector<8xf32>
    %108 = vector.shape_cast %107 : vector<8xf32> to vector<8x1xf32>
    %109 = tpu.reciprocal %108 {approx = true} : vector<8x1xf32> -> vector<8x1xf32>
    %110 = vector.broadcast %109 : vector<8x1xf32> to vector<8x8xf32>
    %111 = arith.mulf %106, %110 : vector<8x8xf32>
    %112 = arith.truncf %111 : vector<8x8xf32> to vector<8x8xbf16>
    %113 = arith.truncf %96 : vector<8x128xf32> to vector<8x128xbf16>
    %cst_36 = arith.constant dense<0.000000e+00> : vector<8x128xf32>
    %114 = tpu.matmul %112, %113, %cst_36 {dimension_numbers = #tpu.dot_dimension_numbers<[1], [0], [0], [1], [0, 0, 1, 1], [], []>} : vector<8x8xbf16>, vector<8x128xbf16>, vector<8x128xf32> -> vector<8x128xf32>
    %115 = vector.extract_strided_slice %48 {offsets = [8, 128], sizes = [8, 128], strides = [1, 1]} : vector<16x768xf32> to vector<8x128xf32>
    %116 = vector.extract_strided_slice %48 {offsets = [8, 384], sizes = [8, 128], strides = [1, 1]} : vector<16x768xf32> to vector<8x128xf32>
    %117 = vector.extract_strided_slice %48 {offsets = [8, 640], sizes = [8, 128], strides = [1, 1]} : vector<16x768xf32> to vector<8x128xf32>
    %118 = arith.truncf %115 : vector<8x128xf32> to vector<8x128xbf16>
    %119 = arith.truncf %116 : vector<8x128xf32> to vector<8x128xbf16>
    %cst_37 = arith.constant dense<0.000000e+00> : vector<8x8xf32>
    %120 = tpu.matmul %118, %119, %cst_37 {dimension_numbers = #tpu.dot_dimension_numbers<[1], [1], [0], [0], [0, 0, 1, 0], [], []>} : vector<8x128xbf16>, vector<8x128xbf16>, vector<8x8xf32> -> vector<8x8xf32>
    %121 = vector.broadcast %93 : vector<1x8xf32> to vector<8x8xf32>
    %122 = arith.addf %120, %121 : vector<8x8xf32>
    %cst_38 = arith.constant dense<0xFF800000> : vector<8xf32>
    %123 = vector.multi_reduction <maximumf>, %122, %cst_38 [1] : vector<8x8xf32> to vector<8xf32>
    %124 = vector.shape_cast %123 : vector<8xf32> to vector<8x1xf32>
    %125 = vector.broadcast %124 : vector<8x1xf32> to vector<8x8xf32>
    %126 = arith.subf %122, %125 : vector<8x8xf32>
    %127 = math.exp %126 : vector<8x8xf32>
    %cst_39 = arith.constant dense<0.000000e+00> : vector<8xf32>
    %128 = vector.multi_reduction <add>, %127, %cst_39 [1] : vector<8x8xf32> to vector<8xf32>
    %129 = vector.shape_cast %128 : vector<8xf32> to vector<8x1xf32>
    %130 = tpu.reciprocal %129 {approx = true} : vector<8x1xf32> -> vector<8x1xf32>
    %131 = vector.broadcast %130 : vector<8x1xf32> to vector<8x8xf32>
    %132 = arith.mulf %127, %131 : vector<8x8xf32>
    %133 = arith.truncf %132 : vector<8x8xf32> to vector<8x8xbf16>
    %134 = arith.truncf %117 : vector<8x128xf32> to vector<8x128xbf16>
    %cst_40 = arith.constant dense<0.000000e+00> : vector<8x128xf32>
    %135 = tpu.matmul %133, %134, %cst_40 {dimension_numbers = #tpu.dot_dimension_numbers<[1], [0], [0], [1], [0, 0, 1, 1], [], []>} : vector<8x8xbf16>, vector<8x128xbf16>, vector<8x128xf32> -> vector<8x128xf32>
    %136 = tpu.concatenate %114, %135 in 1 : vector<8x128xf32>, vector<8x128xf32> -> vector<8x256xf32>
    %137 = tpu.concatenate %92, %136 in 0 : vector<8x256xf32>, vector<8x256xf32> -> vector<16x256xf32>
    %138 = arith.truncf %137 : vector<16x256xf32> to vector<16x256xbf16>
    %cst_41 = arith.constant dense<0.000000e+00> : vector<16x128xf32>
    %139 = tpu.matmul %138, %30, %cst_41 {dimension_numbers = #tpu.dot_dimension_numbers<[1], [0], [0], [1], [0, 0, 1, 1], [], []>} : vector<16x256xbf16>, vector<256x128xbf16>, vector<16x128xf32> -> vector<16x128xf32>
    %140 = vector.broadcast %39 : vector<1x128xf32> to vector<16x128xf32>
    %141 = arith.addf %139, %140 : vector<16x128xf32>
    %142 = arith.addf %141, %25 : vector<16x128xf32>
    %cst_42 = arith.constant dense<0.000000e+00> : vector<16xf32>
    %143 = vector.multi_reduction <add>, %142, %cst_42 [1] : vector<16x128xf32> to vector<16xf32>
    %144 = vector.shape_cast %143 : vector<16xf32> to vector<16x1xf32>
    %cst_43 = arith.constant 1.280000e+02 : f32
    %145 = vector.broadcast %cst_43 : f32 to vector<16x1xf32>
    %146 = arith.divf %144, %145 : vector<16x1xf32>
    %147 = vector.broadcast %146 : vector<16x1xf32> to vector<16x128xf32>
    %148 = arith.subf %142, %147 : vector<16x128xf32>
    %149 = arith.mulf %148, %148 : vector<16x128xf32>
    %cst_44 = arith.constant dense<0.000000e+00> : vector<16xf32>
    %150 = vector.multi_reduction <add>, %149, %cst_44 [1] : vector<16x128xf32> to vector<16xf32>
    %151 = vector.shape_cast %150 : vector<16xf32> to vector<16x1xf32>
    %cst_45 = arith.constant 1.280000e+02 : f32
    %152 = vector.broadcast %cst_45 : f32 to vector<16x1xf32>
    %153 = arith.divf %151, %152 : vector<16x1xf32>
    %cst_46 = arith.constant 9.99999996E-13 : f32
    %154 = vector.broadcast %cst_46 : f32 to vector<16x1xf32>
    %155 = arith.addf %153, %154 : vector<16x1xf32>
    %156 = math.rsqrt %155 : vector<16x1xf32>
    %157 = vector.broadcast %156 : vector<16x1xf32> to vector<16x128xf32>
    %158 = arith.mulf %148, %157 : vector<16x128xf32>
    %159 = vector.broadcast %41 : vector<1x128xf32> to vector<16x128xf32>
    %160 = arith.mulf %158, %159 : vector<16x128xf32>
    %161 = vector.broadcast %42 : vector<1x128xf32> to vector<16x128xf32>
    %162 = arith.addf %160, %161 : vector<16x128xf32>
    %163 = arith.truncf %162 : vector<16x128xf32> to vector<16x128xbf16>
    %cst_47 = arith.constant dense<0.000000e+00> : vector<16x512xf32>
    %164 = tpu.matmul %163, %32, %cst_47 {dimension_numbers = #tpu.dot_dimension_numbers<[1], [0], [0], [1], [0, 0, 1, 1], [], []>} : vector<16x128xbf16>, vector<128x512xbf16>, vector<16x512xf32> -> vector<16x512xf32>
    %165 = vector.broadcast %38 : vector<1x512xf32> to vector<16x512xf32>
    %166 = arith.addf %164, %165 : vector<16x512xf32>
    %cst_48 = arith.constant 5.000000e-01 : f32
    %167 = vector.broadcast %cst_48 : f32 to vector<16x512xf32>
    %168 = arith.mulf %167, %166 : vector<16x512xf32>
    %cst_49 = arith.constant 4.471500e-02 : f32
    %169 = vector.broadcast %cst_49 : f32 to vector<16x512xf32>
    %170 = arith.mulf %169, %166 : vector<16x512xf32>
    %171 = arith.mulf %170, %166 : vector<16x512xf32>
    %172 = arith.mulf %171, %166 : vector<16x512xf32>
    %173 = arith.addf %166, %172 : vector<16x512xf32>
    %cst_50 = arith.constant 0.797884583 : f32
    %174 = vector.broadcast %cst_50 : f32 to vector<16x512xf32>
    %175 = arith.mulf %174, %173 : vector<16x512xf32>
    %176 = math.tanh %175 : vector<16x512xf32>
    %cst_51 = arith.constant 1.000000e+00 : f32
    %177 = vector.broadcast %cst_51 : f32 to vector<16x512xf32>
    %178 = arith.addf %177, %176 : vector<16x512xf32>
    %179 = arith.mulf %168, %178 : vector<16x512xf32>
    %180 = arith.truncf %179 : vector<16x512xf32> to vector<16x512xbf16>
    %cst_52 = arith.constant dense<0.000000e+00> : vector<16x128xf32>
    %181 = tpu.matmul %180, %34, %cst_52 {dimension_numbers = #tpu.dot_dimension_numbers<[1], [0], [0], [1], [0, 0, 1, 1], [], []>} : vector<16x512xbf16>, vector<512x128xbf16>, vector<16x128xf32> -> vector<16x128xf32>
    %182 = vector.broadcast %40 : vector<1x128xf32> to vector<16x128xf32>
    %183 = arith.addf %181, %182 : vector<16x128xf32>
    %184 = arith.addf %183, %162 : vector<16x128xf32>
    %cst_53 = arith.constant dense<0.000000e+00> : vector<16xf32>
    %185 = vector.multi_reduction <add>, %184, %cst_53 [1] : vector<16x128xf32> to vector<16xf32>
    %186 = vector.shape_cast %185 : vector<16xf32> to vector<16x1xf32>
    %cst_54 = arith.constant 1.280000e+02 : f32
    %187 = vector.broadcast %cst_54 : f32 to vector<16x1xf32>
    %188 = arith.divf %186, %187 : vector<16x1xf32>
    %189 = vector.broadcast %188 : vector<16x1xf32> to vector<16x128xf32>
    %190 = arith.subf %184, %189 : vector<16x128xf32>
    %191 = arith.mulf %190, %190 : vector<16x128xf32>
    %cst_55 = arith.constant dense<0.000000e+00> : vector<16xf32>
    %192 = vector.multi_reduction <add>, %191, %cst_55 [1] : vector<16x128xf32> to vector<16xf32>
    %193 = vector.shape_cast %192 : vector<16xf32> to vector<16x1xf32>
    %cst_56 = arith.constant 1.280000e+02 : f32
    %194 = vector.broadcast %cst_56 : f32 to vector<16x1xf32>
    %195 = arith.divf %193, %194 : vector<16x1xf32>
    %cst_57 = arith.constant 9.99999996E-13 : f32
    %196 = vector.broadcast %cst_57 : f32 to vector<16x1xf32>
    %197 = arith.addf %195, %196 : vector<16x1xf32>
    %198 = math.rsqrt %197 : vector<16x1xf32>
    %199 = vector.broadcast %198 : vector<16x1xf32> to vector<16x128xf32>
    %200 = arith.mulf %190, %199 : vector<16x128xf32>
    %201 = vector.broadcast %43 : vector<1x128xf32> to vector<16x128xf32>
    %202 = arith.mulf %200, %201 : vector<16x128xf32>
    %203 = vector.broadcast %44 : vector<1x128xf32> to vector<16x128xf32>
    %204 = arith.addf %202, %203 : vector<16x128xf32>
    %c1 = arith.constant 1 : index
    %c0_58 = arith.constant 0 : index
    %c0_59 = arith.constant 0 : index
    %205 = vector.load %arg2[%c1, %c0_58, %c0_59] : memref<2x128x768xbf16, #tpu.memory_space<vmem>>, vector<1x128x768xbf16>
    %206 = vector.shape_cast %205 : vector<1x128x768xbf16> to vector<128x768xbf16>
    %c1_60 = arith.constant 1 : index
    %c0_61 = arith.constant 0 : index
    %c0_62 = arith.constant 0 : index
    %207 = vector.load %arg3[%c1_60, %c0_61, %c0_62] : memref<2x256x128xbf16, #tpu.memory_space<vmem>>, vector<1x256x128xbf16>
    %208 = vector.shape_cast %207 : vector<1x256x128xbf16> to vector<256x128xbf16>
    %c1_63 = arith.constant 1 : index
    %c0_64 = arith.constant 0 : index
    %c0_65 = arith.constant 0 : index
    %209 = vector.load %arg4[%c1_63, %c0_64, %c0_65] : memref<2x128x512xbf16, #tpu.memory_space<vmem>>, vector<1x128x512xbf16>
    %210 = vector.shape_cast %209 : vector<1x128x512xbf16> to vector<128x512xbf16>
    %c1_66 = arith.constant 1 : index
    %c0_67 = arith.constant 0 : index
    %c0_68 = arith.constant 0 : index
    %211 = vector.load %arg5[%c1_66, %c0_67, %c0_68] : memref<2x512x128xbf16, #tpu.memory_space<vmem>>, vector<1x512x128xbf16>
    %212 = vector.shape_cast %211 : vector<1x512x128xbf16> to vector<512x128xbf16>
    %c1_69 = arith.constant 1 : index
    %c0_70 = arith.constant 0 : index
    %c0_71 = arith.constant 0 : index
    %213 = vector.load %arg6[%c1_69, %c0_70, %c0_71] : memref<2x8x768xf32, #tpu.memory_space<vmem>>, vector<1x8x768xf32>
    %214 = vector.shape_cast %213 : vector<1x8x768xf32> to vector<8x768xf32>
    %215 = vector.extract_strided_slice %214 {offsets = [0, 0], sizes = [1, 768], strides = [1, 1]} : vector<8x768xf32> to vector<1x768xf32>
    %216 = vector.extract_strided_slice %214 {offsets = [1, 0], sizes = [1, 512], strides = [1, 1]} : vector<8x768xf32> to vector<1x512xf32>
    %217 = vector.extract_strided_slice %214 {offsets = [1, 512], sizes = [1, 128], strides = [1, 1]} : vector<8x768xf32> to vector<1x128xf32>
    %218 = vector.extract_strided_slice %214 {offsets = [1, 640], sizes = [1, 128], strides = [1, 1]} : vector<8x768xf32> to vector<1x128xf32>
    %219 = vector.extract_strided_slice %214 {offsets = [2, 0], sizes = [1, 128], strides = [1, 1]} : vector<8x768xf32> to vector<1x128xf32>
    %220 = vector.extract_strided_slice %214 {offsets = [2, 128], sizes = [1, 128], strides = [1, 1]} : vector<8x768xf32> to vector<1x128xf32>
    %221 = vector.extract_strided_slice %214 {offsets = [2, 256], sizes = [1, 128], strides = [1, 1]} : vector<8x768xf32> to vector<1x128xf32>
    %222 = vector.extract_strided_slice %214 {offsets = [2, 384], sizes = [1, 128], strides = [1, 1]} : vector<8x768xf32> to vector<1x128xf32>
    %223 = arith.truncf %204 : vector<16x128xf32> to vector<16x128xbf16>
    %cst_72 = arith.constant dense<0.000000e+00> : vector<16x768xf32>
    %224 = tpu.matmul %223, %206, %cst_72 {dimension_numbers = #tpu.dot_dimension_numbers<[1], [0], [0], [1], [0, 0, 1, 1], [], []>} : vector<16x128xbf16>, vector<128x768xbf16>, vector<16x768xf32> -> vector<16x768xf32>
    %225 = vector.broadcast %215 : vector<1x768xf32> to vector<16x768xf32>
    %226 = arith.addf %224, %225 : vector<16x768xf32>
    %227 = vector.extract_strided_slice %26 {offsets = [0, 0], sizes = [1, 8], strides = [1, 1]} : vector<2x8xf32> to vector<1x8xf32>
    %228 = vector.extract_strided_slice %226 {offsets = [0, 0], sizes = [1, 128], strides = [1, 1]} : vector<16x768xf32> to vector<1x128xf32>
    %229 = vector.extract_strided_slice %226 {offsets = [0, 256], sizes = [8, 128], strides = [1, 1]} : vector<16x768xf32> to vector<8x128xf32>
    %230 = vector.extract_strided_slice %226 {offsets = [0, 512], sizes = [8, 128], strides = [1, 1]} : vector<16x768xf32> to vector<8x128xf32>
    %231 = arith.truncf %228 : vector<1x128xf32> to vector<1x128xbf16>
    %232 = arith.truncf %229 : vector<8x128xf32> to vector<8x128xbf16>
    %cst_73 = arith.constant dense<0.000000e+00> : vector<1x8xf32>
    %233 = tpu.matmul %231, %232, %cst_73 {dimension_numbers = #tpu.dot_dimension_numbers<[1], [1], [0], [0], [0, 0, 1, 0], [], []>} : vector<1x128xbf16>, vector<8x128xbf16>, vector<1x8xf32> -> vector<1x8xf32>
    %234 = arith.addf %233, %227 : vector<1x8xf32>
    %cst_74 = arith.constant dense<0xFF800000> : vector<1xf32>
    %235 = vector.multi_reduction <maximumf>, %234, %cst_74 [1] : vector<1x8xf32> to vector<1xf32>
    %236 = vector.shape_cast %235 : vector<1xf32> to vector<1x1xf32>
    %237 = vector.broadcast %236 : vector<1x1xf32> to vector<1x8xf32>
    %238 = arith.subf %234, %237 : vector<1x8xf32>
    %239 = math.exp %238 : vector<1x8xf32>
    %cst_75 = arith.constant dense<0.000000e+00> : vector<1xf32>
    %240 = vector.multi_reduction <add>, %239, %cst_75 [1] : vector<1x8xf32> to vector<1xf32>
    %241 = vector.shape_cast %240 : vector<1xf32> to vector<1x1xf32>
    %242 = tpu.reciprocal %241 {approx = true} : vector<1x1xf32> -> vector<1x1xf32>
    %243 = vector.broadcast %242 : vector<1x1xf32> to vector<1x8xf32>
    %244 = arith.mulf %239, %243 : vector<1x8xf32>
    %245 = arith.truncf %244 : vector<1x8xf32> to vector<1x8xbf16>
    %246 = arith.truncf %230 : vector<8x128xf32> to vector<8x128xbf16>
    %cst_76 = arith.constant dense<0.000000e+00> : vector<1x128xf32>
    %247 = tpu.matmul %245, %246, %cst_76 {dimension_numbers = #tpu.dot_dimension_numbers<[1], [0], [0], [1], [0, 0, 1, 1], [], []>} : vector<1x8xbf16>, vector<8x128xbf16>, vector<1x128xf32> -> vector<1x128xf32>
    %248 = vector.extract_strided_slice %226 {offsets = [0, 128], sizes = [1, 128], strides = [1, 1]} : vector<16x768xf32> to vector<1x128xf32>
    %249 = vector.extract_strided_slice %226 {offsets = [0, 384], sizes = [8, 128], strides = [1, 1]} : vector<16x768xf32> to vector<8x128xf32>
    %250 = vector.extract_strided_slice %226 {offsets = [0, 640], sizes = [8, 128], strides = [1, 1]} : vector<16x768xf32> to vector<8x128xf32>
    %251 = arith.truncf %248 : vector<1x128xf32> to vector<1x128xbf16>
    %252 = arith.truncf %249 : vector<8x128xf32> to vector<8x128xbf16>
    %cst_77 = arith.constant dense<0.000000e+00> : vector<1x8xf32>
    %253 = tpu.matmul %251, %252, %cst_77 {dimension_numbers = #tpu.dot_dimension_numbers<[1], [1], [0], [0], [0, 0, 1, 0], [], []>} : vector<1x128xbf16>, vector<8x128xbf16>, vector<1x8xf32> -> vector<1x8xf32>
    %254 = arith.addf %253, %227 : vector<1x8xf32>
    %cst_78 = arith.constant dense<0xFF800000> : vector<1xf32>
    %255 = vector.multi_reduction <maximumf>, %254, %cst_78 [1] : vector<1x8xf32> to vector<1xf32>
    %256 = vector.shape_cast %255 : vector<1xf32> to vector<1x1xf32>
    %257 = vector.broadcast %256 : vector<1x1xf32> to vector<1x8xf32>
    %258 = arith.subf %254, %257 : vector<1x8xf32>
    %259 = math.exp %258 : vector<1x8xf32>
    %cst_79 = arith.constant dense<0.000000e+00> : vector<1xf32>
    %260 = vector.multi_reduction <add>, %259, %cst_79 [1] : vector<1x8xf32> to vector<1xf32>
    %261 = vector.shape_cast %260 : vector<1xf32> to vector<1x1xf32>
    %262 = tpu.reciprocal %261 {approx = true} : vector<1x1xf32> -> vector<1x1xf32>
    %263 = vector.broadcast %262 : vector<1x1xf32> to vector<1x8xf32>
    %264 = arith.mulf %259, %263 : vector<1x8xf32>
    %265 = arith.truncf %264 : vector<1x8xf32> to vector<1x8xbf16>
    %266 = arith.truncf %250 : vector<8x128xf32> to vector<8x128xbf16>
    %cst_80 = arith.constant dense<0.000000e+00> : vector<1x128xf32>
    %267 = tpu.matmul %265, %266, %cst_80 {dimension_numbers = #tpu.dot_dimension_numbers<[1], [0], [0], [1], [0, 0, 1, 1], [], []>} : vector<1x8xbf16>, vector<8x128xbf16>, vector<1x128xf32> -> vector<1x128xf32>
    %268 = tpu.concatenate %247, %267 in 1 : vector<1x128xf32>, vector<1x128xf32> -> vector<1x256xf32>
    %269 = vector.extract_strided_slice %26 {offsets = [1, 0], sizes = [1, 8], strides = [1, 1]} : vector<2x8xf32> to vector<1x8xf32>
    %270 = vector.extract_strided_slice %226 {offsets = [8, 0], sizes = [1, 128], strides = [1, 1]} : vector<16x768xf32> to vector<1x128xf32>
    %271 = vector.extract_strided_slice %226 {offsets = [8, 256], sizes = [8, 128], strides = [1, 1]} : vector<16x768xf32> to vector<8x128xf32>
    %272 = vector.extract_strided_slice %226 {offsets = [8, 512], sizes = [8, 128], strides = [1, 1]} : vector<16x768xf32> to vector<8x128xf32>
    %273 = arith.truncf %270 : vector<1x128xf32> to vector<1x128xbf16>
    %274 = arith.truncf %271 : vector<8x128xf32> to vector<8x128xbf16>
    %cst_81 = arith.constant dense<0.000000e+00> : vector<1x8xf32>
    %275 = tpu.matmul %273, %274, %cst_81 {dimension_numbers = #tpu.dot_dimension_numbers<[1], [1], [0], [0], [0, 0, 1, 0], [], []>} : vector<1x128xbf16>, vector<8x128xbf16>, vector<1x8xf32> -> vector<1x8xf32>
    %276 = arith.addf %275, %269 : vector<1x8xf32>
    %cst_82 = arith.constant dense<0xFF800000> : vector<1xf32>
    %277 = vector.multi_reduction <maximumf>, %276, %cst_82 [1] : vector<1x8xf32> to vector<1xf32>
    %278 = vector.shape_cast %277 : vector<1xf32> to vector<1x1xf32>
    %279 = vector.broadcast %278 : vector<1x1xf32> to vector<1x8xf32>
    %280 = arith.subf %276, %279 : vector<1x8xf32>
    %281 = math.exp %280 : vector<1x8xf32>
    %cst_83 = arith.constant dense<0.000000e+00> : vector<1xf32>
    %282 = vector.multi_reduction <add>, %281, %cst_83 [1] : vector<1x8xf32> to vector<1xf32>
    %283 = vector.shape_cast %282 : vector<1xf32> to vector<1x1xf32>
    %284 = tpu.reciprocal %283 {approx = true} : vector<1x1xf32> -> vector<1x1xf32>
    %285 = vector.broadcast %284 : vector<1x1xf32> to vector<1x8xf32>
    %286 = arith.mulf %281, %285 : vector<1x8xf32>
    %287 = arith.truncf %286 : vector<1x8xf32> to vector<1x8xbf16>
    %288 = arith.truncf %272 : vector<8x128xf32> to vector<8x128xbf16>
    %cst_84 = arith.constant dense<0.000000e+00> : vector<1x128xf32>
    %289 = tpu.matmul %287, %288, %cst_84 {dimension_numbers = #tpu.dot_dimension_numbers<[1], [0], [0], [1], [0, 0, 1, 1], [], []>} : vector<1x8xbf16>, vector<8x128xbf16>, vector<1x128xf32> -> vector<1x128xf32>
    %290 = vector.extract_strided_slice %226 {offsets = [8, 128], sizes = [1, 128], strides = [1, 1]} : vector<16x768xf32> to vector<1x128xf32>
    %291 = vector.extract_strided_slice %226 {offsets = [8, 384], sizes = [8, 128], strides = [1, 1]} : vector<16x768xf32> to vector<8x128xf32>
    %292 = vector.extract_strided_slice %226 {offsets = [8, 640], sizes = [8, 128], strides = [1, 1]} : vector<16x768xf32> to vector<8x128xf32>
    %293 = arith.truncf %290 : vector<1x128xf32> to vector<1x128xbf16>
    %294 = arith.truncf %291 : vector<8x128xf32> to vector<8x128xbf16>
    %cst_85 = arith.constant dense<0.000000e+00> : vector<1x8xf32>
    %295 = tpu.matmul %293, %294, %cst_85 {dimension_numbers = #tpu.dot_dimension_numbers<[1], [1], [0], [0], [0, 0, 1, 0], [], []>} : vector<1x128xbf16>, vector<8x128xbf16>, vector<1x8xf32> -> vector<1x8xf32>
    %296 = arith.addf %295, %269 : vector<1x8xf32>
    %cst_86 = arith.constant dense<0xFF800000> : vector<1xf32>
    %297 = vector.multi_reduction <maximumf>, %296, %cst_86 [1] : vector<1x8xf32> to vector<1xf32>
    %298 = vector.shape_cast %297 : vector<1xf32> to vector<1x1xf32>
    %299 = vector.broadcast %298 : vector<1x1xf32> to vector<1x8xf32>
    %300 = arith.subf %296, %299 : vector<1x8xf32>
    %301 = math.exp %300 : vector<1x8xf32>
    %cst_87 = arith.constant dense<0.000000e+00> : vector<1xf32>
    %302 = vector.multi_reduction <add>, %301, %cst_87 [1] : vector<1x8xf32> to vector<1xf32>
    %303 = vector.shape_cast %302 : vector<1xf32> to vector<1x1xf32>
    %304 = tpu.reciprocal %303 {approx = true} : vector<1x1xf32> -> vector<1x1xf32>
    %305 = vector.broadcast %304 : vector<1x1xf32> to vector<1x8xf32>
    %306 = arith.mulf %301, %305 : vector<1x8xf32>
    %307 = arith.truncf %306 : vector<1x8xf32> to vector<1x8xbf16>
    %308 = arith.truncf %292 : vector<8x128xf32> to vector<8x128xbf16>
    %cst_88 = arith.constant dense<0.000000e+00> : vector<1x128xf32>
    %309 = tpu.matmul %307, %308, %cst_88 {dimension_numbers = #tpu.dot_dimension_numbers<[1], [0], [0], [1], [0, 0, 1, 1], [], []>} : vector<1x8xbf16>, vector<8x128xbf16>, vector<1x128xf32> -> vector<1x128xf32>
    %310 = tpu.concatenate %289, %309 in 1 : vector<1x128xf32>, vector<1x128xf32> -> vector<1x256xf32>
    %311 = tpu.concatenate %268, %310 in 0 : vector<1x256xf32>, vector<1x256xf32> -> vector<2x256xf32>
    %312 = vector.extract_strided_slice %204 {offsets = [0, 0], sizes = [1, 128], strides = [1, 1]} : vector<16x128xf32> to vector<1x128xf32>
    %313 = vector.extract_strided_slice %204 {offsets = [8, 0], sizes = [1, 128], strides = [1, 1]} : vector<16x128xf32> to vector<1x128xf32>
    %314 = tpu.concatenate %312, %313 in 0 : vector<1x128xf32>, vector<1x128xf32> -> vector<2x128xf32>
    %315 = arith.truncf %311 : vector<2x256xf32> to vector<2x256xbf16>
    %cst_89 = arith.constant dense<0.000000e+00> : vector<2x128xf32>
    %316 = tpu.matmul %315, %208, %cst_89 {dimension_numbers = #tpu.dot_dimension_numbers<[1], [0], [0], [1], [0, 0, 1, 1], [], []>} : vector<2x256xbf16>, vector<256x128xbf16>, vector<2x128xf32> -> vector<2x128xf32>
    %317 = vector.broadcast %217 : vector<1x128xf32> to vector<2x128xf32>
    %318 = arith.addf %316, %317 : vector<2x128xf32>
    %319 = arith.addf %318, %314 : vector<2x128xf32>
    %cst_90 = arith.constant dense<0.000000e+00> : vector<2xf32>
    %320 = vector.multi_reduction <add>, %319, %cst_90 [1] : vector<2x128xf32> to vector<2xf32>
    %321 = vector.shape_cast %320 : vector<2xf32> to vector<2x1xf32>
    %cst_91 = arith.constant 1.280000e+02 : f32
    %322 = vector.broadcast %cst_91 : f32 to vector<2x1xf32>
    %323 = arith.divf %321, %322 : vector<2x1xf32>
    %324 = vector.broadcast %323 : vector<2x1xf32> to vector<2x128xf32>
    %325 = arith.subf %319, %324 : vector<2x128xf32>
    %326 = arith.mulf %325, %325 : vector<2x128xf32>
    %cst_92 = arith.constant dense<0.000000e+00> : vector<2xf32>
    %327 = vector.multi_reduction <add>, %326, %cst_92 [1] : vector<2x128xf32> to vector<2xf32>
    %328 = vector.shape_cast %327 : vector<2xf32> to vector<2x1xf32>
    %cst_93 = arith.constant 1.280000e+02 : f32
    %329 = vector.broadcast %cst_93 : f32 to vector<2x1xf32>
    %330 = arith.divf %328, %329 : vector<2x1xf32>
    %cst_94 = arith.constant 9.99999996E-13 : f32
    %331 = vector.broadcast %cst_94 : f32 to vector<2x1xf32>
    %332 = arith.addf %330, %331 : vector<2x1xf32>
    %333 = math.rsqrt %332 : vector<2x1xf32>
    %334 = vector.broadcast %333 : vector<2x1xf32> to vector<2x128xf32>
    %335 = arith.mulf %325, %334 : vector<2x128xf32>
    %336 = vector.broadcast %219 : vector<1x128xf32> to vector<2x128xf32>
    %337 = arith.mulf %335, %336 : vector<2x128xf32>
    %338 = vector.broadcast %220 : vector<1x128xf32> to vector<2x128xf32>
    %339 = arith.addf %337, %338 : vector<2x128xf32>
    %340 = arith.truncf %339 : vector<2x128xf32> to vector<2x128xbf16>
    %cst_95 = arith.constant dense<0.000000e+00> : vector<2x512xf32>
    %341 = tpu.matmul %340, %210, %cst_95 {dimension_numbers = #tpu.dot_dimension_numbers<[1], [0], [0], [1], [0, 0, 1, 1], [], []>} : vector<2x128xbf16>, vector<128x512xbf16>, vector<2x512xf32> -> vector<2x512xf32>
    %342 = vector.broadcast %216 : vector<1x512xf32> to vector<2x512xf32>
    %343 = arith.addf %341, %342 : vector<2x512xf32>
    %cst_96 = arith.constant 5.000000e-01 : f32
    %344 = vector.broadcast %cst_96 : f32 to vector<2x512xf32>
    %345 = arith.mulf %344, %343 : vector<2x512xf32>
    %cst_97 = arith.constant 4.471500e-02 : f32
    %346 = vector.broadcast %cst_97 : f32 to vector<2x512xf32>
    %347 = arith.mulf %346, %343 : vector<2x512xf32>
    %348 = arith.mulf %347, %343 : vector<2x512xf32>
    %349 = arith.mulf %348, %343 : vector<2x512xf32>
    %350 = arith.addf %343, %349 : vector<2x512xf32>
    %cst_98 = arith.constant 0.797884583 : f32
    %351 = vector.broadcast %cst_98 : f32 to vector<2x512xf32>
    %352 = arith.mulf %351, %350 : vector<2x512xf32>
    %353 = math.tanh %352 : vector<2x512xf32>
    %cst_99 = arith.constant 1.000000e+00 : f32
    %354 = vector.broadcast %cst_99 : f32 to vector<2x512xf32>
    %355 = arith.addf %354, %353 : vector<2x512xf32>
    %356 = arith.mulf %345, %355 : vector<2x512xf32>
    %357 = arith.truncf %356 : vector<2x512xf32> to vector<2x512xbf16>
    %cst_100 = arith.constant dense<0.000000e+00> : vector<2x128xf32>
    %358 = tpu.matmul %357, %212, %cst_100 {dimension_numbers = #tpu.dot_dimension_numbers<[1], [0], [0], [1], [0, 0, 1, 1], [], []>} : vector<2x512xbf16>, vector<512x128xbf16>, vector<2x128xf32> -> vector<2x128xf32>
    %359 = vector.broadcast %218 : vector<1x128xf32> to vector<2x128xf32>
    %360 = arith.addf %358, %359 : vector<2x128xf32>
    %361 = arith.addf %360, %339 : vector<2x128xf32>
    %cst_101 = arith.constant dense<0.000000e+00> : vector<2xf32>
    %362 = vector.multi_reduction <add>, %361, %cst_101 [1] : vector<2x128xf32> to vector<2xf32>
    %363 = vector.shape_cast %362 : vector<2xf32> to vector<2x1xf32>
    %cst_102 = arith.constant 1.280000e+02 : f32
    %364 = vector.broadcast %cst_102 : f32 to vector<2x1xf32>
    %365 = arith.divf %363, %364 : vector<2x1xf32>
    %366 = vector.broadcast %365 : vector<2x1xf32> to vector<2x128xf32>
    %367 = arith.subf %361, %366 : vector<2x128xf32>
    %368 = arith.mulf %367, %367 : vector<2x128xf32>
    %cst_103 = arith.constant dense<0.000000e+00> : vector<2xf32>
    %369 = vector.multi_reduction <add>, %368, %cst_103 [1] : vector<2x128xf32> to vector<2xf32>
    %370 = vector.shape_cast %369 : vector<2xf32> to vector<2x1xf32>
    %cst_104 = arith.constant 1.280000e+02 : f32
    %371 = vector.broadcast %cst_104 : f32 to vector<2x1xf32>
    %372 = arith.divf %370, %371 : vector<2x1xf32>
    %cst_105 = arith.constant 9.99999996E-13 : f32
    %373 = vector.broadcast %cst_105 : f32 to vector<2x1xf32>
    %374 = arith.addf %372, %373 : vector<2x1xf32>
    %375 = math.rsqrt %374 : vector<2x1xf32>
    %376 = vector.broadcast %375 : vector<2x1xf32> to vector<2x128xf32>
    %377 = arith.mulf %367, %376 : vector<2x128xf32>
    %378 = vector.broadcast %221 : vector<1x128xf32> to vector<2x128xf32>
    %379 = arith.mulf %377, %378 : vector<2x128xf32>
    %380 = vector.broadcast %222 : vector<1x128xf32> to vector<2x128xf32>
    %381 = arith.addf %379, %380 : vector<2x128xf32>
    %382 = arith.truncf %381 : vector<2x128xf32> to vector<2x128xbf16>
    %c0_106 = arith.constant 0 : index
    %c0_107 = arith.constant 0 : index
    %383 = vector.load %arg7[%c0_106, %c0_107] : memref<128x512xbf16, #tpu.memory_space<vmem>>, vector<128x512xbf16>
    %cst_108 = arith.constant dense<0.000000e+00> : vector<2x512xf32>
    %384 = tpu.matmul %382, %383, %cst_108 {dimension_numbers = #tpu.dot_dimension_numbers<[1], [0], [0], [1], [0, 0, 1, 1], [], []>} : vector<2x128xbf16>, vector<128x512xbf16>, vector<2x512xf32> -> vector<2x512xf32>
    %385 = vector.broadcast %4 : vector<1x512xf32> to vector<2x512xf32>
    %386 = arith.addf %384, %385 : vector<2x512xf32>
    %387 = vector.extract_strided_slice %386 {offsets = [0, 0], sizes = [2, 128], strides = [1, 1]} : vector<2x512xf32> to vector<2x128xf32>
    %cst_109 = arith.constant 0.000000e+00 : f32
    %388 = vector.broadcast %cst_109 : f32 to vector<2x128xf32>
    %389 = arith.subf %388, %387 : vector<2x128xf32>
    %390 = math.exp %389 : vector<2x128xf32>
    %cst_110 = arith.constant 1.000000e+00 : f32
    %391 = vector.broadcast %cst_110 : f32 to vector<2x128xf32>
    %392 = arith.addf %391, %390 : vector<2x128xf32>
    %393 = tpu.reciprocal %392 {approx = true} : vector<2x128xf32> -> vector<2x128xf32>
    %394 = vector.extract_strided_slice %386 {offsets = [0, 256], sizes = [2, 128], strides = [1, 1]} : vector<2x512xf32> to vector<2x128xf32>
    %395 = math.tanh %394 : vector<2x128xf32>
    %396 = vector.extract_strided_slice %386 {offsets = [0, 384], sizes = [2, 128], strides = [1, 1]} : vector<2x512xf32> to vector<2x128xf32>
    %cst_111 = arith.constant 0.000000e+00 : f32
    %397 = vector.broadcast %cst_111 : f32 to vector<2x128xf32>
    %398 = arith.subf %397, %396 : vector<2x128xf32>
    %399 = math.exp %398 : vector<2x128xf32>
    %cst_112 = arith.constant 1.000000e+00 : f32
    %400 = vector.broadcast %cst_112 : f32 to vector<2x128xf32>
    %401 = arith.addf %400, %399 : vector<2x128xf32>
    %402 = tpu.reciprocal %401 {approx = true} : vector<2x128xf32> -> vector<2x128xf32>
    %403 = arith.mulf %393, %395 : vector<2x128xf32>
    %404 = math.tanh %403 : vector<2x128xf32>
    %405 = arith.mulf %402, %404 : vector<2x128xf32>
    %406 = arith.truncf %405 : vector<2x128xf32> to vector<2x128xbf16>
    %c0_113 = arith.constant 0 : index
    %c0_114 = arith.constant 0 : index
    %407 = vector.load %arg8[%c0_113, %c0_114] : memref<128x128xbf16, #tpu.memory_space<vmem>>, vector<128x128xbf16>
    %cst_115 = arith.constant dense<0.000000e+00> : vector<2x128xf32>
    %408 = tpu.matmul %406, %407, %cst_115 {dimension_numbers = #tpu.dot_dimension_numbers<[1], [0], [0], [1], [0, 0, 1, 1], [], []>} : vector<2x128xbf16>, vector<128x128xbf16>, vector<2x128xf32> -> vector<2x128xf32>
    %409 = vector.broadcast %3 : vector<1x128xf32> to vector<2x128xf32>
    %410 = arith.addf %408, %409 : vector<2x128xf32>
    %c0_116 = arith.constant 0 : index
    %c0_117 = arith.constant 0 : index
    %411 = vector.load %arg10[%c0_116, %c0_117] : memref<2x128xf32, #tpu.memory_space<vmem>>, vector<2x128xf32>
    tpu.vector_store %arg10[%c0_116, %c0_117], %410 {strides = array<i32>} : memref<2x128xf32, #tpu.memory_space<vmem>>, vector<2x128xf32>,
    return
  }
}

</mosaic_0001>

<bundles_post_ra>
// kernel: bert_lstm_forward.1
= control target key start
LH: loop header
LB: loop body
LE: loop exit
PB: predicated region body
PF: predicated region fallthrough
CT: control target
= control target key end

     0   :  { %15 = vsyncpa [#allocation3], 0  ;;  %s5483_s0 = inlined_call_operand.vmem [shape: f32[16,128], index: 0, kind: input, shape index: {}]   ;;  %s5484_s1 = inlined_call_operand.vmem [shape: f32[2,8], index: 1, kind: input, shape index: {}]   ;;  %s5485_s2 = inlined_call_operand.hbm [shape: bf16[2,128,768], index: 2, kind: input, shape index: {}]   ;;  %s5486_s3 = inlined_call_operand.hbm [shape: bf16[2,256,128], index: 3, kind: input, shape index: {}]   ;;  %s5487_s4 = inlined_call_operand.hbm [shape: bf16[2,128,512], index: 4, kind: input, shape index: {}]   ;;  %s5488_s5 = inlined_call_operand.hbm [shape: bf16[2,512,128], index: 5, kind: input, shape index: {}]   ;;  %s5489_s6 = inlined_call_operand.vmem [shape: f32[2,8,768], index: 6, kind: input, shape index: {}]   ;;  %s5490_s7 = inlined_call_operand.hbm [shape: bf16[128,512], index: 7, kind: input, shape index: {}]   ;;  %s5491_s8 = inlined_call_operand.vmem [shape: bf16[128,128], index: 8, kind: input, shape index: {}]   ;;  %s5492_s9 = inlined_call_operand.vmem [shape: f32[8,512], index: 9, kind: input, shape index: {}]   ;;  %s5493_s10 = inlined_call_operand.hbm [shape: f32[2,128], index: 10, kind: output, shape index: {}]  }
   0x1   :  { %16 = vsyncpa [#allocation6], 0 }
   0x2   :  { %17 = vsyncpa [#allocation9], 0  ;;  %s40_s15 = sshll.u32 %s5486_s3, 4  ;;  %s41_s15 = int_to_ptr.hbm [resolvable:$true] %s40_s15 }
   0x3   :  { %18 = vsyncpa [#allocation4], 0  ;;  %s5082_s16 = smov [#allocation5]   ;;  %s66_s20 = sshll.u32 %s5488_s5, 4  ;;  %s67_s20 = int_to_ptr.hbm [resolvable:$true] %s66_s20 }
   0x4   :  { %s42_s17 = sshll.u32 %s5082_s16, 4  ;;  %s5083_s21 = smov 64   ;;  %s43_s17 = int_to_ptr.vmem [resolvable:$true] %s42_s17 }
   0x5   :  { %s5084_s22 = smov 4   ;;  %s5085_s23 = smov [#allocation8]  }
   0x6   :  { %48 = dma.hbm_to_vmem [thread:$0]  %s41_s15, 4096, %s43_s17, [#allocation6], %s5083_s21, %s5083_s21, %s5084_s22  }
   0x7   :  { %s68_s24 = sshll.u32 %s5085_s23, 4  ;;  %s27_s27 = sshll.u32 %s5485_s2, 4  ;;  %s69_s24 = int_to_ptr.vmem [resolvable:$true] %s68_s24  ;;  %s28_s27 = int_to_ptr.hbm [resolvable:$true] %s27_s27 }
   0x8   :  { %74 = dma.hbm_to_vmem [thread:$0]  %s67_s20, 8192, %s69_s24, [#allocation9], %s5083_s21, %s5083_s21, %s5084_s22  }
   0x9   :  { %s5086_s3 = smov [#allocation2]   ;;  %s53_s5 = sshll.u32 %s5487_s4, 4  ;;  %s54_s5 = int_to_ptr.hbm [resolvable:$true] %s53_s5 }
   0xa   :  { %s29_s28 = sshll.u32 %s5086_s3, 4  ;;  %s5087_s11 = smov 384   ;;  %s30_s28 = int_to_ptr.vmem [resolvable:$true] %s29_s28 }
   0xb   :  { %s5088_s12 = smov 24   ;;  %s5089_s13 = smov [#allocation7]  }
   0xc   :  { %35 = dma.hbm_to_vmem [thread:$0]  %s28_s27, 12288, %s30_s28, [#allocation3], %s5087_s11, %s5087_s11, %s5088_s12  }
   0xd   :  { %s55_s14 = sshll.u32 %s5089_s13, 4  ;;  %s5090_s15 = smov 256   ;;  %s56_s14 = int_to_ptr.vmem [resolvable:$true] %s55_s14 }
   0xe   :  { %s5091_s16 = smov 16   ;;  %s81_s18 = sshll.u32 %s5490_s7, 4  ;;  %s82_s18 = int_to_ptr.hbm [resolvable:$true] %s81_s18 }
   0xf   :  { %61 = dma.hbm_to_vmem [thread:$0]  %s54_s5, 8192, %s56_s14, [#allocation6], %s5090_s15, %s5090_s15, %s5091_s16  }
  0x10   :  { %s5092_s19 = smov [#allocation10]  }
  0x11   :  { %s83_s20 = sshll.u32 %s5092_s19, 4  ;;  %s84_s20 = int_to_ptr.vmem [resolvable:$true] %s83_s20 }
  0x12   :  { %89 = dma.hbm_to_vmem [thread:$0]  %s82_s18, 4096, %s84_s20, [#allocation9], %s5090_s15, %s5090_s15, %s5091_s16  }
  0x13   :  { %5074 = dma.done.wait [#allocation3], 12288  }
  0x14   :  { %5075 = vsyncadd [#allocation3], 4294955008 }
  0x15   :  { %5076 = dma.done.wait [#allocation6], 12288  }
  0x16   :  { %5077 = vsyncadd [#allocation6], 4294955008 }
  0x17   :  { %5078 = dma.done.wait [#allocation9], 12288  }
  0x18   :  { %5079 = vsyncadd [#allocation9], 4294955008  ;;  %v119_v0 = vld [vmem:[%s5483_s0] sm:$0xff]  ;;  %v120_v1 = vld [vmem:[%s5483_s0 + $0x8] sm:$0xff]  ;;  %v5093_v2 = vmov 128.0   ;;  %vm721_vm7 = vcmask 1043456  }
  0x19   :  { %121 = vadd.xlane.f32.xlu0 %v119_v0  ;;  %4837 = vrcp.f32 %v5093_v2  ;;  %v3540_v5 = vld [vmem:[#allocation2 + $0x150] sm:$0xf]  ;;  %v4581_v6 = vld [vmem:[#allocation2 + $0x164] sm:$0xf0]  ;;  %v4578_v7 = vld [vmem:[#allocation2 + $0x154] sm:$0xf] }
  0x1a   :  { %v3541_v8 = vor.u32 %v4581_v6, %v3540_v5  ;;  %v3542_v9 = vld [vmem:[#allocation2 + $0x168] sm:$0xf0]  ;;  %v3516_v10 = vld [vmem:[#allocation2 + $0x120] sm:$0xf]  ;;  %v4575_v11 = vld [vmem:[#allocation2 + $0x134] sm:$0xf0] }
  0x1b   :  { %v3545_v12 = vor.u32 %v4578_v7, %v3542_v9  ;;  %v4572_v13 = vld [vmem:[#allocation2 + $0x124] sm:$0xf]  ;;  %v3518_v14 = vld [vmem:[#allocation2 + $0x138] sm:$0xf0]  ;;  %v3517_v16 = vor.u32 %v4575_v11, %v3516_v10  ;;  %v3492_v29 = vld [vmem:[#allocation2 + $0xf0] sm:$0xf] }
  0x1c   :  { %604 = vmatpush.bf16.msra.mxu0 %v3541_v8  ;;  %v3521_v17 = vor.u32 %v4572_v13, %v3518_v14  ;;  %v4569_v30 = vld [vmem:[#allocation2 + $0x104] sm:$0xf0]  ;;  %v4566_v31 = vld [vmem:[#allocation2 + $0xf4] sm:$0xf]  ;;  %v3494_v32 = vld [vmem:[#allocation2 + $0x108] sm:$0xf0] }
  0x1d   :  { %618 = vmatpush.bf16.msra.mxu1 %v3545_v12  ;;  %v3493_v33 = vor.u32 %v4569_v30, %v3492_v29  ;;  %v3497_v34 = vor.u32 %v4566_v31, %v3494_v32  ;;  %v3468_v35 = vld [vmem:[#allocation2 + $0xc0] sm:$0xf]  ;;  %v4563_v36 = vld [vmem:[#allocation2 + $0xd4] sm:$0xf0]  ;;  %v4560_v37 = vld [vmem:[#allocation2 + $0xc4] sm:$0xf] }
  0x1e   :  { %v3469_v38 = vor.u32 %v4563_v36, %v3468_v35  ;;  %v3470_v39 = vld [vmem:[#allocation2 + $0xd8] sm:$0xf0]  ;;  %v3548_v40 = vld [vmem:[#allocation2 + $0x158] sm:$0xf]  ;;  %v4582_v41 = vld [vmem:[#allocation2 + $0x16c] sm:$0xf0] }
  0x1f   :  { %v4838_v3 = vpop.eup %4837  ;;  %v3473_v42 = vor.u32 %v4560_v37, %v3470_v39  ;;  %v3549_v43 = vor.u32 %v4582_v41, %v3548_v40  ;;  %v4579_v44 = vld [vmem:[#allocation2 + $0x15c] sm:$0xf]  ;;  %v3550_v45 = vld [vmem:[#allocation2 + $0x170] sm:$0xf0]  ;;  %v3444_v47 = vld [vmem:[#allocation2 + $0x90] sm:$0xf] }
  0x20   :  { %v126_v4 = vmul.f32 128.0, %v4838_v3  ;;  %605 = vmatpush.bf16.msra.mxu0 %v3517_v16  ;;  %vm130_vm0 = vweird.f32 %v4838_v3  ;;  %v3553_v46 = vor.u32 %v4579_v44, %v3550_v45  ;;  %v4557_v48 = vld [vmem:[#allocation2 + $0xa4] sm:$0xf0]  ;;  %v4554_v49 = vld [vmem:[#allocation2 + $0x94] sm:$0xf]  ;;  %vm704_vm8 = vcmask 64512  }
  0x21   :  { %123 = vadd.xlane.f32.xlu0 %v120_v1  ;;  %619 = vmatpush.bf16.msra.mxu1 %v3521_v17  ;;  %v3445_v50 = vor.u32 %v4557_v48, %v3444_v47  ;;  %v3446_v51 = vld [vmem:[#allocation2 + $0xa8] sm:$0xf0]  ;;  %v3524_v52 = vld [vmem:[#allocation2 + $0x128] sm:$0xf]  ;;  %v4576_v53 = vld [vmem:[#allocation2 + $0x13c] sm:$0xf0] }
  0x22   :  { %v127_v15 = vsub.f32 1.0, %v126_v4  ;;  %632 = vmatpush.bf16.msra.mxu2 %v3549_v43  ;;  %646 = vmatpush.bf16.msra.mxu3 %v3553_v46  ;;  %v3449_v54 = vor.u32 %v4554_v49, %v3446_v51  ;;  %v3525_v55 = vor.u32 %v4576_v53, %v3524_v52  ;;  %v4573_v56 = vld [vmem:[#allocation2 + $0x12c] sm:$0xf]  ;;  %v3526_v57 = vld [vmem:[#allocation2 + $0x140] sm:$0xf0] }
  0x23   :  { %v3529_v58 = vor.u32 %v4573_v56, %v3526_v57  ;;  %v3420_v59 = vld [vmem:[#allocation2 + $0x60] sm:$0xf]  ;;  %v4551_v60 = vld [vmem:[#allocation2 + $0x74] sm:$0xf0]  ;;  %v4548_v61 = vld [vmem:[#allocation2 + $0x64] sm:$0xf] }
  0x24   :  { %v128_v18 = vmul.f32 %v4838_v3, %v127_v15  ;;  %606 = vmatpush.bf16.msra.mxu0 %v3493_v33  ;;  %v3421_v62 = vor.u32 %v4551_v60, %v3420_v59  ;;  %v3422_v63 = vld [vmem:[#allocation2 + $0x78] sm:$0xf0]  ;;  %v3502_v5 = vld [vmem:[#allocation2 + $0x110] sm:$0xf0]  ;;  %v3396_v7 = vld [vmem:[#allocation2 + $0x30] sm:$0xf] }
  0x25   :  { %620 = vmatpush.bf16.msra.mxu1 %v3497_v34  ;;  %v3425_v2 = vor.u32 %v4548_v61, %v3422_v63  ;;  %v4567_v4 = vld [vmem:[#allocation2 + $0xfc] sm:$0xf]  ;;  %v4545_v8 = vld [vmem:[#allocation2 + $0x44] sm:$0xf0]  ;;  %v4542_v9 = vld [vmem:[#allocation2 + $0x34] sm:$0xf] }
  0x26   :  { %v129_v19 = vadd.f32 %v4838_v3, %v128_v18  ;;  %633 = vmatpush.bf16.msra.mxu2 %v3525_v55  ;;  %647 = vmatpush.bf16.msra.mxu3 %v3529_v58  ;;  %v3505_v6 = vor.u32 %v4567_v4, %v3502_v5  ;;  %v3397_v10 = vor.u32 %v4545_v8, %v3396_v7  ;;  %v3398_v11 = vld [vmem:[#allocation2 + $0x48] sm:$0xf0]  ;;  %v3476_v12 = vld [vmem:[#allocation2 + $0xc8] sm:$0xf]  ;;  %v4564_v13 = vld [vmem:[#allocation2 + $0xdc] sm:$0xf0] }
  0x27   :  { %v3401_v14 = vor.u32 %v4542_v9, %v3398_v11  ;;  %v3477_v15 = vor.u32 %v4564_v13, %v3476_v12  ;;  %v4561_v16 = vld [vmem:[#allocation2 + $0xcc] sm:$0xf]  ;;  %v3478_v17 = vld [vmem:[#allocation2 + $0xe0] sm:$0xf0]  ;;  %v4555_v31 = vld [vmem:[#allocation2 + $0x9c] sm:$0xf] }
  0x28   :  { %v5171_v20 = vsel %vm130_vm0, %v4838_v3, %v129_v19  ;;  %607 = vmatpush.bf16.msra.mxu0 %v3469_v38  ;;  %v3481_v18 = vor.u32 %v4561_v16, %v3478_v17  ;;  %v3372_v19 = vld [vmem:[#allocation2] sm:$0xf]  ;;  %v3454_v32 = vld [vmem:[#allocation2 + $0xb0] sm:$0xf0]  ;;  %v4583_v35 = vld [vmem:[#allocation2 + $0x174] sm:$0xf0] }
  0x29   :  { %621 = vmatpush.bf16.msra.mxu1 %v3473_v42  ;;  %v3556_v33 = vld [vmem:[#allocation2 + $0x160] sm:$0xf]  ;;  %v3457_v34 = vor.u32 %v4555_v31, %v3454_v32  ;;  %v4580_v36 = vld [vmem:[#allocation2 + $0x164] sm:$0xf]  ;;  %v3558_v38 = vld [vmem:[#allocation2 + $0x178] sm:$0xf0] }
  0x2a   :  { %648 = vmatpush.bf16.msra.mxu3 %v3505_v6  ;;  %v3557_v37 = vor.u32 %v4583_v35, %v3556_v33  ;;  %v3561_v39 = vor.u32 %v4580_v36, %v3558_v38  ;;  %v3428_v40 = vld [vmem:[#allocation2 + $0x68] sm:$0xf]  ;;  %v4552_v41 = vld [vmem:[#allocation2 + $0x7c] sm:$0xf0]  ;;  %v4549_v43 = vld [vmem:[#allocation2 + $0x6c] sm:$0xf] }
  0x2b   :  { %v3429_v42 = vor.u32 %v4552_v41, %v3428_v40  ;;  %v3430_v44 = vld [vmem:[#allocation2 + $0x80] sm:$0xf0]  ;;  %v3532_v45 = vld [vmem:[#allocation2 + $0x130] sm:$0xf]  ;;  %v4577_v47 = vld [vmem:[#allocation2 + $0x144] sm:$0xf0] }
  0x2c   :  { %608 = vmatpush.bf16.msra.mxu0 %v3445_v50  ;;  %v3433_v46 = vor.u32 %v4549_v43, %v3430_v44  ;;  %v4574_v48 = vld [vmem:[#allocation2 + $0x134] sm:$0xf]  ;;  %v3534_v49 = vld [vmem:[#allocation2 + $0x148] sm:$0xf0]  ;;  %v3533_v50 = vor.u32 %v4577_v47, %v3532_v45  ;;  %v3404_v52 = vld [vmem:[#allocation2 + $0x38] sm:$0xf] }
  0x2d   :  { %622 = vmatpush.bf16.msra.mxu1 %v3449_v54  ;;  %v3537_v51 = vor.u32 %v4574_v48, %v3534_v49  ;;  %v4546_v53 = vld [vmem:[#allocation2 + $0x4c] sm:$0xf0]  ;;  %v4543_v54 = vld [vmem:[#allocation2 + $0x3c] sm:$0xf]  ;;  %v3406_v56 = vld [vmem:[#allocation2 + $0x50] sm:$0xf0] }
  0x2e   :  { %649 = vmatpush.bf16.msra.mxu3 %v3481_v18  ;;  %v3405_v55 = vor.u32 %v4546_v53, %v3404_v52  ;;  %v3508_v57 = vld [vmem:[#allocation2 + $0x100] sm:$0xf]  ;;  %v4571_v58 = vld [vmem:[#allocation2 + $0x114] sm:$0xf0]  ;;  %v3409_v59 = vor.u32 %v4543_v54, %v3406_v56  ;;  %v4568_v61 = vld [vmem:[#allocation2 + $0x104] sm:$0xf] }
  0x2f   :  { %v3509_v60 = vor.u32 %v4571_v58, %v3508_v57  ;;  %v4537_v4 = vld [vmem:[#allocation2 + $0xc] sm:$0xf]  ;;  %v3382_v6 = vld [vmem:[#allocation2 + $0x20] sm:$0xf0]  ;;  %v3484_v7 = vld [vmem:[#allocation2 + $0xd0] sm:$0xf] }
  0x30   :  { %609 = vmatpush.bf16.msra.mxu0 %v3421_v62  ;;  %v3510_v62 = vld [vmem:[#allocation2 + $0x118] sm:$0xf0]  ;;  %v4565_v8 = vld [vmem:[#allocation2 + $0xe4] sm:$0xf0]  ;;  %v4562_v12 = vld [vmem:[#allocation2 + $0xd4] sm:$0xf] }
  0x31   :  { %623 = vmatpush.bf16.msra.mxu1 %v3425_v2  ;;  %v3380_v2 = vld [vmem:[#allocation2 + $0x8] sm:$0xf]  ;;  %v3485_v11 = vor.u32 %v4565_v8, %v3484_v7  ;;  %v3486_v13 = vld [vmem:[#allocation2 + $0xe8] sm:$0xf0]  ;;  %v4559_v16 = vld [vmem:[#allocation2 + $0xb4] sm:$0xf0] }
  0x32   :  { %650 = vmatpush.bf16.msra.mxu3 %v3457_v34  ;;  %v4556_v17 = vld [vmem:[#allocation2 + $0xa4] sm:$0xf]  ;;  %v3412_v34 = vld [vmem:[#allocation2 + $0x40] sm:$0xf]  ;;  %v4547_v35 = vld [vmem:[#allocation2 + $0x54] sm:$0xf0] }
  0x33   :  { %v3414_v38 = vld [vmem:[#allocation2 + $0x58] sm:$0xf0]  ;;  %v3413_v40 = vor.u32 %v4547_v35, %v3412_v34  ;;  %v4541_v43 = vld [vmem:[#allocation2 + $0x24] sm:$0xf0]  ;;  %v4538_v45 = vld [vmem:[#allocation2 + $0x14] sm:$0xf] }
  0x34   :  { %610 = vmatpush.bf16.msra.mxu0 %v3397_v10  ;;  %v3385_v10 = vor.u32 %v4537_v4, %v3382_v6  ;;  %v115_v54 = vld [vmem:[%s5492_s9] sm:$0xff]  ;;  %v5207_v7 = vld [vmem:[%s5489_s6 + $0x18] sm:$0xff] }
  0x35   :  { %624 = vmatpush.bf16.msra.mxu1 %v3401_v14  ;;  %v3489_v14 = vor.u32 %v4562_v12, %v3486_v13 }
  0x36   :  { %651 = vmatpush.bf16.msra.mxu3 %v3433_v46  ;;  %v3390_v46 = vld [vmem:[#allocation2 + $0x28] sm:$0xf0] }
  0x3a   :  { %652 = vmatpush.bf16.msra.mxu3 %v3409_v59  ;;  %v168_v59 = vperm.slane %v115_v54, 0 }
  0x3e   :  { %653 = vmatpush.bf16.msra.mxu3 %v3385_v10  ;;  %v5214_v10 = vld [vmem:[%s5489_s6] sm:$0xff] }
  0x8c   :  { %v122_v21 = vpop.xlane.xlu0 %121 }
  0x8d   :  { %v132_v22 = vmul.f32 %v5171_v20, %v122_v21  ;;  %v4539_v21 = vld [vmem:[#allocation2 + $0x14] sm:$0xf0] }
  0x8f   :  { %v5174_v23 = vsub.f32 %v119_v0, %v132_v22  ;;  %v3500_v0 = vld [vmem:[#allocation2 + $0xf8] sm:$0xf]  ;;  %v4536_v22 = vld [vmem:[#allocation2 + $0x4] sm:$0xf] }
  0x91   :  { %v136_v24 = vmul.f32 %v5174_v23, %v5174_v23 }
  0x93   :  { %138 = vadd.xlane.f32.xlu1 %v136_v24  ;;  %v3373_v24 = vor.u32 %v4539_v21, %v3372_v19  ;;  %v3462_v19 = vld [vmem:[#allocation2 + $0xb8] sm:$0xf0] }
  0x94   :  { %v124_v25 = vpop.xlane.xlu0 %123 }
  0x95   :  { %v133_v26 = vmul.f32 %v5171_v20, %v124_v25  ;;  %v3374_v25 = vld [vmem:[#allocation2 + $0x18] sm:$0xf0]  ;;  %611 = vmatpush.bf16.msra.mxu0 %v3373_v24  ;;  %v3436_v24 = vld [vmem:[#allocation2 + $0x70] sm:$0xf] }
  0x96   :  { %v3377_v29 = vor.u32 %v4536_v22, %v3374_v25  ;;  %v3465_v22 = vor.u32 %v4556_v17, %v3462_v19  ;;  %v4553_v25 = vld [vmem:[#allocation2 + $0x84] sm:$0xf0]  ;;  %v358_v17 = vperm.slane %v5214_v10, 0 }
  0x97   :  { %v5179_v27 = vsub.f32 %v120_v1, %v133_v26  ;;  %v4570_v1 = vld [vmem:[#allocation2 + $0x10c] sm:$0xf0]  ;;  %v3452_v26 = vld [vmem:[#allocation2 + $0x98] sm:$0xf] }
  0x98   :  { %v3501_v3 = vor.u32 %v4570_v1, %v3500_v0  ;;  %625 = vmatpush.bf16.msra.mxu1 %v3377_v29  ;;  %v3513_v0 = vor.u32 %v4568_v61, %v3510_v62  ;;  %v3438_v29 = vld [vmem:[#allocation2 + $0x88] sm:$0xf0] }
  0x99   :  { %v137_v28 = vmul.f32 %v5179_v27, %v5179_v27  ;;  %660 = vmatpush.bf16.msrb.mxu0 %v3557_v37  ;;  %v4544_v37 = vld [vmem:[#allocation2 + $0x44] sm:$0xf] }
  0x9a   :  { %634 = vmatpush.bf16.msra.mxu2 %v3501_v3  ;;  %v4540_v3 = vld [vmem:[#allocation2 + $0x1c] sm:$0xf0]  ;;  %v3417_v41 = vor.u32 %v4544_v37, %v3414_v38 }
  0x9b   :  { %140 = vadd.xlane.f32.xlu1 %v137_v28  ;;  %v4558_v28 = vld [vmem:[#allocation2 + $0xac] sm:$0xf0]  ;;  %v3381_v5 = vor.u32 %v4540_v3, %v3380_v2 }
  0x9c   :  { %v3453_v30 = vor.u32 %v4558_v28, %v3452_v26  ;;  %674 = vmatpush.bf16.msrb.mxu1 %v3561_v39  ;;  %v4550_v26 = vld [vmem:[#allocation2 + $0x74] sm:$0xf] }
  0x9d   :  { %661 = vmatpush.bf16.msrb.mxu0 %v3533_v50  ;;  %v3441_v33 = vor.u32 %v4550_v26, %v3438_v29  ;;  %v3393_v50 = vor.u32 %v4538_v45, %v3390_v46 }
  0x9e   :  { %635 = vmatpush.bf16.msra.mxu2 %v3477_v15  ;;  %v3460_v15 = vld [vmem:[#allocation2 + $0xa0] sm:$0xf] }
  0x9f   :  { %v3461_v18 = vor.u32 %v4559_v16, %v3460_v15 }
  0xa0   :  { %675 = vmatpush.bf16.msrb.mxu1 %v3537_v51 }
  0xa1   :  { %662 = vmatpush.bf16.msrb.mxu0 %v3509_v60  ;;  %v116_v60 = vld [vmem:[%s5492_s9 + $0x8] sm:$0xff] }
  0xa2   :  { %636 = vmatpush.bf16.msra.mxu2 %v3453_v30  ;;  %v3437_v30 = vor.u32 %v4553_v25, %v3436_v24 }
  0xa4   :  { %676 = vmatpush.bf16.msrb.mxu1 %v3513_v0  ;;  %v171_v0 = vperm.slane %v116_v60, 0 }
  0xa5   :  { %663 = vmatpush.bf16.msrb.mxu0 %v3485_v11 }
  0xa6   :  { %637 = vmatpush.bf16.msra.mxu2 %v3429_v42  ;;  %v3388_v42 = vld [vmem:[#allocation2 + $0x10] sm:$0xf] }
  0xa7   :  { %v3389_v48 = vor.u32 %v4541_v43, %v3388_v42 }
  0xa8   :  { %677 = vmatpush.bf16.msrb.mxu1 %v3489_v14 }
  0xa9   :  { %664 = vmatpush.bf16.msrb.mxu0 %v3461_v18 }
  0xaa   :  { %638 = vmatpush.bf16.msra.mxu2 %v3405_v55 }
  0xac   :  { %678 = vmatpush.bf16.msrb.mxu1 %v3465_v22  ;;  %v5225_v22 = vld [vmem:[%s5489_s6 + $0x28] sm:$0xff] }
  0xad   :  { %665 = vmatpush.bf16.msrb.mxu0 %v3437_v30  ;;  %v363_v26 = vperm.slane %v5225_v22, 0 }
  0xae   :  { %639 = vmatpush.bf16.msra.mxu2 %v3381_v5 }
  0xb0   :  { %679 = vmatpush.bf16.msrb.mxu1 %v3441_v33 }
  0xb1   :  { %666 = vmatpush.bf16.msrb.mxu0 %v3413_v40  ;;  %v5238_v40 = vld [vmem:[%s5489_s6 + $0x8] sm:$0xff] }
  0xb4   :  { %680 = vmatpush.bf16.msrb.mxu1 %v3417_v41  ;;  %v359_v41 = vperm.slane %v5238_v40, 0 }
  0xb5   :  { %667 = vmatpush.bf16.msrb.mxu0 %v3389_v48 }
  0xb8   :  { %681 = vmatpush.bf16.msrb.mxu1 %v3393_v50 }
 0x106   :  { %v139_v63 = vpop.xlane.xlu1 %138 }
 0x107   :  { %v142_v1 = vmul.f32 %v139_v63, %v5171_v20 }
 0x109   :  { %v144_v9 = vadd.f32 1e-12, %v142_v1 }
 0x10b   :  { %4839 = vrsqrt.f32 %v144_v9  ;;  %vm152_vm2 = vweird.f32 %v144_v9 }
 0x10e   :  { %v141_v21 = vpop.xlane.xlu1 %140 }
 0x10f   :  { %v143_v28 = vmul.f32 %v141_v21, %v5171_v20  ;;  %v5220_v21 = vld [vmem:[%s5489_s6 + $0x20] sm:$0xff] }
 0x110   :  { %v362_v25 = vperm.slane %v5220_v21, 0 }
 0x111   :  { %v4840_v31 = vpop.eup %4839  ;;  %v145_v32 = vadd.f32 1e-12, %v143_v28 }
 0x112   :  { %v147_v36 = vmul.f32 %v4840_v31, %v144_v9  ;;  %vm153_vm1 = vweird.f32 %v4840_v31  ;;  %v361_v9 = vperm.slane %v5207_v7, 0 }
 0x113   :  { %4841 = vrsqrt.f32 %v145_v32  ;;  %vm154_vm3 = vmor %vm152_vm2, %vm153_vm1  ;;  %vm162_vm5 = vweird.f32 %v145_v32 }
 0x114   :  { %v148_v39 = vmul.f32 %v4840_v31, %v147_v36 }
 0x116   :  { %v149_v44 = vmul.f32 0.5, %v148_v39 }
 0x118   :  { %v150_v47 = vsub.f32 1.5, %v149_v44 }
 0x119   :  { %v4842_v49 = vpop.eup %4841 }
 0x11a   :  { %v151_v51 = vmul.f32 %v4840_v31, %v150_v47  ;;  %v157_v52 = vmul.f32 %v4842_v49, %v145_v32  ;;  %vm163_vm4 = vweird.f32 %v4842_v49 }
 0x11b   :  { %vm164_vm6 = vmor %vm162_vm5, %vm163_vm4  ;;  %vm2365_vm5 = vcmask 1040384  }
 0x11c   :  { %v158_v53 = vmul.f32 %v4842_v49, %v157_v52  ;;  %v155_v55 = vsel %vm154_vm3, %v4840_v31, %v151_v51  ;;  %v174_v51 = vld [vmem:[%s5484_s1] sm:$0x3] }
 0x11d   :  { %v166_v58 = vmul.f32 %v155_v55, %v5174_v23  ;;  %v690_v52 = vperm.slane %v174_v51, 0 }
 0x11e   :  { %v159_v56 = vmul.f32 0.5, %v158_v53 }
 0x11f   :  { %v169_v63 = vmul.f32 %v168_v59, %v166_v58 }
 0x120   :  { %v160_v57 = vsub.f32 1.5, %v159_v56 }
 0x121   :  { %v5193_v3 = vadd.f32 %v171_v0, %v169_v63 }
 0x122   :  { %v161_v61 = vmul.f32 %v4842_v49, %v160_v57 }
 0x124   :  { %v165_v62 = vsel %vm164_vm6, %v4842_v49, %v161_v61  ;;  %v787_v61 = vperm.slane %v174_v51, 1  ;;  %vm2182_vm6 = vcmask 57344  }
 0x125   :  { %v167_v1 = vmul.f32 %v165_v62, %v5179_v27  ;;  %v5202_v27 = vld [vmem:[%s5489_s6 + $0x10] sm:$0xff] }
 0x126   :  { %v360_v8 = vperm.slane %v5202_v27, 0 }
 0x127   :  { %v170_v2 = vmul.f32 %v168_v59, %v167_v1 }
 0x129   :  { %v5195_v4 = vadd.f32 %v171_v0, %v170_v2 }
 0x12b   :  { %v357_v23 = vpack.c.bf16 %v5195_v4, %v5193_v3 }
 0x12d   :  { %612 = vmatmul.bf16.vlgmr.msra.gmra.mxu0 %v357_v23  ;;  %626 = vmatmul.bf16.vlgmr.msra.gmra.mxu1 %v357_v23 }
 0x12e   :  { %640 = vmatmul.bf16.vlgmr.msra.gmra.mxu2 %v357_v23  ;;  %654 = vmatmul.bf16.vlgmr.msra.gmra.mxu3 %v357_v23 }
 0x13d   :  { %668 = vmatmul.bf16.vlgmr.msrb.gmra.mxu0 %v357_v23  ;;  %682 = vmatmul.bf16.vlgmr.msrb.gmra.mxu1 %v357_v23 }
 0x1aa   :  { %v613_v5 = vpop.f32.mrf.mxu0  ;;  %v627_v6 = vpop.f32.mrf.mxu1 }
 0x1ab   :  { %v614_v24 = vadd.f32 %v613_v5, %v358_v17  ;;  %v628_v43 = vadd.f32 %v627_v6, %v359_v41 }
 0x1ad   :  { %v688_v32 = vpack.c.bf16 %v614_v24, %v614_v24  ;;  %v738_v45 = vpack.c.bf16 %v628_v43, %v628_v43 }
 0x1b1   :  { %v641_v11 = vpop.f32.mrf.mxu2  ;;  %v655_v12 = vpop.f32.mrf.mxu3 }
 0x1b2   :  { %v642_v13 = vadd.f32 %v641_v11, %v360_v8  ;;  %v656_v14 = vadd.f32 %v655_v12, %v361_v9  ;;  %v615_v15 = vpop.f32.mrf.mxu0  ;;  %v629_v16 = vpop.f32.mrf.mxu1 }
 0x1b3   :  { %v616_v47 = vadd.f32 %v615_v15, %v358_v17  ;;  %v630_v49 = vadd.f32 %v629_v16, %v359_v41 }
 0x1b4   :  { %v689_v18 = vpack.c.bf16 %v642_v13, %v642_v13  ;;  %v739_v19 = vpack.c.bf16 %v656_v14, %v656_v14 }
 0x1b5   :  { %v785_v48 = vpack.c.bf16 %v616_v47, %v616_v47  ;;  %v833_v50 = vpack.c.bf16 %v630_v49, %v630_v49 }
 0x1b6   :  { %698 = vmatpush.bf16.xpose.msrb.mxu2 %v689_v18 }
 0x1b9   :  { %v643_v28 = vpop.f32.mrf.mxu2  ;;  %v657_v42 = vpop.f32.mrf.mxu3 }
 0x1ba   :  { %v644_v29 = vadd.f32 %v643_v28, %v360_v8  ;;  %v669_v30 = vpop.f32.mrf.mxu0  ;;  %v683_v31 = vpop.f32.mrf.mxu1  ;;  %v658_v44 = vadd.f32 %v657_v42, %v361_v9 }
 0x1bb   :  { %v670_v33 = vadd.f32 %v669_v30, %v362_v25  ;;  %v684_v34 = vadd.f32 %v683_v31, %v363_v26 }
 0x1bc   :  { %v786_v35 = vpack.c.bf16 %v644_v29, %v644_v29  ;;  %v834_v46 = vpack.c.bf16 %v658_v44, %v658_v44 }
 0x1bd   :  { %v717_v36 = vpack.c.bf16 %v670_v33, %v670_v33  ;;  %v765_v37 = vpack.c.bf16 %v684_v34, %v684_v34  ;;  %699 = vmatmul.bf16.vlgmr.msrb.gmra.mxu2 %v688_v32 }
 0x1be   :  { %747 = vmatpush.bf16.xpose.msra.mxu2 %v739_v19 }
 0x1bf   :  { %v770_v38 = vsel %vm721_vm7, %v765_v37, 0  ;;  %v723_v39 = vsel %vm721_vm7, %v717_v36, 0 }
 0x1c0   :  { %732 = vmatpush.bf16.msrb.mxu3 %v723_v39 }
 0x1c2   :  { %v671_v37 = vpop.f32.mrf.mxu0 }
 0x1c4   :  { %779 = vmatpush.bf16.msra.mxu3 %v770_v38  ;;  %v672_v38 = vadd.f32 %v671_v37, %v362_v25 }
 0x1c6   :  { %795 = vmatpush.bf16.xpose.msrb.mxu2 %v786_v35  ;;  %v813_v41 = vpack.c.bf16 %v672_v38, %v672_v38 }
 0x1c8   :  { %v818_v44 = vsel %vm721_vm7, %v813_v41, 0 }
 0x1cd   :  { %748 = vmatmul.bf16.vlgmr.msra.gmra.mxu2 %v738_v45 }
 0x1ce   :  { %842 = vmatpush.bf16.xpose.msra.mxu2 %v834_v46  ;;  %v685_v46 = vpop.f32.mrf.mxu1 }
 0x1cf   :  { %v686_v47 = vadd.f32 %v685_v46, %v363_v26 }
 0x1d1   :  { %v860_v49 = vpack.c.bf16 %v686_v47, %v686_v47 }
 0x1d3   :  { %v865_v25 = vsel %vm721_vm7, %v860_v49, 0  ;;  %v4628_v49 = vld [vmem:[#allocation7 + $0xe4] sm:$0xf] }
 0x1dd   :  { %796 = vmatmul.bf16.vlgmr.msrb.gmra.mxu2 %v785_v48 }
 0x1ed   :  { %843 = vmatmul.bf16.vlgmr.msra.gmra.mxu2 %v833_v50 }
 0x240   :  { %v700_v53 = vpop.f32.mrf.mxu2 }
 0x241   :  { %v701_v54 = vadd.f32 %v700_v53, %v690_v52 }
 0x243   :  { %v705_v55 = vsel %vm704_vm8, %v701_v54, -inf }
 0x244   :  { %706 = vmax.xlane.f32.xlu2 %v705_v55 }
 0x248   :  { %v702_v56 = vpop.f32.mrf.mxu2 }
 0x250   :  { %v749_v57 = vpop.f32.mrf.mxu2 }
 0x251   :  { %v750_v58 = vadd.f32 %v749_v57, %v690_v52 }
 0x253   :  { %v753_v59 = vsel %vm704_vm8, %v750_v58, -inf }
 0x254   :  { %754 = vmax.xlane.f32.xlu2 %v753_v59  ;;  %v4590_v59 = vld [vmem:[#allocation5 + $0x30] sm:$0xff] }
 0x258   :  { %v751_v60 = vpop.f32.mrf.mxu2 }
 0x259   :  { %v4589_v60 = vld [vmem:[#allocation5 + $0x28] sm:$0xff] }
 0x260   :  { %v797_v62 = vpop.f32.mrf.mxu2 }
 0x261   :  { %v798_v63 = vadd.f32 %v797_v62, %v787_v61  ;;  %v4599_v62 = vld [vmem:[#allocation5 + $0x78] sm:$0xff] }
 0x262   :  { %993 = vmatpush.bf16.msra.mxu1 %v4599_v62  ;;  %v4627_v62 = vld [vmem:[#allocation7 + $0xd4] sm:$0xf0] }
 0x263   :  { %v801_v0 = vsel %vm704_vm8, %v798_v63, -inf }
 0x264   :  { %802 = vmax.xlane.f32.xlu0 %v801_v0  ;;  %v4586_v0 = vld [vmem:[#allocation5 + $0x10] sm:$0xff] }
 0x268   :  { %v799_v1 = vpop.f32.mrf.mxu2 }
 0x269   :  { %v4598_v1 = vld [vmem:[#allocation5 + $0x70] sm:$0xff] }
 0x26a   :  { %994 = vmatpush.bf16.msra.mxu1 %v4598_v1  ;;  %v4625_v1 = vld [vmem:[#allocation7 + $0xcc] sm:$0xf] }
 0x270   :  { %v844_v2 = vpop.f32.mrf.mxu2 }
 0x271   :  { %v845_v23 = vadd.f32 %v844_v2, %v787_v61  ;;  %v4588_v61 = vld [vmem:[#allocation5 + $0x20] sm:$0xff]  ;;  %v4585_v2 = vld [vmem:[#allocation5 + $0x8] sm:$0xff] }
 0x273   :  { %v848_v5 = vsel %vm704_vm8, %v845_v23, -inf }
 0x274   :  { %849 = vmax.xlane.f32.xlu1 %v848_v5  ;;  %v4584_v5 = vld [vmem:[#allocation5] sm:$0xff] }
 0x278   :  { %v846_v6 = vpop.f32.mrf.mxu2 }
 0x279   :  { %v4596_v6 = vld [vmem:[#allocation5 + $0x60] sm:$0xff] }
 0x2b7   :  { %v707_v8 = vpop.xlane.xlu2 %706 }
 0x2b8   :  { %v708_v9 = vsub.f32 %v701_v54, %v707_v8 }
 0x2ba   :  { %v709_v11 = vmul.f32 1.442695, %v708_v9  ;;  %v4595_v9 = vld [vmem:[#allocation5 + $0x58] sm:$0xff] }
 0x2bc   :  { %4843 = vpow2.f32 %v709_v11  ;;  %v4594_v11 = vld [vmem:[#allocation5 + $0x50] sm:$0xff] }
 0x2c2   :  { %v4844_v12 = vpop.eup %4843 }
 0x2c3   :  { %v711_v13 = vsel %vm704_vm8, %v4844_v12, 0.0 }
 0x2c4   :  { %712 = vadd.xlane.f32.xlu2 %v711_v13  ;;  %v4593_v13 = vld [vmem:[#allocation5 + $0x48] sm:$0xff] }
 0x2c7   :  { %v755_v14 = vpop.xlane.xlu2 %754 }
 0x2c8   :  { %v756_v15 = vsub.f32 %v750_v58, %v755_v14  ;;  %v4591_v58 = vld [vmem:[#allocation5 + $0x38] sm:$0xff]  ;;  %v4592_v14 = vld [vmem:[#allocation5 + $0x40] sm:$0xff] }
 0x2c9   :  { %979 = vmatpush.bf16.msra.mxu0 %v4591_v58  ;;  %v4624_v58 = vld [vmem:[#allocation7 + $0xc4] sm:$0xf] }
 0x2ca   :  { %v757_v16 = vmul.f32 1.442695, %v756_v15 }
 0x2cc   :  { %4845 = vpow2.f32 %v757_v16 }
 0x2cd   :  { %980 = vmatpush.bf16.msra.mxu0 %v4590_v59 }
 0x2d1   :  { %981 = vmatpush.bf16.msra.mxu0 %v4589_v60  ;;  %v3730_v60 = vld [vmem:[#allocation7 + $0xd0] sm:$0xf0] }
 0x2d2   :  { %v4846_v17 = vpop.eup %4845 }
 0x2d3   :  { %v759_v18 = vsel %vm704_vm8, %v4846_v17, 0.0 }
 0x2d4   :  { %760 = vadd.xlane.f32.xlu0 %v759_v18 }
 0x2d5   :  { %982 = vmatpush.bf16.msra.mxu0 %v4588_v61  ;;  %v3736_v61 = vld [vmem:[#allocation7 + $0xc8] sm:$0xf] }
 0x2d7   :  { %v803_v19 = vpop.xlane.xlu0 %802 }
 0x2d8   :  { %v804_v24 = vsub.f32 %v798_v63, %v803_v19  ;;  %v4587_v63 = vld [vmem:[#allocation5 + $0x18] sm:$0xff] }
 0x2d9   :  { %983 = vmatpush.bf16.msra.mxu0 %v4587_v63  ;;  %v3733_v63 = vor.u32 %v4624_v58, %v3730_v60  ;;  %v4606_v60 = vld [vmem:[#allocation7 + $0x2c] sm:$0xf0] }
 0x2da   :  { %v805_v28 = vmul.f32 1.442695, %v804_v24 }
 0x2dc   :  { %4847 = vpow2.f32 %v805_v28 }
 0x2dd   :  { %984 = vmatpush.bf16.msra.mxu0 %v4586_v0  ;;  %v3737_v0 = vor.u32 %v4627_v62, %v3736_v61  ;;  %v4604_v61 = vld [vmem:[#allocation7 + $0x24] sm:$0xf] }
 0x2e1   :  { %985 = vmatpush.bf16.msra.mxu0 %v4585_v2  ;;  %v3738_v2 = vld [vmem:[#allocation7 + $0xd8] sm:$0xf0] }
 0x2e2   :  { %v4848_v29 = vpop.eup %4847 }
 0x2e3   :  { %v807_v30 = vsel %vm704_vm8, %v4848_v29, 0.0 }
 0x2e4   :  { %808 = vadd.xlane.f32.xlu1 %v807_v30 }
 0x2e5   :  { %986 = vmatpush.bf16.msra.mxu0 %v4584_v5  ;;  %v3712_v5 = vld [vmem:[#allocation7 + $0xa0] sm:$0xf] }
 0x2e7   :  { %v850_v31 = vpop.xlane.xlu1 %849 }
 0x2e8   :  { %v851_v32 = vsub.f32 %v845_v23, %v850_v31  ;;  %v4597_v23 = vld [vmem:[#allocation5 + $0x68] sm:$0xff]  ;;  %v882_v31 = vperm.slane %v5220_v21, 1 }
 0x2e9   :  { %995 = vmatpush.bf16.msra.mxu1 %v4597_v23  ;;  %v3741_v23 = vor.u32 %v4625_v1, %v3738_v2  ;;  %v4607_v1 = vld [vmem:[#allocation7 + $0x34] sm:$0xf0] }
 0x2ea   :  { %v852_v33 = vmul.f32 1.442695, %v851_v32 }
 0x2ec   :  { %4849 = vpow2.f32 %v852_v33 }
 0x2ed   :  { %996 = vmatpush.bf16.msra.mxu1 %v4596_v6  ;;  %v4622_v6 = vld [vmem:[#allocation7 + $0xac] sm:$0xf0] }
 0x2f1   :  { %997 = vmatpush.bf16.msra.mxu1 %v4595_v9  ;;  %v3713_v9 = vor.u32 %v4622_v6, %v3712_v5  ;;  %v4605_v6 = vld [vmem:[#allocation7 + $0x2c] sm:$0xf] }
 0x2f2   :  { %v4850_v34 = vpop.eup %4849 }
 0x2f3   :  { %v854_v35 = vsel %vm704_vm8, %v4850_v34, 0.0 }
 0x2f4   :  { %855 = vadd.xlane.f32.xlu2 %v854_v35 }
 0x2f5   :  { %998 = vmatpush.bf16.msra.mxu1 %v4594_v11  ;;  %v3714_v11 = vld [vmem:[#allocation7 + $0xb0] sm:$0xf0] }
 0x2f9   :  { %999 = vmatpush.bf16.msra.mxu1 %v4593_v13  ;;  %v4623_v13 = vld [vmem:[#allocation7 + $0xb4] sm:$0xf0] }
 0x2fd   :  { %1000 = vmatpush.bf16.msra.mxu1 %v4592_v14 }
 0x337   :  { %v713_v36 = vpop.xlane.xlu2 %712 }
 0x338   :  { %4851 = vrcp.f32 %v713_v36 }
 0x33e   :  { %v4852_v39 = vpop.eup %4851 }
 0x33f   :  { %v715_v42 = vmul.f32 %v4852_v39, %v4844_v12 }
 0x341   :  { %v716_v43 = vpack.c.bf16 %v715_v42, %v715_v42 }
 0x343   :  { %3562 = vmatmul.msk.bf16.vlgmr.msrb.gmra.mxu3 %vm704_vm8, %v716_v43 }
 0x344   :  { %827 = vmatpush.bf16.msrb.mxu3 %v818_v44 }
 0x347   :  { %v761_v45 = vpop.xlane.xlu0 %760 }
 0x348   :  { %4853 = vrcp.f32 %v761_v45 }
 0x34e   :  { %v4854_v48 = vpop.eup %4853 }
 0x34f   :  { %v763_v50 = vmul.f32 %v4854_v48, %v4846_v17  ;;  %v4630_v48 = vld [vmem:[#allocation7 + $0xec] sm:$0xf0] }
 0x351   :  { %v764_v51 = vpack.c.bf16 %v763_v50, %v763_v50 }
 0x353   :  { %3563 = vmatmul.msk.bf16.vlgmr.msra.gmra.mxu3 %vm704_vm8, %v764_v51  ;;  %v3746_v51 = vld [vmem:[#allocation7 + $0xf0] sm:$0xf0] }
 0x354   :  { %874 = vmatpush.bf16.msra.mxu3 %v865_v25  ;;  %v3752_v25 = vld [vmem:[#allocation7 + $0xe8] sm:$0xf] }
 0x357   :  { %v809_v52 = vpop.xlane.xlu1 %808 }
 0x358   :  { %4855 = vrcp.f32 %v809_v52  ;;  %v4631_v52 = vld [vmem:[#allocation7 + $0xf4] sm:$0xf0] }
 0x35e   :  { %v4856_v53 = vpop.eup %4855 }
 0x35f   :  { %v811_v54 = vmul.f32 %v4856_v53, %v4848_v29  ;;  %v3749_v53 = vor.u32 %v4628_v49, %v3746_v51  ;;  %v4610_v51 = vld [vmem:[#allocation7 + $0x4c] sm:$0xf0] }
 0x361   :  { %v812_v55 = vpack.c.bf16 %v811_v54, %v811_v54  ;;  %v3753_v54 = vor.u32 %v4631_v52, %v3752_v25  ;;  %v4608_v25 = vld [vmem:[#allocation7 + $0x44] sm:$0xf] }
 0x363   :  { %3564 = vmatmul.msk.bf16.vlgmr.msrb.gmra.mxu3 %vm704_vm8, %v812_v55  ;;  %v4629_v55 = vld [vmem:[#allocation7 + $0xec] sm:$0xf]  ;;  %1248 = vmatpush.bf16.msrb.mxu0 %v3753_v54  ;;  %v3672_v54 = vld [vmem:[#allocation7 + $0x48] sm:$0xf] }
 0x364   :  { %1234 = vmatpush.bf16.msrb.mxu3 %v3749_v53  ;;  %v3666_v53 = vld [vmem:[#allocation7 + $0x50] sm:$0xf0] }
 0x367   :  { %v856_v56 = vpop.xlane.xlu2 %855  ;;  %1249 = vmatpush.bf16.msrb.mxu0 %v3737_v0  ;;  %v3656_v0 = vld [vmem:[#allocation7 + $0x28] sm:$0xf] }
 0x368   :  { %4857 = vrcp.f32 %v856_v56  ;;  %v3754_v56 = vld [vmem:[#allocation7 + $0xf8] sm:$0xf0]  ;;  %1235 = vmatpush.bf16.msrb.mxu3 %v3733_v63  ;;  %v3650_v63 = vld [vmem:[#allocation7 + $0x30] sm:$0xf0]  ;;  %v3657_v5 = vor.u32 %v4607_v1, %v3656_v0  ;;  %v4660_v0 = vld [vmem:[#allocation8 + $0xe0] sm:$0xff] }
 0x369   :  { %v4637_v1 = vld [vmem:[#allocation8 + $0x28] sm:$0xff] }
 0x36e   :  { %v4858_v22 = vpop.eup %4857 }
 0x36f   :  { %v858_v26 = vmul.f32 %v4858_v22, %v4850_v34  ;;  %v3757_v22 = vor.u32 %v4629_v55, %v3754_v56  ;;  %v4611_v55 = vld [vmem:[#allocation7 + $0x54] sm:$0xf0]  ;;  %v3669_v56 = vor.u32 %v4608_v25, %v3666_v53 }
 0x371   :  { %v859_v57 = vpack.c.bf16 %v858_v26, %v858_v26  ;;  %v3728_v26 = vld [vmem:[#allocation7 + $0xc0] sm:$0xf]  ;;  %1262 = vmatpush.bf16.msrb.mxu1 %v3757_v22  ;;  %v3673_v22 = vor.u32 %v4611_v55, %v3672_v54 }
 0x373   :  { %3565 = vmatmul.msk.bf16.vlgmr.msra.gmra.mxu3 %vm704_vm8, %v859_v57  ;;  %v4626_v57 = vld [vmem:[#allocation7 + $0xcc] sm:$0xf0] }
 0x374   :  { %v3729_v59 = vor.u32 %v4626_v57, %v3728_v26  ;;  %v4609_v26 = vld [vmem:[#allocation7 + $0x4c] sm:$0xf]  ;;  %v3674_v57 = vld [vmem:[#allocation7 + $0x58] sm:$0xf0] }
 0x375   :  { %1263 = vmatpush.bf16.msrb.mxu1 %v3741_v23  ;;  %v3677_v58 = vor.u32 %v4609_v26, %v3674_v57  ;;  %v3653_v23 = vor.u32 %v4604_v61, %v3650_v63  ;;  %v4654_v26 = vld [vmem:[#allocation8 + $0xb0] sm:$0xff]  ;;  %v4652_v63 = vld [vmem:[#allocation8 + $0xa0] sm:$0xff] }
 0x376   :  { %v4662_v57 = vld [vmem:[#allocation8 + $0xf0] sm:$0xff] }
 0x377   :  { %v4638_v61 = vld [vmem:[#allocation8 + $0x30] sm:$0xff] }
 0x3c6   :  { %v734_v8 = vpop.f32.mrf.mxu3 }
 0x3ce   :  { %v736_v12 = vpop.f32.mrf.mxu3 }
 0x3cf   :  { %v3720_v12 = vld [vmem:[#allocation7 + $0xa8] sm:$0xf] }
 0x3d6   :  { %v781_v15 = vpop.f32.mrf.mxu3 }
 0x3de   :  { %v783_v16 = vpop.f32.mrf.mxu3 }
 0x3df   :  { %v4621_v16 = vld [vmem:[#allocation7 + $0xac] sm:$0xf] }
 0x3e6   :  { %v829_v17 = vpop.f32.mrf.mxu3 }
 0x3e7   :  { %v880_v18 = vpack.c.bf16 %v829_v17, %v734_v8  ;;  %v4620_v8 = vld [vmem:[#allocation7 + $0xa4] sm:$0xf]  ;;  %v3722_v17 = vld [vmem:[#allocation7 + $0xb8] sm:$0xf0] }
 0x3e8   :  { %v3717_v14 = vor.u32 %v4620_v8, %v3714_v11  ;;  %v3658_v8 = vld [vmem:[#allocation7 + $0x38] sm:$0xf0] }
 0x3e9   :  { %987 = vmatmul.bf16.vlgmr.msra.gmra.mxu0 %v880_v18  ;;  %v3725_v18 = vor.u32 %v4621_v16, %v3722_v17 }
 0x3ea   :  { %1236 = vmatpush.bf16.msrb.mxu3 %v3717_v14  ;;  %v4600_v14 = vld [vmem:[#allocation7 + $0x4] sm:$0xf] }
 0x3eb   :  { %1264 = vmatpush.bf16.msrb.mxu1 %v3725_v18  ;;  %v3640_v18 = vld [vmem:[#allocation7 + $0x8] sm:$0xf] }
 0x3ee   :  { %v831_v19 = vpop.f32.mrf.mxu3 }
 0x3ef   :  { %v3696_v19 = vld [vmem:[#allocation7 + $0x80] sm:$0xf] }
 0x3f6   :  { %v876_v24 = vpop.f32.mrf.mxu3 }
 0x3f7   :  { %v881_v28 = vpack.c.bf16 %v876_v24, %v781_v15  ;;  %v3721_v15 = vor.u32 %v4623_v13, %v3720_v12  ;;  %v4618_v24 = vld [vmem:[#allocation7 + $0x8c] sm:$0xf0]  ;;  %v3661_v12 = vor.u32 %v4605_v6, %v3658_v8  ;;  %v4636_v6 = vld [vmem:[#allocation8 + $0x20] sm:$0xff] }
 0x3f8   :  { %v4602_v13 = vld [vmem:[#allocation7 + $0xc] sm:$0xf0]  ;;  %v4644_v8 = vld [vmem:[#allocation8 + $0x60] sm:$0xff] }
 0x3f9   :  { %1001 = vmatmul.bf16.vlgmr.msra.gmra.mxu1 %v881_v28  ;;  %1250 = vmatpush.bf16.msrb.mxu0 %v3721_v15  ;;  %v4616_v28 = vld [vmem:[#allocation7 + $0x84] sm:$0xf]  ;;  %v3634_v15 = vld [vmem:[#allocation7 + $0x10] sm:$0xf0] }
 0x3fa   :  { %v3637_v17 = vor.u32 %v4600_v14, %v3634_v15  ;;  %v4649_v14 = vld [vmem:[#allocation8 + $0x88] sm:$0xff] }
 0x3fb   :  { %v4657_v15 = vld [vmem:[#allocation8 + $0xc8] sm:$0xff] }
 0x3fe   :  { %v878_v29 = vpop.f32.mrf.mxu3 }
 0x3ff   :  { %v3697_v29 = vor.u32 %v4618_v24, %v3696_v19  ;;  %v4603_v19 = vld [vmem:[#allocation7 + $0x14] sm:$0xf0]  ;;  %v4601_v24 = vld [vmem:[#allocation7 + $0xc] sm:$0xf] }
 0x466   :  { %v988_v30 = vpop.f32.mrf.mxu0 }
 0x467   :  { %v989_v32 = vadd.f32 %v988_v30, %v882_v31  ;;  %v3698_v30 = vld [vmem:[#allocation7 + $0x90] sm:$0xf0] }
 0x46e   :  { %v990_v36 = vpop.f32.mrf.mxu0 }
 0x46f   :  { %v991_v37 = vadd.f32 %v990_v36, %v882_v31  ;;  %v3704_v31 = vld [vmem:[#allocation7 + $0x88] sm:$0xf]  ;;  %v3706_v36 = vld [vmem:[#allocation7 + $0x98] sm:$0xf0] }
 0x476   :  { %v1002_v33 = vpop.f32.mrf.mxu1 }
 0x477   :  { %v1003_v34 = vadd.f32 %v1002_v33, %v989_v32  ;;  %v4619_v32 = vld [vmem:[#allocation7 + $0x94] sm:$0xf0]  ;;  %v3701_v33 = vor.u32 %v4616_v28, %v3698_v30  ;;  %v3642_v30 = vld [vmem:[#allocation7 + $0x18] sm:$0xf0] }
 0x479   :  { %v1007_v35 = vadd.f32 %v1003_v34, %v5193_v3  ;;  %v3705_v34 = vor.u32 %v4619_v32, %v3704_v31  ;;  %1237 = vmatpush.bf16.msrb.mxu3 %v3701_v33  ;;  %v3645_v31 = vor.u32 %v4601_v24, %v3642_v30  ;;  %v1058_v24 = vperm.slane %v5202_v27, 1  ;;  %v4641_v30 = vld [vmem:[#allocation8 + $0x48] sm:$0xff] }
 0x47b   :  { %1009 = vadd.xlane.f32.xlu0 %v1007_v35  ;;  %1251 = vmatpush.bf16.msrb.mxu0 %v3705_v34 }
 0x47e   :  { %v1004_v38 = vpop.f32.mrf.mxu1 }
 0x47f   :  { %v1005_v39 = vadd.f32 %v1004_v38, %v991_v37  ;;  %v3680_v38 = vld [vmem:[#allocation7 + $0x60] sm:$0xf] }
 0x481   :  { %v1008_v41 = vadd.f32 %v1005_v39, %v5195_v4  ;;  %v3744_v4 = vld [vmem:[#allocation7 + $0xe0] sm:$0xf]  ;;  %v4614_v39 = vld [vmem:[#allocation7 + $0x6c] sm:$0xf0] }
 0x482   :  { %v3745_v50 = vor.u32 %v4630_v48, %v3744_v4  ;;  %v4613_v4 = vld [vmem:[#allocation7 + $0x6c] sm:$0xf]  ;;  %v3690_v48 = vld [vmem:[#allocation7 + $0x78] sm:$0xf0] }
 0x483   :  { %1011 = vadd.xlane.f32.xlu1 %v1008_v41  ;;  %v3693_v49 = vor.u32 %v4613_v4, %v3690_v48  ;;  %v1049_v4 = vperm.slane %v5214_v10, 2 }
 0x484   :  { %1220 = vmatpush.bf16.msrb.mxu2 %v3745_v50  ;;  %v3664_v50 = vld [vmem:[#allocation7 + $0x40] sm:$0xf] }
 0x485   :  { %v3665_v52 = vor.u32 %v4610_v51, %v3664_v50  ;;  %v1052_v51 = vperm.slane %v5238_v40, 2 }
 0x488   :  { %1221 = vmatpush.bf16.msrb.mxu2 %v3729_v59  ;;  %v3648_v59 = vld [vmem:[#allocation7 + $0x20] sm:$0xf] }
 0x489   :  { %v3649_v62 = vor.u32 %v4606_v60, %v3648_v59  ;;  %v4653_v59 = vld [vmem:[#allocation8 + $0xa8] sm:$0xff] }
 0x48a   :  { %v4661_v60 = vld [vmem:[#allocation8 + $0xe8] sm:$0xff] }
 0x48c   :  { %1222 = vmatpush.bf16.msrb.mxu2 %v3713_v9  ;;  %v3632_v9 = vld [vmem:[#allocation7] sm:$0xf] }
 0x48d   :  { %v3633_v16 = vor.u32 %v4602_v13, %v3632_v9  ;;  %v4650_v9 = vld [vmem:[#allocation8 + $0x90] sm:$0xff]  ;;  %v4643_v13 = vld [vmem:[#allocation8 + $0x58] sm:$0xff] }
 0x490   :  { %1223 = vmatpush.bf16.msrb.mxu2 %v3697_v29  ;;  %v3641_v29 = vor.u32 %v4603_v19, %v3640_v18  ;;  %v4648_v18 = vld [vmem:[#allocation8 + $0x80] sm:$0xff] }
 0x491   :  { %v4656_v19 = vld [vmem:[#allocation8 + $0xc0] sm:$0xff] }
 0x4ee   :  { %v1010_v42 = vpop.xlane.xlu0 %1009 }
 0x4ef   :  { %v1013_v43 = vmul.f32 %v1010_v42, %v5171_v20  ;;  %v3681_v42 = vor.u32 %v4614_v39, %v3680_v38 }
 0x4f1   :  { %v5266_v44 = vsub.f32 %v1007_v35, %v1013_v43  ;;  %v4617_v35 = vld [vmem:[#allocation7 + $0x8c] sm:$0xf]  ;;  %v3682_v43 = vld [vmem:[#allocation7 + $0x70] sm:$0xf0]  ;;  %1224 = vmatpush.bf16.msrb.mxu2 %v3681_v42 }
 0x4f2   :  { %v3709_v37 = vor.u32 %v4617_v35, %v3706_v36 }
 0x4f3   :  { %v1017_v21 = vmul.f32 %v5266_v44, %v5266_v44 }
 0x4f4   :  { %1265 = vmatpush.bf16.msrb.mxu1 %v3709_v37 }
 0x4f5   :  { %1019 = vadd.xlane.f32.xlu2 %v1017_v21  ;;  %v3688_v21 = vld [vmem:[#allocation7 + $0x68] sm:$0xf]  ;;  %1225 = vmatpush.bf16.msrb.mxu2 %v3665_v52 }
 0x4f6   :  { %v1012_v45 = vpop.xlane.xlu1 %1011 }
 0x4f7   :  { %v1014_v3 = vmul.f32 %v1012_v45, %v5171_v20  ;;  %v4615_v45 = vld [vmem:[#allocation7 + $0x74] sm:$0xf0] }
 0x4f8   :  { %1266 = vmatpush.bf16.msrb.mxu1 %v3693_v49 }
 0x4f9   :  { %v5271_v46 = vsub.f32 %v1008_v41, %v1014_v3  ;;  %v4612_v41 = vld [vmem:[#allocation7 + $0x64] sm:$0xf]  ;;  %1226 = vmatpush.bf16.msrb.mxu2 %v3649_v62  ;;  %v4646_v62 = vld [vmem:[#allocation8 + $0x70] sm:$0xff] }
 0x4fa   :  { %v3685_v3 = vor.u32 %v4612_v41, %v3682_v43 }
 0x4fb   :  { %v1018_v47 = vmul.f32 %v5271_v46, %v5271_v46 }
 0x4fc   :  { %1238 = vmatpush.bf16.msrb.mxu3 %v3685_v3  ;;  %1267 = vmatpush.bf16.msrb.mxu1 %v3677_v58  ;;  %v4647_v58 = vld [vmem:[#allocation8 + $0x78] sm:$0xff] }
 0x4fd   :  { %1021 = vadd.xlane.f32.xlu0 %v1018_v47  ;;  %v3689_v47 = vor.u32 %v4615_v45, %v3688_v21  ;;  %1227 = vmatpush.bf16.msrb.mxu2 %v3633_v16  ;;  %v4634_v16 = vld [vmem:[#allocation8 + $0x10] sm:$0xff] }
 0x4ff   :  { %1252 = vmatpush.bf16.msrb.mxu0 %v3689_v47 }
 0x500   :  { %1239 = vmatpush.bf16.msrb.mxu3 %v3669_v56  ;;  %1268 = vmatpush.bf16.msrb.mxu1 %v3661_v12  ;;  %v4635_v12 = vld [vmem:[#allocation8 + $0x18] sm:$0xff] }
 0x503   :  { %1253 = vmatpush.bf16.msrb.mxu0 %v3673_v22  ;;  %v4663_v22 = vld [vmem:[#allocation8 + $0xf8] sm:$0xff] }
 0x504   :  { %1240 = vmatpush.bf16.msrb.mxu3 %v3653_v23  ;;  %1269 = vmatpush.bf16.msrb.mxu1 %v3645_v31  ;;  %v4651_v23 = vld [vmem:[#allocation8 + $0x98] sm:$0xff] }
 0x507   :  { %1254 = vmatpush.bf16.msrb.mxu0 %v3657_v5  ;;  %v4659_v5 = vld [vmem:[#allocation8 + $0xd8] sm:$0xff] }
 0x508   :  { %1241 = vmatpush.bf16.msrb.mxu3 %v3637_v17  ;;  %1587 = vmatpush.bf16.msra.mxu1 %v4663_v22  ;;  %v4642_v17 = vld [vmem:[#allocation8 + $0x50] sm:$0xff] }
 0x50b   :  { %1255 = vmatpush.bf16.msrb.mxu0 %v3641_v29  ;;  %v4633_v29 = vld [vmem:[#allocation8 + $0x8] sm:$0xff] }
 0x50c   :  { %1588 = vmatpush.bf16.msra.mxu1 %v4662_v57  ;;  %1559 = vmatpush.bf16.msra.mxu3 %v4647_v58 }
 0x510   :  { %1589 = vmatpush.bf16.msra.mxu1 %v4661_v60  ;;  %1560 = vmatpush.bf16.msra.mxu3 %v4646_v62 }
 0x514   :  { %1590 = vmatpush.bf16.msra.mxu1 %v4660_v0 }
 0x518   :  { %1591 = vmatpush.bf16.msra.mxu1 %v4659_v5 }
 0x568   :  { %v1020_v2 = vpop.xlane.xlu2 %1019 }
 0x569   :  { %v1023_v11 = vmul.f32 %v1020_v2, %v5171_v20  ;;  %v4645_v2 = vld [vmem:[#allocation8 + $0x68] sm:$0xff] }
 0x56a   :  { %1561 = vmatpush.bf16.msra.mxu3 %v4645_v2 }
 0x56b   :  { %v1025_v28 = vadd.f32 1e-12, %v1023_v11  ;;  %v4658_v11 = vld [vmem:[#allocation8 + $0xd0] sm:$0xff] }
 0x56c   :  { %1592 = vmatpush.bf16.msra.mxu1 %v4658_v11 }
 0x56d   :  { %4859 = vrsqrt.f32 %v1025_v28  ;;  %vm1033_vm10 = vweird.f32 %v1025_v28 }
 0x56e   :  { %1562 = vmatpush.bf16.msra.mxu3 %v4644_v8 }
 0x570   :  { %v1022_v32 = vpop.xlane.xlu0 %1021  ;;  %1593 = vmatpush.bf16.msra.mxu1 %v4657_v15 }
 0x571   :  { %v1024_v33 = vmul.f32 %v1022_v32, %v5171_v20 }
 0x572   :  { %1563 = vmatpush.bf16.msra.mxu3 %v4643_v13 }
 0x573   :  { %v4860_v34 = vpop.eup %4859  ;;  %v1026_v35 = vadd.f32 1e-12, %v1024_v33 }
 0x574   :  { %v1028_v36 = vmul.f32 %v4860_v34, %v1025_v28  ;;  %vm1034_vm9 = vweird.f32 %v4860_v34  ;;  %v1059_v28 = vperm.slane %v5207_v7, 1  ;;  %1594 = vmatpush.bf16.msra.mxu1 %v4656_v19 }
 0x575   :  { %4861 = vrsqrt.f32 %v1026_v35  ;;  %vm1035_vm11 = vmor %vm1033_vm10, %vm1034_vm9  ;;  %vm1043_vm13 = vweird.f32 %v1026_v35 }
 0x576   :  { %v1029_v37 = vmul.f32 %v4860_v34, %v1028_v36  ;;  %1564 = vmatpush.bf16.msra.mxu3 %v4642_v17  ;;  %v1057_v36 = vperm.slane %v5238_v40, 1 }
 0x578   :  { %v1030_v38 = vmul.f32 0.5, %v1029_v37  ;;  %v4632_v37 = vld [vmem:[#allocation8] sm:$0xff] }
 0x57a   :  { %v1031_v39 = vsub.f32 1.5, %v1030_v38  ;;  %1565 = vmatpush.bf16.msra.mxu3 %v4641_v30  ;;  %v4640_v38 = vld [vmem:[#allocation8 + $0x40] sm:$0xff] }
 0x57b   :  { %v4862_v41 = vpop.eup %4861 }
 0x57c   :  { %v1032_v42 = vmul.f32 %v4860_v34, %v1031_v39  ;;  %v1038_v43 = vmul.f32 %v4862_v41, %v1026_v35  ;;  %vm1044_vm12 = vweird.f32 %v4862_v41  ;;  %v1056_v35 = vperm.slane %v5214_v10, 1 }
 0x57d   :  { %vm1045_vm14 = vmor %vm1043_vm13, %vm1044_vm12 }
 0x57e   :  { %v1039_v21 = vmul.f32 %v4862_v41, %v1038_v43  ;;  %v1036_v45 = vsel %vm1035_vm11, %v4860_v34, %v1032_v42  ;;  %1566 = vmatpush.bf16.msra.mxu3 %v4640_v38 }
 0x57f   :  { %v1047_v48 = vmul.f32 %v1036_v45, %v5266_v44  ;;  %v4655_v44 = vld [vmem:[#allocation8 + $0xb8] sm:$0xff] }
 0x580   :  { %v1040_v3 = vmul.f32 0.5, %v1039_v21  ;;  %1573 = vmatpush.bf16.msra.mxu0 %v4655_v44 }
 0x581   :  { %v1050_v52 = vmul.f32 %v1049_v4, %v1047_v48 }
 0x582   :  { %v1041_v47 = vsub.f32 1.5, %v1040_v3 }
 0x583   :  { %v5281_v54 = vadd.f32 %v1052_v51, %v1050_v52 }
 0x584   :  { %v1042_v49 = vmul.f32 %v4862_v41, %v1041_v47  ;;  %1574 = vmatpush.bf16.msra.mxu0 %v4654_v26 }
 0x586   :  { %v1046_v50 = vsel %vm1045_vm14, %v4862_v41, %v1042_v49 }
 0x587   :  { %v1048_v25 = vmul.f32 %v1046_v50, %v5271_v46  ;;  %v4639_v46 = vld [vmem:[#allocation8 + $0x38] sm:$0xff] }
 0x588   :  { %1545 = vmatpush.bf16.msra.mxu2 %v4639_v46  ;;  %1575 = vmatpush.bf16.msra.mxu0 %v4653_v59 }
 0x589   :  { %v1051_v53 = vmul.f32 %v1049_v4, %v1048_v25 }
 0x58b   :  { %v5283_v55 = vadd.f32 %v1052_v51, %v1051_v53 }
 0x58c   :  { %1546 = vmatpush.bf16.msra.mxu2 %v4638_v61  ;;  %1576 = vmatpush.bf16.msra.mxu0 %v4652_v63 }
 0x58d   :  { %v1055_v56 = vpack.c.bf16 %v5283_v55, %v5281_v54 }
 0x58f   :  { %1228 = vmatmul.bf16.vlgmr.msrb.gmra.mxu2 %v1055_v56  ;;  %1242 = vmatmul.bf16.vlgmr.msrb.gmra.mxu3 %v1055_v56 }
 0x590   :  { %1256 = vmatmul.bf16.vlgmr.msrb.gmra.mxu0 %v1055_v56  ;;  %1270 = vmatmul.bf16.vlgmr.msrb.gmra.mxu1 %v1055_v56 }
 0x591   :  { %1547 = vmatpush.bf16.msra.mxu2 %v4637_v1  ;;  %1577 = vmatpush.bf16.msra.mxu0 %v4651_v23 }
 0x595   :  { %1548 = vmatpush.bf16.msra.mxu2 %v4636_v6  ;;  %1578 = vmatpush.bf16.msra.mxu0 %v4650_v9 }
 0x599   :  { %1549 = vmatpush.bf16.msra.mxu2 %v4635_v12  ;;  %1579 = vmatpush.bf16.msra.mxu0 %v4649_v14 }
 0x59d   :  { %1550 = vmatpush.bf16.msra.mxu2 %v4634_v16  ;;  %1580 = vmatpush.bf16.msra.mxu0 %v4648_v18 }
 0x5a1   :  { %1551 = vmatpush.bf16.msra.mxu2 %v4633_v29 }
 0x5a5   :  { %1552 = vmatpush.bf16.msra.mxu2 %v4632_v37 }
 0x60d   :  { %v1257_v31 = vpop.f32.mrf.mxu0  ;;  %v1271_v32 = vpop.f32.mrf.mxu1 }
 0x60e   :  { %v5289_v33 = vadd.f32 %v1257_v31, %v1058_v24  ;;  %v5291_v34 = vadd.f32 %v1271_v32, %v1059_v28 }
 0x610   :  { %v1286_v27 = vmul.f32 0.044715, %v5289_v33  ;;  %v1287_v7 = vmul.f32 0.044715, %v5291_v34  ;;  %v1278_v37 = vmul.f32 0.5, %v5289_v33 }
 0x612   :  { %v1294_v39 = vmul.f32 %v1286_v27, %v5289_v33  ;;  %v1295_v41 = vmul.f32 %v1287_v7, %v5291_v34  ;;  %v1229_v42 = vpop.f32.mrf.mxu2  ;;  %v1243_v43 = vpop.f32.mrf.mxu3 }
 0x613   :  { %v5299_v21 = vadd.f32 %v1229_v42, %v1056_v35  ;;  %v5301_v45 = vadd.f32 %v1243_v43, %v1057_v36  ;;  %v1279_v42 = vmul.f32 0.5, %v5291_v34 }
 0x614   :  { %v1302_v10 = vmul.f32 %v1294_v39, %v5289_v33  ;;  %v1303_v40 = vmul.f32 %v1295_v41, %v5291_v34 }
 0x615   :  { %v1284_v3 = vmul.f32 0.044715, %v5299_v21  ;;  %v1285_v47 = vmul.f32 0.044715, %v5301_v45  ;;  %v1259_v4 = vpop.f32.mrf.mxu0  ;;  %v1273_v48 = vpop.f32.mrf.mxu1 }
 0x616   :  { %v1310_v49 = vadd.f32 %v1302_v10, %v5289_v33  ;;  %v1260_v50 = vadd.f32 %v1259_v4, %v1058_v24  ;;  %v1274_v51 = vadd.f32 %v1273_v48, %v1059_v28  ;;  %v1311_v25 = vadd.f32 %v1303_v40, %v5291_v34 }
 0x617   :  { %v1292_v52 = vmul.f32 %v1284_v3, %v5299_v21  ;;  %v1293_v53 = vmul.f32 %v1285_v47, %v5301_v45 }
 0x618   :  { %v1290_v56 = vmul.f32 0.044715, %v1260_v50  ;;  %v1291_v26 = vmul.f32 0.044715, %v1274_v51  ;;  %v1318_v57 = vmul.f32 0.7978846, %v1310_v49 }
 0x619   :  { %v1300_v44 = vmul.f32 %v1292_v52, %v5299_v21  ;;  %v1301_v22 = vmul.f32 %v1293_v53, %v5301_v45  ;;  %v1319_v60 = vmul.f32 0.7978846, %v1311_v25  ;;  %v1282_v38 = vmul.f32 0.5, %v1260_v50 }
 0x61a   :  { %v1298_v46 = vmul.f32 %v1290_v56, %v1260_v50  ;;  %v1231_v58 = vpop.f32.mrf.mxu2  ;;  %v1245_v59 = vpop.f32.mrf.mxu3  ;;  %v1299_v62 = vmul.f32 %v1291_v26, %v1274_v51  ;;  %4863 = vtanh.f32 %v1318_v57  ;;  %v1283_v43 = vmul.f32 0.5, %v1274_v51 }
 0x61b   :  { %v1308_v61 = vadd.f32 %v1300_v44, %v5299_v21  ;;  %v1232_v63 = vadd.f32 %v1231_v58, %v1056_v35  ;;  %v1309_v0 = vadd.f32 %v1301_v22, %v5301_v45  ;;  %v1246_v2 = vadd.f32 %v1245_v59, %v1057_v36 }
 0x61c   :  { %v1306_v1 = vmul.f32 %v1298_v46, %v1260_v50  ;;  %v1307_v5 = vmul.f32 %v1299_v62, %v1274_v51  ;;  %4865 = vtanh.f32 %v1319_v60  ;;  %v1276_v44 = vmul.f32 0.5, %v5299_v21  ;;  %v4923_v21 = vld [vmem:[%s5489_s6 + $0x28] sm:$0xff] }
 0x61d   :  { %v1316_v23 = vmul.f32 0.7978846, %v1308_v61  ;;  %v1288_v6 = vmul.f32 0.044715, %v1232_v63  ;;  %v1289_v9 = vmul.f32 0.044715, %v1246_v2 }
 0x61e   :  { %v1314_v8 = vadd.f32 %v1306_v1, %v1260_v50  ;;  %v1315_v11 = vadd.f32 %v1307_v5, %v1274_v51  ;;  %v1317_v13 = vmul.f32 0.7978846, %v1309_v0  ;;  %v1280_v33 = vmul.f32 0.5, %v1232_v63 }
 0x61f   :  { %v1296_v12 = vmul.f32 %v1288_v6, %v1232_v63  ;;  %v1297_v15 = vmul.f32 %v1289_v9, %v1246_v2  ;;  %4867 = vtanh.f32 %v1316_v23  ;;  %v1277_v22 = vmul.f32 0.5, %v5301_v45 }
 0x620   :  { %v1322_v14 = vmul.f32 0.7978846, %v1314_v8  ;;  %v1323_v16 = vmul.f32 0.7978846, %v1315_v11  ;;  %v4864_v24 = vpop.eup %4863  ;;  %v1281_v34 = vmul.f32 0.5, %v1246_v2  ;;  %v1352_v61 = vperm.slane %v4923_v21, 1 }
 0x621   :  { %v1304_v17 = vmul.f32 %v1296_v12, %v1232_v63  ;;  %v1305_v18 = vmul.f32 %v1297_v15, %v1246_v2  ;;  %v1334_v35 = vadd.f32 1.0, %v4864_v24  ;;  %v4706_v24 = vld [vmem:[#allocation2 + $0x2d4] sm:$0xf]  ;;  %v4046_v21 = vld [vmem:[#allocation2 + $0x2a8] sm:$0xf] }
 0x622   :  { %4869 = vtanh.f32 %v1322_v14  ;;  %v4866_v29 = vpop.eup %4865 }
 0x623   :  { %v1312_v19 = vadd.f32 %v1304_v17, %v1232_v63  ;;  %4871 = vtanh.f32 %v1323_v16  ;;  %v1313_v28 = vadd.f32 %v1305_v18, %v1246_v2  ;;  %v1335_v27 = vadd.f32 1.0, %v4866_v29  ;;  %v4062_v18 = vld [vmem:[#allocation2 + $0x2d0] sm:$0xf]  ;;  %v4064_v29 = vld [vmem:[#allocation2 + $0x2e8] sm:$0xf0] }
 0x624   :  { %4873 = vtanh.f32 %v1317_v13  ;;  %v1342_v40 = vmul.f32 %v1334_v35, %v1278_v37  ;;  %v4700_v35 = vld [vmem:[#allocation2 + $0x2a4] sm:$0xf] }
 0x625   :  { %v1320_v30 = vmul.f32 0.7978846, %v1312_v19  ;;  %v1321_v31 = vmul.f32 0.7978846, %v1313_v28  ;;  %v4868_v32 = vpop.eup %4867  ;;  %v1343_v47 = vmul.f32 %v1335_v27, %v1279_v42  ;;  %v4709_v19 = vld [vmem:[#allocation2 + $0x2e4] sm:$0xf0] }
 0x626   :  { %v1332_v48 = vadd.f32 1.0, %v4868_v32  ;;  %v4063_v28 = vor.u32 %v4709_v19, %v4062_v18  ;;  %v4067_v32 = vor.u32 %v4706_v24, %v4064_v29  ;;  %v4673_v18 = vld [vmem:[#allocation2 + $0x1c4] sm:$0xf0]  ;;  %v4670_v19 = vld [vmem:[#allocation2 + $0x1b4] sm:$0xf] }
 0x627   :  { %4875 = vtanh.f32 %v1320_v30  ;;  %v4038_v30 = vld [vmem:[#allocation2 + $0x2a0] sm:$0xf]  ;;  %v3998_v29 = vld [vmem:[#allocation2 + $0x248] sm:$0xf] }
 0x628   :  { %v4870_v36 = vpop.eup %4869  ;;  %4877 = vtanh.f32 %v1321_v31  ;;  %v1340_v26 = vmul.f32 %v1332_v48, %v1276_v44  ;;  %v4703_v31 = vld [vmem:[#allocation2 + $0x2b4] sm:$0xf0]  ;;  %2083 = vmatpush.bf16.msrb.mxu2 %v4063_v28  ;;  %2097 = vmatpush.bf16.msrb.mxu3 %v4067_v32  ;;  %v3920_v28 = vld [vmem:[#allocation2 + $0x1c8] sm:$0xf0] }
 0x629   :  { %v4872_v7 = vpop.eup %4871  ;;  %v1338_v39 = vadd.f32 1.0, %v4870_v36  ;;  %v4039_v36 = vor.u32 %v4703_v31, %v4038_v30  ;;  %v4070_v44 = vld [vmem:[#allocation2 + $0x2d8] sm:$0xf]  ;;  %v4692_v30 = vld [vmem:[#allocation2 + $0x25c] sm:$0xf0]  ;;  %v3923_v31 = vor.u32 %v4670_v19, %v3920_v28 }
 0x62a   :  { %v4874_v41 = vpop.eup %4873  ;;  %v1339_v10 = vadd.f32 1.0, %v4872_v7  ;;  %v3999_v32 = vor.u32 %v4692_v30, %v3998_v29  ;;  %v4693_v19 = vld [vmem:[#allocation2 + $0x264] sm:$0xf0]  ;;  %v4690_v29 = vld [vmem:[#allocation2 + $0x254] sm:$0xf] }
 0x62b   :  { %v1346_v3 = vmul.f32 %v1338_v39, %v1282_v38  ;;  %v1333_v52 = vadd.f32 1.0, %v4874_v41  ;;  %v4008_v30 = vld [vmem:[#allocation2 + $0x268] sm:$0xf0] }
 0x62c   :  { %v1347_v4 = vmul.f32 %v1339_v10, %v1283_v43  ;;  %2084 = vmatpush.bf16.msrb.mxu2 %v4039_v36  ;;  %v4014_v10 = vld [vmem:[#allocation2 + $0x270] sm:$0xf] }
 0x62d   :  { %v4876_v49 = vpop.eup %4875  ;;  %v1350_v25 = vpack.c.bf16 %v1346_v3, %v1342_v40  ;;  %v1341_v46 = vmul.f32 %v1333_v52, %v1277_v22  ;;  %v4697_v40 = vld [vmem:[#allocation2 + $0x284] sm:$0xf0]  ;;  %v4694_v3 = vld [vmem:[#allocation2 + $0x274] sm:$0xf]  ;;  %v4688_v52 = vld [vmem:[#allocation2 + $0x244] sm:$0xf] }
 0x62e   :  { %v4878_v53 = vpop.eup %4877  ;;  %v1351_v56 = vpack.c.bf16 %v1347_v4, %v1343_v47  ;;  %v1336_v50 = vadd.f32 1.0, %v4876_v49  ;;  %v4015_v47 = vor.u32 %v4697_v40, %v4014_v10  ;;  %v4016_v4 = vld [vmem:[#allocation2 + $0x288] sm:$0xf0]  ;;  %v3990_v49 = vld [vmem:[#allocation2 + $0x240] sm:$0xf] }
 0x62f   :  { %1581 = vmatmul.bf16.vlgmr.msra.gmra.mxu0 %v1350_v25  ;;  %v1337_v51 = vadd.f32 1.0, %v4878_v53  ;;  %v4019_v48 = vor.u32 %v4694_v3, %v4016_v4  ;;  %v4691_v25 = vld [vmem:[#allocation2 + $0x254] sm:$0xf0]  ;;  %v4683_v3 = vld [vmem:[#allocation2 + $0x21c] sm:$0xf] }
 0x630   :  { %1595 = vmatmul.bf16.vlgmr.msra.gmra.mxu1 %v1351_v56  ;;  %v1344_v57 = vmul.f32 %v1336_v50, %v1280_v33  ;;  %2085 = vmatpush.bf16.msrb.mxu2 %v4015_v47  ;;  %v3991_v53 = vor.u32 %v4691_v25, %v3990_v49  ;;  %v3992_v56 = vld [vmem:[#allocation2 + $0x258] sm:$0xf0]  ;;  %v4710_v33 = vld [vmem:[#allocation2 + $0x2ec] sm:$0xf0]  ;;  %v3976_v47 = vld [vmem:[#allocation2 + $0x230] sm:$0xf0] }
 0x631   :  { %v1345_v58 = vmul.f32 %v1337_v51, %v1281_v34  ;;  %v3995_v50 = vor.u32 %v4688_v52, %v3992_v56  ;;  %v4071_v22 = vor.u32 %v4710_v33, %v4070_v44  ;;  %v4707_v34 = vld [vmem:[#allocation2 + $0x2dc] sm:$0xf]  ;;  %v4072_v51 = vld [vmem:[#allocation2 + $0x2f0] sm:$0xf0]  ;;  %v4078_v4 = vld [vmem:[#allocation2 + $0x2e0] sm:$0xf] }
 0x632   :  { %v1348_v59 = vpack.c.bf16 %v1344_v57, %v1340_v26  ;;  %v4075_v26 = vor.u32 %v4707_v34, %v4072_v51  ;;  %v3966_v57 = vld [vmem:[#allocation2 + $0x210] sm:$0xf]  ;;  %v4711_v49 = vld [vmem:[#allocation2 + $0x2f4] sm:$0xf0]  ;;  %v4708_v25 = vld [vmem:[#allocation2 + $0x2e4] sm:$0xf] }
 0x633   :  { %v1349_v60 = vpack.c.bf16 %v1345_v58, %v1341_v46  ;;  %2111 = vmatpush.bf16.msrb.mxu0 %v4071_v22  ;;  %v4685_v46 = vld [vmem:[#allocation2 + $0x224] sm:$0xf0]  ;;  %v4682_v58 = vld [vmem:[#allocation2 + $0x214] sm:$0xf]  ;;  %v4080_v52 = vld [vmem:[#allocation2 + $0x2f8] sm:$0xf0] }
 0x634   :  { %1553 = vmatmul.bf16.vlgmr.msra.gmra.mxu2 %v1348_v59  ;;  %2125 = vmatpush.bf16.msrb.mxu1 %v4075_v26  ;;  %v3967_v59 = vor.u32 %v4685_v46, %v3966_v57  ;;  %v4083_v56 = vor.u32 %v4708_v25, %v4080_v52  ;;  %v3950_v44 = vld [vmem:[#allocation2 + $0x1e8] sm:$0xf]  ;;  %v4680_v33 = vld [vmem:[#allocation2 + $0x1fc] sm:$0xf0]  ;;  %v3952_v34 = vld [vmem:[#allocation2 + $0x200] sm:$0xf0] }
 0x635   :  { %1567 = vmatmul.bf16.vlgmr.msra.gmra.mxu3 %v1349_v60  ;;  %2086 = vmatpush.bf16.msrb.mxu2 %v3991_v53  ;;  %v3968_v60 = vld [vmem:[#allocation2 + $0x228] sm:$0xf0]  ;;  %v4079_v53 = vor.u32 %v4711_v49, %v4078_v4  ;;  %v3951_v22 = vor.u32 %v4680_v33, %v3950_v44  ;;  %v4054_v51 = vld [vmem:[#allocation2 + $0x2b0] sm:$0xf]  ;;  %v4705_v26 = vld [vmem:[#allocation2 + $0x2c4] sm:$0xf0] }
 0x636   :  { %v4055_v46 = vor.u32 %v4705_v26, %v4054_v51  ;;  %v3934_v49 = vld [vmem:[#allocation2 + $0x1c0] sm:$0xf]  ;;  %v4675_v52 = vld [vmem:[#allocation2 + $0x1d4] sm:$0xf0]  ;;  %v4666_v26 = vld [vmem:[#allocation2 + $0x194] sm:$0xf] }
 0x637   :  { %v3935_v33 = vor.u32 %v4675_v52, %v3934_v49  ;;  %v5379_v52 = vld [vmem:[%s5489_s6 + $0x50] sm:$0xff] }
 0x639   :  { %2087 = vmatpush.bf16.msrb.mxu2 %v3967_v59  ;;  %v4056_v59 = vld [vmem:[#allocation2 + $0x2c8] sm:$0xf0] }
 0x6ac   :  { %v1582_v45 = vpop.f32.mrf.mxu0 }
 0x6ad   :  { %v1596_v2 = vpop.f32.mrf.mxu1 }
 0x6b4   :  { %v1584_v13 = vpop.f32.mrf.mxu0 }
 0x6b5   :  { %v1598_v15 = vpop.f32.mrf.mxu1 }
 0x6b7   :  { %v1554_v62 = vpop.f32.mrf.mxu2 }
 0x6b8   :  { %v1555_v63 = vadd.f32 %v1554_v62, %v1352_v61  ;;  %v1568_v0 = vpop.f32.mrf.mxu3  ;;  %v3971_v62 = vor.u32 %v4682_v58, %v3968_v60  ;;  %v4702_v58 = vld [vmem:[#allocation2 + $0x2b4] sm:$0xf] }
 0x6b9   :  { %v4059_v60 = vor.u32 %v4702_v58, %v4056_v59 }
 0x6ba   :  { %v1569_v1 = vadd.f32 %v1568_v0, %v1555_v63  ;;  %v4701_v0 = vld [vmem:[#allocation2 + $0x2ac] sm:$0xf] }
 0x6bc   :  { %v1583_v23 = vadd.f32 %v1582_v45, %v1569_v1  ;;  %v4048_v45 = vld [vmem:[#allocation2 + $0x2c0] sm:$0xf0] }
 0x6bd   :  { %v4051_v1 = vor.u32 %v4701_v0, %v4048_v45 }
 0x6be   :  { %v1597_v5 = vadd.f32 %v1596_v2, %v1583_v23  ;;  %v3942_v2 = vld [vmem:[#allocation2 + $0x1e0] sm:$0xf]  ;;  %v4679_v23 = vld [vmem:[#allocation2 + $0x1f4] sm:$0xf0] }
 0x6bf   :  { %v1556_v6 = vpop.f32.mrf.mxu2  ;;  %2126 = vmatpush.bf16.msrb.mxu1 %v4051_v1  ;;  %v3928_v1 = vld [vmem:[#allocation2 + $0x1d0] sm:$0xf0] }
 0x6c0   :  { %v1557_v8 = vadd.f32 %v1556_v6, %v1352_v61  ;;  %v1601_v9 = vadd.f32 %v1597_v5, %v5281_v54  ;;  %v1570_v11 = vpop.f32.mrf.mxu3  ;;  %v4040_v54 = vld [vmem:[#allocation2 + $0x2b8] sm:$0xf0]  ;;  %v4704_v61 = vld [vmem:[#allocation2 + $0x2bc] sm:$0xf0]  ;;  %v4676_v5 = vld [vmem:[#allocation2 + $0x1e4] sm:$0xf]  ;;  %v3943_v6 = vor.u32 %v4679_v23, %v3942_v2 }
 0x6c1   :  { %v4043_v27 = vor.u32 %v4700_v35, %v4040_v54  ;;  %v4047_v63 = vor.u32 %v4704_v61, %v4046_v21  ;;  %v4689_v35 = vld [vmem:[#allocation2 + $0x24c] sm:$0xf]  ;;  %v4000_v54 = vld [vmem:[#allocation2 + $0x260] sm:$0xf0]  ;;  %v3926_v61 = vld [vmem:[#allocation2 + $0x1b8] sm:$0xf] }
 0x6c2   :  { %v1571_v12 = vadd.f32 %v1570_v11, %v1557_v8  ;;  %1603 = vadd.xlane.f32.xlu1 %v1601_v9  ;;  %v3944_v8 = vld [vmem:[#allocation2 + $0x1f8] sm:$0xf0]  ;;  %v4698_v11 = vld [vmem:[#allocation2 + $0x28c] sm:$0xf0]  ;;  %2088 = vmatpush.bf16.msrb.mxu2 %v3943_v6  ;;  %v4003_v36 = vor.u32 %v4689_v35, %v4000_v54  ;;  %v4030_v2 = vld [vmem:[#allocation2 + $0x280] sm:$0xf] }
 0x6c3   :  { %2098 = vmatpush.bf16.msrb.mxu3 %v4043_v27  ;;  %2112 = vmatpush.bf16.msrb.mxu0 %v4047_v63  ;;  %v3894_v27 = vld [vmem:[#allocation2 + $0x180] sm:$0xf]  ;;  %v4671_v63 = vld [vmem:[#allocation2 + $0x1bc] sm:$0xf]  ;;  %v4699_v23 = vld [vmem:[#allocation2 + $0x294] sm:$0xf0] }
 0x6c4   :  { %v1585_v14 = vadd.f32 %v1584_v13, %v1571_v12  ;;  %v3947_v12 = vor.u32 %v4676_v5, %v3944_v8  ;;  %v3931_v5 = vor.u32 %v4671_v63, %v3928_v1  ;;  %v4031_v6 = vor.u32 %v4699_v23, %v4030_v2  ;;  %v4696_v8 = vld [vmem:[#allocation2 + $0x284] sm:$0xf]  ;;  %v3982_v35 = vld [vmem:[#allocation2 + $0x220] sm:$0xf]  ;;  %v4687_v54 = vld [vmem:[#allocation2 + $0x234] sm:$0xf0] }
 0x6c6   :  { %v1599_v16 = vadd.f32 %v1598_v15, %v1585_v14  ;;  %v4695_v14 = vld [vmem:[#allocation2 + $0x27c] sm:$0xf]  ;;  %v4024_v15 = vld [vmem:[#allocation2 + $0x290] sm:$0xf0] }
 0x6c7   :  { %2099 = vmatpush.bf16.msrb.mxu3 %v4019_v48  ;;  %v3979_v48 = vor.u32 %v4683_v3, %v3976_v47 }
 0x6c8   :  { %v1602_v17 = vadd.f32 %v1599_v16, %v5283_v55  ;;  %v4027_v16 = vor.u32 %v4695_v14, %v4024_v15  ;;  %v4668_v14 = vld [vmem:[#allocation2 + $0x19c] sm:$0xf0]  ;;  %v4665_v15 = vld [vmem:[#allocation2 + $0x18c] sm:$0xf] }
 0x6ca   :  { %1605 = vadd.xlane.f32.xlu2 %v1602_v17  ;;  %2127 = vmatpush.bf16.msrb.mxu1 %v4027_v16 }
 0x6cb   :  { %2100 = vmatpush.bf16.msrb.mxu3 %v3995_v50  ;;  %v4677_v50 = vld [vmem:[#allocation2 + $0x1ec] sm:$0xf] }
 0x6cc   :  { %v3955_v57 = vor.u32 %v4677_v50, %v3952_v34  ;;  %v4669_v34 = vld [vmem:[#allocation2 + $0x1a4] sm:$0xf0] }
 0x6ce   :  { %2128 = vmatpush.bf16.msrb.mxu1 %v4003_v36  ;;  %v4684_v36 = vld [vmem:[#allocation2 + $0x224] sm:$0xf] }
 0x6cf   :  { %2101 = vmatpush.bf16.msrb.mxu3 %v3971_v62  ;;  %v4674_v62 = vld [vmem:[#allocation2 + $0x1cc] sm:$0xf0] }
 0x6d0   :  { %v3927_v45 = vor.u32 %v4674_v62, %v3926_v61 }
 0x6d2   :  { %2129 = vmatpush.bf16.msrb.mxu1 %v3979_v48 }
 0x6d3   :  { %2102 = vmatpush.bf16.msrb.mxu3 %v3947_v12 }
 0x6d6   :  { %2130 = vmatpush.bf16.msrb.mxu1 %v3955_v57  ;;  %v3912_v57 = vld [vmem:[#allocation2 + $0x1a8] sm:$0xf0] }
 0x6d7   :  { %2103 = vmatpush.bf16.msrb.mxu3 %v3923_v31  ;;  %v4011_v31 = vor.u32 %v4690_v29, %v4008_v30 }
 0x6da   :  { %2131 = vmatpush.bf16.msrb.mxu1 %v3931_v5 }
 0x735   :  { %v1604_v7 = vpop.xlane.xlu1 %1603 }
 0x736   :  { %v1607_v55 = vmul.f32 %v1604_v7, %v5171_v20  ;;  %v4667_v7 = vld [vmem:[#allocation2 + $0x194] sm:$0xf0] }
 0x738   :  { %v5325_v37 = vsub.f32 %v1601_v9, %v1607_v55  ;;  %v4022_v9 = vld [vmem:[#allocation2 + $0x278] sm:$0xf]  ;;  %v4664_v55 = vld [vmem:[#allocation2 + $0x184] sm:$0xf] }
 0x739   :  { %v4023_v13 = vor.u32 %v4698_v11, %v4022_v9  ;;  %v4032_v9 = vld [vmem:[#allocation2 + $0x298] sm:$0xf0] }
 0x73a   :  { %v1611_v38 = vmul.f32 %v5325_v37, %v5325_v37  ;;  %v4035_v12 = vor.u32 %v4696_v8, %v4032_v9 }
 0x73b   :  { %2113 = vmatpush.bf16.msrb.mxu0 %v4023_v13  ;;  %v3902_v13 = vld [vmem:[#allocation2 + $0x188] sm:$0xf] }
 0x73c   :  { %1613 = vadd.xlane.f32.xlu0 %v1611_v38  ;;  %v3895_v38 = vor.u32 %v4667_v7, %v3894_v27  ;;  %v3903_v16 = vor.u32 %v4668_v14, %v3902_v13  ;;  %v3983_v7 = vor.u32 %v4687_v54, %v3982_v35 }
 0x73d   :  { %v1606_v39 = vpop.xlane.xlu2 %1605 }
 0x73e   :  { %v1608_v41 = vmul.f32 %v1606_v39, %v5171_v20  ;;  %v3896_v39 = vld [vmem:[#allocation2 + $0x198] sm:$0xf0] }
 0x73f   :  { %2114 = vmatpush.bf16.msrb.mxu0 %v3999_v32  ;;  %v3899_v10 = vor.u32 %v4664_v55, %v3896_v39  ;;  %v3984_v55 = vld [vmem:[#allocation2 + $0x238] sm:$0xf0] }
 0x740   :  { %v5330_v42 = vsub.f32 %v1602_v17, %v1608_v41  ;;  %v3918_v17 = vld [vmem:[#allocation2 + $0x1b0] sm:$0xf]  ;;  %v3974_v41 = vld [vmem:[#allocation2 + $0x218] sm:$0xf]  ;;  %v3987_v39 = vor.u32 %v4684_v36, %v3984_v55 }
 0x741   :  { %v3919_v24 = vor.u32 %v4673_v18, %v3918_v17  ;;  %2104 = vmatpush.bf16.msrb.mxu3 %v3899_v10  ;;  %v3904_v17 = vld [vmem:[#allocation2 + $0x1a0] sm:$0xf0]  ;;  %v4006_v18 = vld [vmem:[#allocation2 + $0x250] sm:$0xf]  ;;  %v3960_v10 = vld [vmem:[#allocation2 + $0x208] sm:$0xf0] }
 0x742   :  { %v1612_v43 = vmul.f32 %v5330_v42, %v5330_v42  ;;  %v4007_v28 = vor.u32 %v4693_v19, %v4006_v18 }
 0x743   :  { %2089 = vmatpush.bf16.msrb.mxu2 %v3919_v24  ;;  %v3907_v24 = vor.u32 %v4665_v15, %v3904_v17  ;;  %v5355_v17 = vld [vmem:[%s5489_s6 + $0x40] sm:$0xff] }
 0x744   :  { %1615 = vadd.xlane.f32.xlu1 %v1612_v43  ;;  %v4686_v43 = vld [vmem:[#allocation2 + $0x22c] sm:$0xf0]  ;;  %v1839_v18 = vperm.slane %v5355_v17, 0 }
 0x745   :  { %v3975_v40 = vor.u32 %v4686_v43, %v3974_v41  ;;  %2153 = vmatpush.bf16.msra.mxu3 %v4083_v56  ;;  %2132 = vmatpush.bf16.msrb.mxu1 %v3907_v24  ;;  %v4681_v41 = vld [vmem:[#allocation2 + $0x204] sm:$0xf0]  ;;  %v4678_v43 = vld [vmem:[#allocation2 + $0x1f4] sm:$0xf]  ;;  %v3936_v56 = vld [vmem:[#allocation2 + $0x1d8] sm:$0xf0] }
 0x746   :  { %v3963_v48 = vor.u32 %v4678_v43, %v3960_v10  ;;  %v5367_v24 = vld [vmem:[%s5489_s6 + $0x30] sm:$0xff] }
 0x747   :  { %2090 = vmatpush.bf16.msrb.mxu2 %v3895_v38  ;;  %2115 = vmatpush.bf16.msrb.mxu0 %v3975_v40  ;;  %v3958_v38 = vld [vmem:[#allocation2 + $0x1f0] sm:$0xf]  ;;  %v1837_v35 = vperm.slane %v5367_v24, 0 }
 0x748   :  { %v3959_v4 = vor.u32 %v4681_v41, %v3958_v38 }
 0x749   :  { %2154 = vmatpush.bf16.msra.mxu3 %v4059_v60 }
 0x74b   :  { %2139 = vmatpush.bf16.msra.mxu2 %v4079_v53  ;;  %2116 = vmatpush.bf16.msrb.mxu0 %v3951_v22  ;;  %v4672_v53 = vld [vmem:[#allocation2 + $0x1c4] sm:$0xf]  ;;  %v3910_v22 = vld [vmem:[#allocation2 + $0x190] sm:$0xf] }
 0x74c   :  { %v3939_v50 = vor.u32 %v4672_v53, %v3936_v56  ;;  %v3911_v60 = vor.u32 %v4669_v34, %v3910_v22  ;;  %v5384_v53 = vld [vmem:[%s5489_s6 + $0x58] sm:$0xff]  ;;  %v1841_v56 = vperm.slane %v5379_v52, 0 }
 0x74d   :  { %2155 = vmatpush.bf16.msra.mxu3 %v4035_v12 }
 0x74f   :  { %2140 = vmatpush.bf16.msra.mxu2 %v4055_v46  ;;  %2117 = vmatpush.bf16.msrb.mxu0 %v3927_v45  ;;  %v4924_v45 = vld [vmem:[%s5489_s6 + $0x10] sm:$0xff] }
 0x750   :  { %v1643_v1 = vperm.slane %v4924_v45, 2 }
 0x751   :  { %2156 = vmatpush.bf16.msra.mxu3 %v4011_v31 }
 0x753   :  { %2141 = vmatpush.bf16.msra.mxu2 %v4031_v6  ;;  %2118 = vmatpush.bf16.msrb.mxu0 %v3903_v16  ;;  %v4925_v6 = vld [vmem:[%s5489_s6 + $0x18] sm:$0xff] }
 0x754   :  { %v1646_v8 = vperm.slane %v4925_v6, 2  ;;  %v4926_v6 = vld [vmem:[%s5484_s1] sm:$0x3]  ;;  %s3358_s1 = sshll.u32 %s5493_s10, 4  ;;  %s3359_s1 = int_to_ptr.hbm [resolvable:$true] %s3358_s1 }
 0x755   :  { %2157 = vmatpush.bf16.msra.mxu3 %v3987_v39 }
 0x757   :  { %2142 = vmatpush.bf16.msra.mxu2 %v4007_v28  ;;  %v5372_v28 = vld [vmem:[%s5489_s6 + $0x38] sm:$0xff] }
 0x758   :  { %v1838_v54 = vperm.slane %v5372_v28, 0 }
 0x759   :  { %2158 = vmatpush.bf16.msra.mxu3 %v3963_v48 }
 0x75b   :  { %2143 = vmatpush.bf16.msra.mxu2 %v3983_v7 }
 0x75d   :  { %2159 = vmatpush.bf16.msra.mxu3 %v3939_v50 }
 0x75f   :  { %2144 = vmatpush.bf16.msra.mxu2 %v3959_v4 }
 0x763   :  { %2145 = vmatpush.bf16.msra.mxu2 %v3935_v33 }
 0x767   :  { %2146 = vmatpush.bf16.msra.mxu2 %v3911_v60 }
 0x7af   :  { %v1614_v21 = vpop.xlane.xlu0 %1613 }
 0x7b0   :  { %v1617_v0 = vmul.f32 %v1614_v21, %v5171_v20  ;;  %v3915_v21 = vor.u32 %v4666_v26, %v3912_v57 }
 0x7b2   :  { %v5335_v11 = vadd.f32 1e-12, %v1617_v0  ;;  %2160 = vmatpush.bf16.msra.mxu3 %v3915_v21 }
 0x7b4   :  { %4879 = vrsqrt.f32 %v5335_v11  ;;  %vm1627_vm0 = vweird.f32 %v5335_v11 }
 0x7b7   :  { %v1616_v32 = vpop.xlane.xlu1 %1615 }
 0x7b8   :  { %v1618_v27 = vmul.f32 %v1616_v32, %v5171_v20 }
 0x7ba   :  { %v4880_v40 = vpop.eup %4879  ;;  %v1620_v3 = vadd.f32 1e-12, %v1618_v27 }
 0x7bb   :  { %v1622_v47 = vmul.f32 %v4880_v40, %v5335_v11  ;;  %vm1628_vm15 = vweird.f32 %v4880_v40 }
 0x7bc   :  { %4881 = vrsqrt.f32 %v1620_v3  ;;  %vm1629_vm1 = vmor %vm1627_vm0, %vm1628_vm15  ;;  %vm1637_vm3 = vweird.f32 %v1620_v3 }
 0x7bd   :  { %v1623_v25 = vmul.f32 %v4880_v40, %v1622_v47 }
 0x7bf   :  { %v1624_v44 = vmul.f32 0.5, %v1623_v25 }
 0x7c1   :  { %v1625_v51 = vsub.f32 1.5, %v1624_v44  ;;  %v1842_v44 = vperm.slane %v5384_v53, 0 }
 0x7c2   :  { %v4882_v46 = vpop.eup %4881 }
 0x7c3   :  { %v1626_v58 = vmul.f32 %v4880_v40, %v1625_v51  ;;  %v1632_v59 = vmul.f32 %v4882_v46, %v1620_v3  ;;  %vm1638_vm2 = vweird.f32 %v4882_v46 }
 0x7c4   :  { %vm1639_vm4 = vmor %vm1637_vm3, %vm1638_vm2 }
 0x7c5   :  { %v1633_v61 = vmul.f32 %v4882_v46, %v1632_v59  ;;  %v1630_v62 = vsel %vm1629_vm1, %v4880_v40, %v1626_v58 }
 0x7c6   :  { %v1641_v2 = vmul.f32 %v1630_v62, %v5325_v37 }
 0x7c7   :  { %v1634_v63 = vmul.f32 0.5, %v1633_v61 }
 0x7c8   :  { %v1644_v9 = vmul.f32 %v1643_v1, %v1641_v2 }
 0x7c9   :  { %v1635_v0 = vsub.f32 1.5, %v1634_v63 }
 0x7ca   :  { %v1647_v13 = vadd.f32 %v1646_v8, %v1644_v9 }
 0x7cb   :  { %v1636_v23 = vmul.f32 %v4882_v46, %v1635_v0 }
 0x7cd   :  { %v1640_v5 = vsel %vm1639_vm4, %v4882_v46, %v1636_v23 }
 0x7ce   :  { %v1642_v11 = vmul.f32 %v1640_v5, %v5330_v42  ;;  %v5360_v42 = vld [vmem:[%s5489_s6 + $0x48] sm:$0xff] }
 0x7cf   :  { %v1840_v19 = vperm.slane %v5360_v42, 0 }
 0x7d0   :  { %v1645_v12 = vmul.f32 %v1643_v1, %v1642_v11 }
 0x7d2   :  { %v1648_v14 = vadd.f32 %v1646_v8, %v1645_v12 }
 0x7d4   :  { %v1836_v15 = vpack.c.bf16 %v1648_v14, %v1647_v13  ;;  %v2369_v16 = vrot.slane %v1648_v14, 7 }
 0x7d6   :  { %2091 = vmatmul.bf16.vlgmr.msrb.gmra.mxu2 %v1836_v15  ;;  %2105 = vmatmul.bf16.vlgmr.msrb.gmra.mxu3 %v1836_v15  ;;  %v5350_v37 = vsel %vm2365_vm5, %v1647_v13, %v2369_v16 }
 0x7d7   :  { %2119 = vmatmul.bf16.vlgmr.msrb.gmra.mxu0 %v1836_v15  ;;  %2133 = vmatmul.bf16.vlgmr.msrb.gmra.mxu1 %v1836_v15 }
 0x7e6   :  { %2147 = vmatmul.bf16.vlgmr.msra.gmra.mxu2 %v1836_v15  ;;  %2161 = vmatmul.bf16.vlgmr.msra.gmra.mxu3 %v1836_v15  ;;  %v2265_v15 = vrot.slane %v4926_v6, 1 }
 0x854   :  { %v2120_v29 = vpop.f32.mrf.mxu0  ;;  %v2134_v30 = vpop.f32.mrf.mxu1 }
 0x855   :  { %v2121_v31 = vadd.f32 %v2120_v29, %v1839_v18  ;;  %v2135_v32 = vadd.f32 %v2134_v30, %v1840_v19 }
 0x857   :  { %v2168_v36 = vpack.c.bf16 %v2121_v31, %v2121_v31  ;;  %v2216_v27 = vpack.c.bf16 %v2135_v32, %v2135_v32 }
 0x859   :  { %2176 = vmatpush.bf16.xpose.msra.mxu0 %v2168_v36  ;;  %2224 = vmatpush.bf16.xpose.msrb.mxu2 %v2216_v27  ;;  %v2092_v7 = vpop.f32.mrf.mxu2  ;;  %v2106_v55 = vpop.f32.mrf.mxu3 }
 0x85a   :  { %v2093_v38 = vadd.f32 %v2092_v7, %v1837_v35  ;;  %v2107_v39 = vadd.f32 %v2106_v55, %v1838_v54 }
 0x85c   :  { %v2167_v41 = vpack.c.bf16 %v2093_v38, %v2093_v38  ;;  %v2215_v43 = vpack.c.bf16 %v2107_v39, %v2107_v39  ;;  %v2122_v10 = vpop.f32.mrf.mxu0  ;;  %v2136_v40 = vpop.f32.mrf.mxu1 }
 0x85d   :  { %v2123_v3 = vadd.f32 %v2122_v10, %v1839_v18  ;;  %v2137_v47 = vadd.f32 %v2136_v40, %v1840_v19 }
 0x85f   :  { %v2263_v4 = vpack.c.bf16 %v2123_v3, %v2123_v3  ;;  %v2313_v48 = vpack.c.bf16 %v2137_v47, %v2137_v47 }
 0x860   :  { %2177 = vmatmul.bf16.vlgmr.msra.gmra.mxu0 %v2167_v41  ;;  %2225 = vmatmul.bf16.vlgmr.msrb.gmra.mxu2 %v2215_v43 }
 0x861   :  { %2274 = vmatpush.bf16.xpose.msrb.mxu0 %v2263_v4  ;;  %2321 = vmatpush.bf16.xpose.msra.mxu2 %v2313_v48  ;;  %v2094_v49 = vpop.f32.mrf.mxu2  ;;  %v2108_v25 = vpop.f32.mrf.mxu3 }
 0x862   :  { %v2095_v22 = vadd.f32 %v2094_v49, %v1837_v35  ;;  %v2109_v34 = vadd.f32 %v2108_v25, %v1838_v54 }
 0x864   :  { %v2262_v58 = vpack.c.bf16 %v2095_v22, %v2095_v22  ;;  %v2312_v59 = vpack.c.bf16 %v2109_v34, %v2109_v34  ;;  %v4719_v34 = vld [vmem:[#allocation5 + $0xb8] sm:$0xff] }
 0x869   :  { %v2148_v33 = vpop.f32.mrf.mxu2  ;;  %v2162_v50 = vpop.f32.mrf.mxu3  ;;  %2471 = vmatpush.bf16.msra.mxu0 %v4719_v34  ;;  %v4756_v34 = vld [vmem:[#allocation7 + $0x1e4] sm:$0xf] }
 0x86a   :  { %v2149_v51 = vadd.f32 %v2148_v33, %v1841_v56  ;;  %v2163_v26 = vadd.f32 %v2162_v50, %v1842_v44 }
 0x86c   :  { %v2195_v57 = vpack.c.bf16 %v2149_v51, %v2149_v51  ;;  %v2242_v46 = vpack.c.bf16 %v2163_v26, %v2163_v26  ;;  %v4718_v51 = vld [vmem:[#allocation5 + $0xb0] sm:$0xff] }
 0x86d   :  { %2472 = vmatpush.bf16.msra.mxu0 %v4718_v51 }
 0x86e   :  { %v2200_v60 = vsel %vm721_vm7, %v2195_v57, 0  ;;  %v2247_v21 = vsel %vm721_vm7, %v2242_v46, 0 }
 0x86f   :  { %2209 = vmatpush.bf16.msra.mxu1 %v2200_v60  ;;  %2256 = vmatpush.bf16.msrb.mxu3 %v2247_v21 }
 0x870   :  { %2275 = vmatmul.bf16.vlgmr.msrb.gmra.mxu0 %v2262_v58  ;;  %2322 = vmatmul.bf16.vlgmr.msra.gmra.mxu2 %v2312_v59  ;;  %v4717_v58 = vld [vmem:[#allocation5 + $0xa8] sm:$0xff] }
 0x871   :  { %v2150_v61 = vpop.f32.mrf.mxu2  ;;  %v2164_v62 = vpop.f32.mrf.mxu3  ;;  %2473 = vmatpush.bf16.msra.mxu0 %v4717_v58 }
 0x872   :  { %v2151_v63 = vadd.f32 %v2150_v61, %v1841_v56  ;;  %v2165_v0 = vadd.f32 %v2164_v62, %v1842_v44 }
 0x874   :  { %v2292_v45 = vpack.c.bf16 %v2151_v63, %v2151_v63  ;;  %v2339_v1 = vpack.c.bf16 %v2165_v0, %v2165_v0 }
 0x876   :  { %v2297_v2 = vsel %vm721_vm7, %v2292_v45, 0  ;;  %v2344_v23 = vsel %vm721_vm7, %v2339_v1, 0  ;;  %vm2498_vm7 = vcmask 1041408  }
 0x877   :  { %2306 = vmatpush.bf16.msrb.mxu1 %v2297_v2  ;;  %2353 = vmatpush.bf16.msra.mxu3 %v2344_v23 }
 0x8dd   :  { %v2178_v5 = vpop.f32.mrf.mxu0 }
 0x8de   :  { %v2179_v8 = vadd.f32 %v4926_v6, %v2178_v5 }
 0x8e0   :  { %v2183_v9 = vsel %vm2182_vm6, %v2179_v8, -inf }
 0x8e1   :  { %2184 = vmax.xlane.f32.xlu0 %v2183_v9  ;;  %v4715_v9 = vld [vmem:[#allocation5 + $0x98] sm:$0xff] }
 0x8e3   :  { %v2226_v11 = vpop.f32.mrf.mxu2 }
 0x8e4   :  { %v2227_v12 = vadd.f32 %v4926_v6, %v2226_v11  ;;  %v4716_v6 = vld [vmem:[#allocation5 + $0xa0] sm:$0xff]  ;;  %v4726_v11 = vld [vmem:[#allocation5 + $0xf0] sm:$0xff] }
 0x8e5   :  { %v2180_v13 = vpop.f32.mrf.mxu0  ;;  %2474 = vmatpush.bf16.msra.mxu0 %v4716_v6  ;;  %v4258_v6 = vld [vmem:[#allocation7 + $0x1c8] sm:$0xf] }
 0x8e6   :  { %v2230_v14 = vsel %vm2182_vm6, %v2227_v12, -inf  ;;  %v4725_v13 = vld [vmem:[#allocation5 + $0xe8] sm:$0xff] }
 0x8e7   :  { %2231 = vmax.xlane.f32.xlu2 %v2230_v14  ;;  %v4713_v14 = vld [vmem:[#allocation5 + $0x88] sm:$0xff] }
 0x8e9   :  { %2475 = vmatpush.bf16.msra.mxu0 %v4715_v9 }
 0x8eb   :  { %v2228_v16 = vpop.f32.mrf.mxu2 }
 0x8ec   :  { %v4712_v16 = vld [vmem:[#allocation5 + $0x80] sm:$0xff] }
 0x8ed   :  { %v2276_v18 = vpop.f32.mrf.mxu0 }
 0x8ee   :  { %v2277_v19 = vadd.f32 %v2276_v18, %v2265_v15  ;;  %v4723_v18 = vld [vmem:[#allocation5 + $0xd8] sm:$0xff] }
 0x8f0   :  { %v2280_v29 = vsel %vm2182_vm6, %v2277_v19, -inf }
 0x8f1   :  { %2281 = vmax.xlane.f32.xlu2 %v2280_v29  ;;  %v4721_v29 = vld [vmem:[#allocation5 + $0xc8] sm:$0xff] }
 0x8f3   :  { %v2323_v30 = vpop.f32.mrf.mxu2 }
 0x8f4   :  { %v2324_v31 = vadd.f32 %v2323_v30, %v2265_v15  ;;  %v4724_v15 = vld [vmem:[#allocation5 + $0xe0] sm:$0xff] }
 0x8f5   :  { %v2278_v32 = vpop.f32.mrf.mxu0  ;;  %v4720_v30 = vld [vmem:[#allocation5 + $0xc0] sm:$0xff] }
 0x8f6   :  { %v2327_v35 = vsel %vm2182_vm6, %v2324_v31, -inf }
 0x8f7   :  { %2328 = vmax.xlane.f32.xlu1 %v2327_v35 }
 0x8fb   :  { %v2325_v54 = vpop.f32.mrf.mxu2 }
 0x954   :  { %v2185_v36 = vpop.xlane.xlu0 %2184 }
 0x955   :  { %v2186_v27 = vsub.f32 %v2179_v8, %v2185_v36  ;;  %v4727_v8 = vld [vmem:[#allocation5 + $0xf8] sm:$0xff] }
 0x957   :  { %v2187_v7 = vmul.f32 1.442695, %v2186_v27 }
 0x959   :  { %4883 = vpow2.f32 %v2187_v7 }
 0x95a   :  { %v2232_v55 = vpop.xlane.xlu2 %2231 }
 0x95b   :  { %v2233_v38 = vsub.f32 %v2227_v12, %v2232_v55  ;;  %v4714_v12 = vld [vmem:[#allocation5 + $0x90] sm:$0xff] }
 0x95c   :  { %2476 = vmatpush.bf16.msra.mxu0 %v4714_v12  ;;  %v4753_v12 = vld [vmem:[#allocation7 + $0x1cc] sm:$0xf] }
 0x95d   :  { %v2234_v39 = vmul.f32 1.442695, %v2233_v38 }
 0x95f   :  { %v4884_v41 = vpop.eup %4883  ;;  %4885 = vpow2.f32 %v2234_v39 }
 0x960   :  { %v2189_v43 = vsel %vm2182_vm6, %v4884_v41, 0.0  ;;  %2477 = vmatpush.bf16.msra.mxu0 %v4713_v14 }
 0x961   :  { %2190 = vadd.xlane.f32.xlu1 %v2189_v43 }
 0x964   :  { %v2282_v10 = vpop.xlane.xlu2 %2281  ;;  %2478 = vmatpush.bf16.msra.mxu0 %v4712_v16  ;;  %v4750_v16 = vld [vmem:[#allocation7 + $0x1ac] sm:$0xf0] }
 0x965   :  { %v4886_v40 = vpop.eup %4885  ;;  %v2283_v3 = vsub.f32 %v2277_v19, %v2282_v10  ;;  %v4722_v19 = vld [vmem:[#allocation5 + $0xd0] sm:$0xff] }
 0x966   :  { %v2236_v47 = vsel %vm2182_vm6, %v4886_v40, 0.0 }
 0x967   :  { %v2284_v4 = vmul.f32 1.442695, %v2283_v3  ;;  %2237 = vadd.xlane.f32.xlu0 %v2236_v47  ;;  %v2374_v47 = vperm.slane %v5379_v52, 1 }
 0x969   :  { %4887 = vpow2.f32 %v2284_v4 }
 0x96a   :  { %v2329_v48 = vpop.xlane.xlu1 %2328 }
 0x96b   :  { %v2330_v49 = vsub.f32 %v2324_v31, %v2329_v48 }
 0x96d   :  { %v2331_v25 = vmul.f32 1.442695, %v2330_v49 }
 0x96f   :  { %v4888_v56 = vpop.eup %4887  ;;  %4889 = vpow2.f32 %v2331_v25 }
 0x970   :  { %v2286_v44 = vsel %vm2182_vm6, %v4888_v56, 0.0 }
 0x971   :  { %2287 = vadd.xlane.f32.xlu0 %v2286_v44 }
 0x975   :  { %v4890_v33 = vpop.eup %4889 }
 0x976   :  { %v2333_v50 = vsel %vm2182_vm6, %v4890_v33, 0.0 }
 0x977   :  { %2334 = vadd.xlane.f32.xlu2 %v2333_v50  ;;  %v4266_v50 = vld [vmem:[#allocation7 + $0x1e0] sm:$0xf] }
 0x9d4   :  { %v2191_v22 = vpop.xlane.xlu1 %2190 }
 0x9d5   :  { %4891 = vrcp.f32 %v2191_v22  ;;  %v4758_v22 = vld [vmem:[#allocation7 + $0x1ec] sm:$0xf0] }
 0x9d6   :  { %v4267_v51 = vor.u32 %v4758_v22, %v4266_v50  ;;  %v4210_v50 = vld [vmem:[#allocation7 + $0x168] sm:$0xf]  ;;  %v4743_v22 = vld [vmem:[#allocation7 + $0x174] sm:$0xf0] }
 0x9d8   :  { %2690 = vmatpush.bf16.msrb.mxu2 %v4267_v51  ;;  %v4211_v51 = vor.u32 %v4743_v22, %v4210_v50  ;;  %v2523_v22 = vperm.slane %v5372_v28, 2 }
 0x9da   :  { %v2238_v26 = vpop.xlane.xlu0 %2237 }
 0x9db   :  { %v4892_v57 = vpop.eup %4891  ;;  %4893 = vrcp.f32 %v2238_v26  ;;  %v4268_v26 = vld [vmem:[#allocation7 + $0x1f0] sm:$0xf0] }
 0x9dc   :  { %v2193_v46 = vmul.f32 %v4892_v57, %v4884_v41  ;;  %v4274_v57 = vld [vmem:[#allocation7 + $0x1e8] sm:$0xf]  ;;  %v4271_v58 = vor.u32 %v4756_v34, %v4268_v26  ;;  %v4741_v26 = vld [vmem:[#allocation7 + $0x16c] sm:$0xf] }
 0x9de   :  { %v2194_v59 = vpack.c.bf16 %v2193_v46, %v2193_v46  ;;  %v4759_v46 = vld [vmem:[#allocation7 + $0x1f4] sm:$0xf0] }
 0x9df   :  { %v4275_v52 = vor.u32 %v4759_v46, %v4274_v57  ;;  %v4212_v57 = vld [vmem:[#allocation7 + $0x178] sm:$0xf0] }
 0x9e0   :  { %4084 = vmatmul.msk.bf16.vlgmr.msra.gmra.mxu1 %vm704_vm8, %v2194_v59  ;;  %v4757_v59 = vld [vmem:[#allocation7 + $0x1ec] sm:$0xf]  ;;  %v4215_v46 = vor.u32 %v4741_v26, %v4212_v57 }
 0x9e1   :  { %v4894_v60 = vpop.eup %4893  ;;  %2484 = vmatpush.bf16.msra.mxu1 %v4727_v8  ;;  %2716 = vmatpush.bf16.msrb.mxu0 %v4275_v52  ;;  %v4755_v8 = vld [vmem:[#allocation7 + $0x1d4] sm:$0xf0]  ;;  %v4738_v52 = vld [vmem:[#allocation7 + $0x14c] sm:$0xf0] }
 0x9e2   :  { %v2240_v21 = vmul.f32 %v4894_v60, %v4886_v40  ;;  %v4276_v60 = vld [vmem:[#allocation7 + $0x1f8] sm:$0xf0] }
 0x9e4   :  { %v2241_v61 = vpack.c.bf16 %v2240_v21, %v2240_v21  ;;  %v2288_v62 = vpop.xlane.xlu0 %2287  ;;  %v4279_v21 = vor.u32 %v4757_v59, %v4276_v60  ;;  %v4736_v59 = vld [vmem:[#allocation7 + $0x144] sm:$0xf] }
 0x9e5   :  { %4895 = vrcp.f32 %v2288_v62  ;;  %2485 = vmatpush.bf16.msra.mxu1 %v4726_v11  ;;  %v4259_v11 = vor.u32 %v4755_v8, %v4258_v6  ;;  %v4732_v6 = vld [vmem:[#allocation7 + $0x124] sm:$0xf] }
 0x9e6   :  { %4085 = vmatmul.msk.bf16.vlgmr.msrb.gmra.mxu3 %vm704_vm8, %v2241_v61 }
 0x9e7   :  { %2703 = vmatpush.bf16.msrb.mxu3 %v4271_v58  ;;  %2717 = vmatpush.bf16.msrb.mxu0 %v4259_v11  ;;  %v4186_v58 = vld [vmem:[#allocation7 + $0x140] sm:$0xf]  ;;  %v4178_v11 = vld [vmem:[#allocation7 + $0x128] sm:$0xf] }
 0x9e8   :  { %v4187_v60 = vor.u32 %v4738_v52, %v4186_v58  ;;  %v4775_v58 = vld [vmem:[#allocation8 + $0x178] sm:$0xff]  ;;  %v4781_v52 = vld [vmem:[#allocation8 + $0x1a8] sm:$0xff] }
 0x9e9   :  { %2486 = vmatpush.bf16.msra.mxu1 %v4725_v13  ;;  %v4260_v13 = vld [vmem:[#allocation7 + $0x1d8] sm:$0xf0] }
 0x9ea   :  { %v2335_v63 = vpop.xlane.xlu2 %2334  ;;  %v4263_v14 = vor.u32 %v4753_v12, %v4260_v13  ;;  %v4735_v12 = vld [vmem:[#allocation7 + $0x134] sm:$0xf0] }
 0x9eb   :  { %v4896_v0 = vpop.eup %4895  ;;  %4897 = vrcp.f32 %v2335_v63 }
 0x9ec   :  { %v2290_v45 = vmul.f32 %v4896_v0, %v4888_v56 }
 0x9ed   :  { %2487 = vmatpush.bf16.msra.mxu1 %v4724_v15  ;;  %v4234_v15 = vld [vmem:[#allocation7 + $0x1a0] sm:$0xf] }
 0x9ee   :  { %v2291_v1 = vpack.c.bf16 %v2290_v45, %v2290_v45  ;;  %v4250_v45 = vld [vmem:[#allocation7 + $0x1c0] sm:$0xf] }
 0x9f0   :  { %4086 = vmatmul.msk.bf16.vlgmr.msrb.gmra.mxu1 %vm704_vm8, %v2291_v1  ;;  %v4754_v1 = vld [vmem:[#allocation7 + $0x1cc] sm:$0xf0] }
 0x9f1   :  { %v4898_v2 = vpop.eup %4897  ;;  %2488 = vmatpush.bf16.msra.mxu1 %v4723_v18  ;;  %v4748_v18 = vld [vmem:[#allocation7 + $0x1a4] sm:$0xf] }
 0x9f2   :  { %v2337_v23 = vmul.f32 %v4898_v2, %v4890_v33  ;;  %v4752_v2 = vld [vmem:[#allocation7 + $0x1c4] sm:$0xf] }
 0x9f4   :  { %v2338_v5 = vpack.c.bf16 %v2337_v23, %v2337_v23  ;;  %v4251_v23 = vor.u32 %v4754_v1, %v4250_v45  ;;  %v4737_v45 = vld [vmem:[#allocation7 + $0x14c] sm:$0xf]  ;;  %v4196_v1 = vld [vmem:[#allocation7 + $0x158] sm:$0xf0] }
 0x9f5   :  { %2489 = vmatpush.bf16.msra.mxu1 %v4722_v19  ;;  %v4235_v19 = vor.u32 %v4750_v16, %v4234_v15  ;;  %v4733_v15 = vld [vmem:[#allocation7 + $0x12c] sm:$0xf]  ;;  %v4180_v16 = vld [vmem:[#allocation7 + $0x138] sm:$0xf0] }
 0x9f6   :  { %4087 = vmatmul.msk.bf16.vlgmr.msra.gmra.mxu3 %vm704_vm8, %v2338_v5  ;;  %v4252_v5 = vld [vmem:[#allocation7 + $0x1d0] sm:$0xf0]  ;;  %2691 = vmatpush.bf16.msrb.mxu2 %v4251_v23  ;;  %v4170_v23 = vld [vmem:[#allocation7 + $0x120] sm:$0xf] }
 0x9f7   :  { %v4255_v9 = vor.u32 %v4752_v2, %v4252_v5  ;;  %v4199_v2 = vor.u32 %v4737_v45, %v4196_v1  ;;  %v4734_v5 = vld [vmem:[#allocation7 + $0x12c] sm:$0xf0]  ;;  %v4787_v45 = vld [vmem:[#allocation8 + $0x1d8] sm:$0xff]  ;;  %v4764_v1 = vld [vmem:[#allocation8 + $0x120] sm:$0xff] }
 0x9f8   :  { %v4171_v8 = vor.u32 %v4734_v5, %v4170_v23  ;;  %v4778_v23 = vld [vmem:[#allocation8 + $0x190] sm:$0xff] }
 0x9f9   :  { %2490 = vmatpush.bf16.msra.mxu1 %v4721_v29  ;;  %2704 = vmatpush.bf16.msrb.mxu3 %v4255_v9  ;;  %v4236_v29 = vld [vmem:[#allocation7 + $0x1b0] sm:$0xf0] }
 0x9fa   :  { %2692 = vmatpush.bf16.msrb.mxu2 %v4235_v19  ;;  %v4172_v9 = vld [vmem:[#allocation7 + $0x130] sm:$0xf0]  ;;  %v4183_v19 = vor.u32 %v4733_v15, %v4180_v16  ;;  %v4784_v15 = vld [vmem:[#allocation8 + $0x1c0] sm:$0xff]  ;;  %v4761_v16 = vld [vmem:[#allocation8 + $0x108] sm:$0xff] }
 0x9fb   :  { %v4175_v13 = vor.u32 %v4732_v6, %v4172_v9  ;;  %v4786_v5 = vld [vmem:[#allocation8 + $0x1d0] sm:$0xff]  ;;  %v4763_v6 = vld [vmem:[#allocation8 + $0x118] sm:$0xff]  ;;  %v4777_v9 = vld [vmem:[#allocation8 + $0x188] sm:$0xff] }
 0x9fd   :  { %2491 = vmatpush.bf16.msra.mxu1 %v4720_v30  ;;  %v4242_v30 = vld [vmem:[#allocation7 + $0x1a8] sm:$0xf] }
 0xa01   :  { %2729 = vmatpush.bf16.msrb.mxu1 %v4279_v21  ;;  %v4188_v21 = vld [vmem:[#allocation7 + $0x150] sm:$0xf0] }
 0xa05   :  { %2730 = vmatpush.bf16.msrb.mxu1 %v4263_v14  ;;  %v4179_v14 = vor.u32 %v4735_v12, %v4178_v11  ;;  %v4785_v11 = vld [vmem:[#allocation8 + $0x1c8] sm:$0xff]  ;;  %v4762_v12 = vld [vmem:[#allocation8 + $0x110] sm:$0xff] }
 0xa5d   :  { %v2211_v31 = vpop.f32.mrf.mxu1 }
 0xa65   :  { %v2213_v32 = vpop.f32.mrf.mxu1 }
 0xa66   :  { %v4239_v32 = vor.u32 %v4748_v18, %v4236_v29  ;;  %v4154_v18 = vld [vmem:[#allocation7 + $0x100] sm:$0xf]  ;;  %v4730_v29 = vld [vmem:[#allocation7 + $0x10c] sm:$0xf0] }
 0xa68   :  { %2705 = vmatpush.bf16.msrb.mxu3 %v4239_v32  ;;  %v4155_v32 = vor.u32 %v4730_v29, %v4154_v18  ;;  %v4769_v18 = vld [vmem:[#allocation8 + $0x148] sm:$0xff]  ;;  %v4768_v29 = vld [vmem:[#allocation8 + $0x140] sm:$0xff] }
 0xa69   :  { %v2258_v35 = vpop.f32.mrf.mxu3 }
 0xa6d   :  { %v2308_v54 = vpop.f32.mrf.mxu1 }
 0xa6e   :  { %v2361_v36 = vrot.slane %v2308_v54, 7  ;;  %v4749_v54 = vld [vmem:[#allocation7 + $0x1ac] sm:$0xf] }
 0xa70   :  { %v2366_v27 = vsel %vm2365_vm5, %v2211_v31, %v2361_v36  ;;  %v4751_v31 = vld [vmem:[#allocation7 + $0x1b4] sm:$0xf0]  ;;  %v4244_v36 = vld [vmem:[#allocation7 + $0x1b8] sm:$0xf0] }
 0xa71   :  { %v2372_v7 = vpack.c.bf16 %v2366_v27, %v2366_v27  ;;  %v2260_v55 = vpop.f32.mrf.mxu3  ;;  %v4247_v27 = vor.u32 %v4749_v54, %v4244_v36  ;;  %v4162_v54 = vld [vmem:[#allocation7 + $0x108] sm:$0xf]  ;;  %v4731_v36 = vld [vmem:[#allocation7 + $0x114] sm:$0xf0] }
 0xa72   :  { %v4746_v55 = vld [vmem:[#allocation7 + $0x18c] sm:$0xf0] }
 0xa73   :  { %2479 = vmatmul.bf16.vlgmr.msra.gmra.mxu0 %v2372_v7  ;;  %v4218_v7 = vld [vmem:[#allocation7 + $0x180] sm:$0xf]  ;;  %2731 = vmatpush.bf16.msrb.mxu1 %v4247_v27  ;;  %v4729_v27 = vld [vmem:[#allocation7 + $0x10c] sm:$0xf] }
 0xa75   :  { %v2310_v38 = vpop.f32.mrf.mxu1 }
 0xa76   :  { %v4744_v38 = vld [vmem:[#allocation7 + $0x184] sm:$0xf] }
 0xa79   :  { %v2355_v39 = vpop.f32.mrf.mxu3 }
 0xa7a   :  { %v2362_v41 = vrot.slane %v2355_v39, 7  ;;  %v4219_v39 = vor.u32 %v4746_v55, %v4218_v7  ;;  %v4163_v7 = vor.u32 %v4731_v36, %v4162_v54  ;;  %v4164_v55 = vld [vmem:[#allocation7 + $0x118] sm:$0xf0] }
 0xa7c   :  { %v2367_v43 = vsel %vm2365_vm5, %v2258_v35, %v2362_v41  ;;  %v4243_v35 = vor.u32 %v4751_v31, %v4242_v30  ;;  %v4220_v41 = vld [vmem:[#allocation7 + $0x190] sm:$0xf0]  ;;  %2693 = vmatpush.bf16.msrb.mxu2 %v4219_v39  ;;  %v4728_v30 = vld [vmem:[#allocation7 + $0x104] sm:$0xf] }
 0xa7d   :  { %v2373_v10 = vpack.c.bf16 %v2367_v43, %v2367_v43  ;;  %v4226_v43 = vld [vmem:[#allocation7 + $0x188] sm:$0xf]  ;;  %v4156_v31 = vld [vmem:[#allocation7 + $0x110] sm:$0xf0] }
 0xa7e   :  { %2718 = vmatpush.bf16.msrb.mxu0 %v4243_v35  ;;  %v4159_v35 = vor.u32 %v4728_v30, %v4156_v31  ;;  %v2528_v30 = vperm.slane %v5355_v17, 1  ;;  %v2529_v31 = vperm.slane %v5360_v42, 1 }
 0xa7f   :  { %2492 = vmatmul.bf16.vlgmr.msra.gmra.mxu1 %v2373_v10  ;;  %v4747_v10 = vld [vmem:[#allocation7 + $0x194] sm:$0xf0] }
 0xa81   :  { %v2357_v40 = vpop.f32.mrf.mxu3 }
 0xa82   :  { %v4223_v40 = vor.u32 %v4744_v38, %v4220_v41  ;;  %v4167_v38 = vor.u32 %v4729_v27, %v4164_v55  ;;  %v4783_v41 = vld [vmem:[#allocation8 + $0x1b8] sm:$0xff]  ;;  %v2526_v27 = vperm.slane %v5367_v24, 1 }
 0xa84   :  { %2706 = vmatpush.bf16.msrb.mxu3 %v4223_v40  ;;  %v4782_v40 = vld [vmem:[#allocation8 + $0x1b0] sm:$0xff] }
 0xaf0   :  { %v2480_v3 = vpop.f32.mrf.mxu0 }
 0xaf1   :  { %v2481_v48 = vadd.f32 %v2480_v3, %v2374_v47  ;;  %v4227_v3 = vor.u32 %v4747_v10, %v4226_v43  ;;  %v4745_v47 = vld [vmem:[#allocation7 + $0x18c] sm:$0xf]  ;;  %v4791_v43 = vld [vmem:[#allocation8 + $0x1f8] sm:$0xff] }
 0xaf3   :  { %2719 = vmatpush.bf16.msrb.mxu0 %v4227_v3  ;;  %v4790_v3 = vld [vmem:[#allocation8 + $0x1f0] sm:$0xff] }
 0xaf7   :  { %2720 = vmatpush.bf16.msrb.mxu0 %v4211_v51 }
 0xaf8   :  { %v2482_v4 = vpop.f32.mrf.mxu0 }
 0xaf9   :  { %v4228_v4 = vld [vmem:[#allocation7 + $0x198] sm:$0xf0] }
 0xafc   :  { %v2493_v49 = vpop.f32.mrf.mxu1 }
 0xafd   :  { %v2494_v25 = vadd.f32 %v2493_v49, %v2481_v48  ;;  %v4231_v48 = vor.u32 %v4745_v47, %v4228_v4  ;;  %v4202_v49 = vld [vmem:[#allocation7 + $0x160] sm:$0xf] }
 0xaff   :  { %v2497_v56 = vadd.f32 %v2494_v25, %v5350_v37  ;;  %v4742_v25 = vld [vmem:[#allocation7 + $0x16c] sm:$0xf0]  ;;  %2732 = vmatpush.bf16.msrb.mxu1 %v4231_v48 }
 0xb01   :  { %v2499_v44 = vsel %vm2498_vm7, %v2497_v56, 0.0 }
 0xb02   :  { %2500 = vadd.xlane.f32.xlu1 %v2499_v44  ;;  %v4203_v44 = vor.u32 %v4742_v25, %v4202_v49 }
 0xb03   :  { %2733 = vmatpush.bf16.msrb.mxu1 %v4215_v46  ;;  %v4767_v46 = vld [vmem:[#allocation8 + $0x138] sm:$0xff] }
 0xb04   :  { %v2495_v33 = vpop.f32.mrf.mxu1  ;;  %2694 = vmatpush.bf16.msrb.mxu2 %v4203_v44 }
 0xb05   :  { %v4204_v33 = vld [vmem:[#allocation7 + $0x170] sm:$0xf0] }
 0xb07   :  { %2734 = vmatpush.bf16.msrb.mxu1 %v4199_v2  ;;  %v4772_v2 = vld [vmem:[#allocation8 + $0x160] sm:$0xff] }
 0xb08   :  { %2695 = vmatpush.bf16.msrb.mxu2 %v4187_v60  ;;  %v4766_v60 = vld [vmem:[#allocation8 + $0x130] sm:$0xff] }
 0xb0b   :  { %2735 = vmatpush.bf16.msrb.mxu1 %v4183_v19  ;;  %v4760_v19 = vld [vmem:[#allocation8 + $0x100] sm:$0xff] }
 0xb0c   :  { %2696 = vmatpush.bf16.msrb.mxu2 %v4171_v8  ;;  %v4771_v8 = vld [vmem:[#allocation8 + $0x158] sm:$0xff] }
 0xb0f   :  { %2736 = vmatpush.bf16.msrb.mxu1 %v4167_v38 }
 0xb10   :  { %2697 = vmatpush.bf16.msrb.mxu2 %v4155_v32 }
 0xb13   :  { %3014 = vmatpush.bf16.msra.mxu1 %v4791_v43 }
 0xb14   :  { %2975 = vmatpush.bf16.msra.mxu2 %v4767_v46 }
 0xb17   :  { %3015 = vmatpush.bf16.msra.mxu1 %v4790_v3 }
 0xb18   :  { %2976 = vmatpush.bf16.msra.mxu2 %v4766_v60 }
 0xb75   :  { %v2501_v37 = vpop.xlane.xlu1 %2500 }
 0xb76   :  { %v2502_v61 = vmul.f32 %v2501_v37, %v5171_v20  ;;  %v4194_v37 = vld [vmem:[#allocation7 + $0x148] sm:$0xf] }
 0xb78   :  { %v5413_v62 = vsub.f32 %v2497_v56, %v2502_v61  ;;  %v4740_v56 = vld [vmem:[#allocation7 + $0x164] sm:$0xf]  ;;  %v4739_v61 = vld [vmem:[#allocation7 + $0x154] sm:$0xf0] }
 0xb79   :  { %v4207_v34 = vor.u32 %v4740_v56, %v4204_v33  ;;  %v2521_v33 = vperm.slane %v5367_v24, 2 }
 0xb7a   :  { %v2504_v63 = vmul.f32 %v5413_v62, %v5413_v62 }
 0xb7b   :  { %2707 = vmatpush.bf16.msrb.mxu3 %v4207_v34 }
 0xb7c   :  { %v2505_v0 = vsel %vm2498_vm7, %v2504_v63, 0.0  ;;  %v4191_v63 = vor.u32 %v4736_v59, %v4188_v21  ;;  %v4789_v59 = vld [vmem:[#allocation8 + $0x1e8] sm:$0xff]  ;;  %v4780_v21 = vld [vmem:[#allocation8 + $0x1a0] sm:$0xff] }
 0xb7d   :  { %2506 = vadd.xlane.f32.xlu2 %v2505_v0  ;;  %v4195_v0 = vor.u32 %v4739_v61, %v4194_v37  ;;  %3016 = vmatpush.bf16.msra.mxu1 %v4789_v59  ;;  %v4788_v37 = vld [vmem:[#allocation8 + $0x1e0] sm:$0xff]  ;;  %v4765_v61 = vld [vmem:[#allocation8 + $0x128] sm:$0xff] }
 0xb7e   :  { %2977 = vmatpush.bf16.msra.mxu2 %v4765_v61 }
 0xb7f   :  { %2708 = vmatpush.bf16.msrb.mxu3 %v4191_v63  ;;  %2721 = vmatpush.bf16.msrb.mxu0 %v4195_v0  ;;  %v4773_v63 = vld [vmem:[#allocation8 + $0x168] sm:$0xff]  ;;  %v4779_v0 = vld [vmem:[#allocation8 + $0x198] sm:$0xff] }
 0xb81   :  { %3017 = vmatpush.bf16.msra.mxu1 %v4788_v37 }
 0xb82   :  { %2978 = vmatpush.bf16.msra.mxu2 %v4764_v1 }
 0xb83   :  { %2709 = vmatpush.bf16.msrb.mxu3 %v4175_v13  ;;  %2722 = vmatpush.bf16.msrb.mxu0 %v4179_v14  ;;  %v4770_v13 = vld [vmem:[#allocation8 + $0x150] sm:$0xff]  ;;  %v4776_v14 = vld [vmem:[#allocation8 + $0x180] sm:$0xff] }
 0xb85   :  { %3018 = vmatpush.bf16.msra.mxu1 %v4787_v45 }
 0xb86   :  { %2979 = vmatpush.bf16.msra.mxu2 %v4763_v6 }
 0xb87   :  { %2710 = vmatpush.bf16.msrb.mxu3 %v4159_v35  ;;  %2723 = vmatpush.bf16.msrb.mxu0 %v4163_v7  ;;  %v2527_v7 = vperm.slane %v5372_v28, 1 }
 0xb89   :  { %3019 = vmatpush.bf16.msra.mxu1 %v4786_v5 }
 0xb8a   :  { %2980 = vmatpush.bf16.msra.mxu2 %v4762_v12 }
 0xb8b   :  { %3001 = vmatpush.bf16.msra.mxu0 %v4783_v41  ;;  %2988 = vmatpush.bf16.msra.mxu3 %v4775_v58 }
 0xb8d   :  { %3020 = vmatpush.bf16.msra.mxu1 %v4785_v11 }
 0xb8e   :  { %2981 = vmatpush.bf16.msra.mxu2 %v4761_v16 }
 0xb8f   :  { %3002 = vmatpush.bf16.msra.mxu0 %v4782_v40 }
 0xb91   :  { %3021 = vmatpush.bf16.msra.mxu1 %v4784_v15 }
 0xb92   :  { %2982 = vmatpush.bf16.msra.mxu2 %v4760_v19  ;;  %v2782_v19 = vperm.slane %v5384_v53, 1  ;;  %v4813_v53 = vld [vmem:[#allocation10 + $0xec] sm:$0xf] }
 0xb93   :  { %3003 = vmatpush.bf16.msra.mxu0 %v4781_v52 }
 0xb97   :  { %3004 = vmatpush.bf16.msra.mxu0 %v4780_v21 }
 0xb9b   :  { %3005 = vmatpush.bf16.msra.mxu0 %v4779_v0 }
 0xb9f   :  { %3006 = vmatpush.bf16.msra.mxu0 %v4778_v23 }
 0xba3   :  { %3007 = vmatpush.bf16.msra.mxu0 %v4777_v9 }
 0xba7   :  { %3008 = vmatpush.bf16.msra.mxu0 %v4776_v14 }
 0xbf0   :  { %v2507_v39 = vpop.xlane.xlu2 %2506 }
 0xbf1   :  { %v2508_v10 = vmul.f32 %v2507_v39, %v5171_v20 }
 0xbf3   :  { %v2509_v47 = vadd.f32 1e-12, %v2508_v10 }
 0xbf5   :  { %4899 = vrsqrt.f32 %v2509_v47  ;;  %vm2516_vm9 = vweird.f32 %v2509_v47 }
 0xbfb   :  { %v4900_v4 = vpop.eup %4899 }
 0xbfc   :  { %v2511_v48 = vmul.f32 %v4900_v4, %v2509_v47  ;;  %vm2517_vm8 = vweird.f32 %v4900_v4 }
 0xbfd   :  { %vm2518_vm10 = vmor %vm2516_vm9, %vm2517_vm8 }
 0xbfe   :  { %v2512_v49 = vmul.f32 %v4900_v4, %v2511_v48 }
 0xc00   :  { %v2513_v25 = vmul.f32 0.5, %v2512_v49 }
 0xc02   :  { %v2514_v56 = vsub.f32 1.5, %v2513_v25 }
 0xc04   :  { %v2515_v44 = vmul.f32 %v4900_v4, %v2514_v56 }
 0xc06   :  { %v2519_v50 = vsel %vm2518_vm10, %v4900_v4, %v2515_v44 }
 0xc07   :  { %v2520_v34 = vmul.f32 %v2519_v50, %v5413_v62  ;;  %v4774_v62 = vld [vmem:[#allocation8 + $0x170] sm:$0xff] }
 0xc08   :  { %2989 = vmatpush.bf16.msra.mxu3 %v4774_v62 }
 0xc09   :  { %v2522_v51 = vmul.f32 %v2521_v33, %v2520_v34 }
 0xc0b   :  { %v5422_v26 = vadd.f32 %v2523_v22, %v2522_v51 }
 0xc0c   :  { %2990 = vmatpush.bf16.msra.mxu3 %v4773_v63 }
 0xc0d   :  { %v2525_v57 = vpack.c.bf16 %v5422_v26, %v5422_v26 }
 0xc0f   :  { %2698 = vmatmul.bf16.vlgmr.msrb.gmra.mxu2 %v2525_v57  ;;  %2711 = vmatmul.bf16.vlgmr.msrb.gmra.mxu3 %v2525_v57 }
 0xc10   :  { %2724 = vmatmul.bf16.vlgmr.msrb.gmra.mxu0 %v2525_v57  ;;  %2737 = vmatmul.bf16.vlgmr.msrb.gmra.mxu1 %v2525_v57 }
 0xc11   :  { %2991 = vmatpush.bf16.msra.mxu3 %v4772_v2 }
 0xc15   :  { %2992 = vmatpush.bf16.msra.mxu3 %v4771_v8 }
 0xc19   :  { %2993 = vmatpush.bf16.msra.mxu3 %v4770_v13 }
 0xc1d   :  { %2994 = vmatpush.bf16.msra.mxu3 %v4769_v18 }
 0xc21   :  { %2995 = vmatpush.bf16.msra.mxu3 %v4768_v29 }
 0xc8d   :  { %v2725_v32 = vpop.f32.mrf.mxu0  ;;  %v2738_v35 = vpop.f32.mrf.mxu1 }
 0xc8e   :  { %v2726_v54 = vadd.f32 %v2725_v32, %v2528_v30  ;;  %v2739_v36 = vadd.f32 %v2738_v35, %v2529_v31 }
 0xc90   :  { %v2748_v55 = vmul.f32 0.044715, %v2726_v54  ;;  %v2749_v38 = vmul.f32 0.044715, %v2739_v36  ;;  %v2744_v62 = vmul.f32 0.5, %v2726_v54  ;;  %v2745_v37 = vmul.f32 0.5, %v2739_v36 }
 0xc92   :  { %v2752_v39 = vmul.f32 %v2748_v55, %v2726_v54  ;;  %v2753_v41 = vmul.f32 %v2749_v38, %v2739_v36  ;;  %v2699_v43 = vpop.f32.mrf.mxu2  ;;  %v2712_v10 = vpop.f32.mrf.mxu3 }
 0xc93   :  { %v2700_v40 = vadd.f32 %v2699_v43, %v2526_v27  ;;  %v2713_v17 = vadd.f32 %v2712_v10, %v2527_v7  ;;  %v4498_v43 = vld [vmem:[#allocation10 + $0xe8] sm:$0xf] }
 0xc94   :  { %v2756_v3 = vmul.f32 %v2752_v39, %v2726_v54  ;;  %v2757_v42 = vmul.f32 %v2753_v41, %v2739_v36  ;;  %v4494_v39 = vld [vmem:[#allocation10 + $0xe0] sm:$0xf]  ;;  %v4814_v41 = vld [vmem:[#allocation10 + $0xec] sm:$0xf0] }
 0xc95   :  { %v2746_v47 = vmul.f32 0.044715, %v2700_v40  ;;  %v2747_v4 = vmul.f32 0.044715, %v2713_v17  ;;  %v2727_v48 = vpop.f32.mrf.mxu0  ;;  %v2740_v49 = vpop.f32.mrf.mxu1  ;;  %v2742_v23 = vmul.f32 0.5, %v2700_v40  ;;  %v2743_v8 = vmul.f32 0.5, %v2713_v17 }
 0xc96   :  { %v2760_v25 = vadd.f32 %v2756_v3, %v2726_v54  ;;  %v2761_v56 = vadd.f32 %v2757_v42, %v2739_v36  ;;  %v4495_v10 = vor.u32 %v4814_v41, %v4494_v39  ;;  %v4797_v39 = vld [vmem:[#allocation10 + $0x34] sm:$0xf0]  ;;  %v4795_v41 = vld [vmem:[#allocation10 + $0x2c] sm:$0xf] }
 0xc97   :  { %v2750_v44 = vmul.f32 %v2746_v47, %v2700_v40  ;;  %v2751_v24 = vmul.f32 %v2747_v4, %v2713_v17 }
 0xc98   :  { %v2764_v33 = vmul.f32 0.7978846, %v2760_v25  ;;  %v2765_v28 = vmul.f32 0.7978846, %v2761_v56  ;;  %3218 = vmatpush.bf16.msrb.mxu2 %v4495_v10  ;;  %v4482_v25 = vld [vmem:[#allocation10 + $0xc0] sm:$0xf] }
 0xc99   :  { %v2754_v50 = vmul.f32 %v2750_v44, %v2700_v40  ;;  %v2755_v22 = vmul.f32 %v2751_v24, %v2713_v17  ;;  %v4811_v56 = vld [vmem:[#allocation10 + $0xcc] sm:$0xf0]  ;;  %v4486_v44 = vld [vmem:[#allocation10 + $0xc8] sm:$0xf] }
 0xc9a   :  { %v2701_v34 = vpop.f32.mrf.mxu2  ;;  %v2714_v51 = vpop.f32.mrf.mxu3  ;;  %4901 = vtanh.f32 %v2764_v33  ;;  %v4483_v24 = vor.u32 %v4811_v56, %v4482_v25  ;;  %v4812_v33 = vld [vmem:[#allocation10 + $0xd4] sm:$0xf0] }
 0xc9b   :  { %v2758_v57 = vadd.f32 %v2754_v50, %v2700_v40  ;;  %v2759_v46 = vadd.f32 %v2755_v22, %v2713_v17  ;;  %4903 = vtanh.f32 %v2765_v28  ;;  %v4815_v40 = vld [vmem:[#allocation10 + $0xf4] sm:$0xf0]  ;;  %v4500_v17 = vld [vmem:[#allocation10 + $0xf8] sm:$0xf0]  ;;  %v4810_v28 = vld [vmem:[#allocation10 + $0xcc] sm:$0xf]  ;;  %v4487_v22 = vor.u32 %v4812_v33, %v4486_v44 }
 0xc9c   :  { %v4499_v3 = vor.u32 %v4815_v40, %v4498_v43  ;;  %v4503_v42 = vor.u32 %v4813_v53, %v4500_v17  ;;  %v4488_v50 = vld [vmem:[#allocation10 + $0xd8] sm:$0xf0]  ;;  %3219 = vmatpush.bf16.msrb.mxu2 %v4483_v24  ;;  %v4470_v51 = vld [vmem:[#allocation10 + $0xa0] sm:$0xf]  ;;  %v4793_v17 = vld [vmem:[#allocation10 + $0xc] sm:$0xf0] }
 0xc9d   :  { %v2762_v58 = vmul.f32 0.7978846, %v2758_v57  ;;  %v2763_v52 = vmul.f32 0.7978846, %v2759_v46  ;;  %v4491_v34 = vor.u32 %v4810_v28, %v4488_v50  ;;  %v4808_v57 = vld [vmem:[#allocation10 + $0xac] sm:$0xf0] }
 0xc9e   :  { %3231 = vmatpush.bf16.msrb.mxu3 %v4499_v3  ;;  %3244 = vmatpush.bf16.msrb.mxu0 %v4503_v42  ;;  %v4474_v46 = vld [vmem:[#allocation10 + $0xa8] sm:$0xf]  ;;  %v4428_v43 = vld [vmem:[#allocation10 + $0x38] sm:$0xf0]  ;;  %v4410_v53 = vld [vmem:[#allocation10] sm:$0xf] }
 0xc9f   :  { %4905 = vtanh.f32 %v2762_v58  ;;  %v4471_v58 = vor.u32 %v4808_v57, %v4470_v51  ;;  %v4431_v40 = vor.u32 %v4795_v41, %v4428_v43  ;;  %v4414_v3 = vld [vmem:[#allocation10 + $0x8] sm:$0xf]  ;;  %v4411_v42 = vor.u32 %v4793_v17, %v4410_v53  ;;  %v4927_v57 = vld [vmem:[%s5489_s6 + $0x40] sm:$0xff] }
 0xca0   :  { %v4902_v59 = vpop.eup %4901  ;;  %4907 = vtanh.f32 %v2763_v52  ;;  %v4809_v52 = vld [vmem:[#allocation10 + $0xb4] sm:$0xf0] }
 0xca1   :  { %v4904_v60 = vpop.eup %4903  ;;  %v2772_v21 = vadd.f32 1.0, %v4902_v59  ;;  %v4807_v59 = vld [vmem:[#allocation10 + $0xac] sm:$0xf]  ;;  %3220 = vmatpush.bf16.msrb.mxu2 %v4471_v58 }
 0xca2   :  { %v2773_v61 = vadd.f32 1.0, %v4904_v60  ;;  %3232 = vmatpush.bf16.msrb.mxu3 %v4487_v22  ;;  %3245 = vmatpush.bf16.msrb.mxu0 %v4491_v34  ;;  %v4476_v60 = vld [vmem:[#allocation10 + $0xb8] sm:$0xf0] }
 0xca3   :  { %v2776_v63 = vmul.f32 %v2772_v21, %v2744_v62  ;;  %v4475_v62 = vor.u32 %v4809_v52, %v4474_v46  ;;  %v4479_v21 = vor.u32 %v4807_v59, %v4476_v60  ;;  %v3050_v46 = vperm.slane %v4927_v57, 2 }
 0xca4   :  { %v2777_v0 = vmul.f32 %v2773_v61, %v2745_v37  ;;  %v4458_v37 = vld [vmem:[#allocation10 + $0x80] sm:$0xf]  ;;  %v4805_v61 = vld [vmem:[#allocation10 + $0x8c] sm:$0xf0] }
 0xca5   :  { %v4906_v45 = vpop.eup %4905  ;;  %v2780_v1 = vpack.c.bf16 %v2776_v63, %v2776_v63  ;;  %v4462_v63 = vld [vmem:[#allocation10 + $0x88] sm:$0xf] }
 0xca6   :  { %v4908_v2 = vpop.eup %4907  ;;  %v2781_v5 = vpack.c.bf16 %v2777_v0, %v2777_v0  ;;  %v2770_v6 = vadd.f32 1.0, %v4906_v45  ;;  %3233 = vmatpush.bf16.msrb.mxu3 %v4475_v62  ;;  %3246 = vmatpush.bf16.msrb.mxu0 %v4479_v21  ;;  %v4459_v0 = vor.u32 %v4805_v61, %v4458_v37  ;;  %v4806_v45 = vld [vmem:[#allocation10 + $0x94] sm:$0xf0]  ;;  %v4822_v61 = vld [vmem:[%s5491_s8 + $0x30] sm:$0xff] }
 0xca7   :  { %3009 = vmatmul.bf16.vlgmr.msra.gmra.mxu0 %v2780_v1  ;;  %v2771_v9 = vadd.f32 1.0, %v4908_v2  ;;  %v4804_v1 = vld [vmem:[#allocation10 + $0x8c] sm:$0xf]  ;;  %v4464_v2 = vld [vmem:[#allocation10 + $0x98] sm:$0xf0] }
 0xca8   :  { %3022 = vmatmul.bf16.vlgmr.msra.gmra.mxu1 %v2781_v5  ;;  %v2774_v11 = vmul.f32 %v2770_v6, %v2742_v23  ;;  %v4463_v23 = vor.u32 %v4806_v45, %v4462_v63  ;;  %v4467_v5 = vor.u32 %v4804_v1, %v4464_v2  ;;  %3221 = vmatpush.bf16.msrb.mxu2 %v4459_v0  ;;  %v4446_v6 = vld [vmem:[#allocation10 + $0x60] sm:$0xf]  ;;  %v4823_v37 = vld [vmem:[%s5491_s8 + $0x38] sm:$0xff]  ;;  %v4818_v1 = vld [vmem:[%s5491_s8 + $0x10] sm:$0xff] }
 0xca9   :  { %v2775_v12 = vmul.f32 %v2771_v9, %v2743_v8  ;;  %v4802_v8 = vld [vmem:[#allocation10 + $0x6c] sm:$0xf0]  ;;  %v4450_v9 = vld [vmem:[#allocation10 + $0x68] sm:$0xf]  ;;  %3337 = vmatpush.bf16.msrb.mxu1 %v4823_v37  ;;  %v4820_v63 = vld [vmem:[%s5491_s8 + $0x20] sm:$0xff] }
 0xcaa   :  { %v2778_v13 = vpack.c.bf16 %v2774_v11, %v2774_v11  ;;  %3234 = vmatpush.bf16.msrb.mxu3 %v4463_v23  ;;  %3247 = vmatpush.bf16.msrb.mxu0 %v4467_v5  ;;  %v4447_v11 = vor.u32 %v4802_v8, %v4446_v6  ;;  %v4819_v0 = vld [vmem:[%s5491_s8 + $0x18] sm:$0xff]  ;;  %v4817_v5 = vld [vmem:[%s5491_s8 + $0x8] sm:$0xff]  ;;  %v4929_v6 = vld [vmem:[%s5492_s9] sm:$0xff] }
 0xcab   :  { %v2779_v14 = vpack.c.bf16 %v2775_v12, %v2775_v12  ;;  %v4803_v12 = vld [vmem:[#allocation10 + $0x74] sm:$0xf0]  ;;  %v3087_v8 = vperm.slane %v4929_v6, 1 }
 0xcac   :  { %2983 = vmatmul.bf16.vlgmr.msra.gmra.mxu2 %v2778_v13  ;;  %v4801_v13 = vld [vmem:[#allocation10 + $0x6c] sm:$0xf]  ;;  %v118_v45 = vld [vmem:[%s5492_s9 + $0x18] sm:$0xff] }
 0xcad   :  { %2996 = vmatmul.bf16.vlgmr.msra.gmra.mxu3 %v2779_v14  ;;  %v4452_v14 = vld [vmem:[#allocation10 + $0x78] sm:$0xf0]  ;;  %3222 = vmatpush.bf16.msrb.mxu2 %v4447_v11  ;;  %v3089_v2 = vperm.slane %v118_v45, 1  ;;  %v4816_v11 = vld [vmem:[%s5491_s8] sm:$0xff] }
 0xcae   :  { %3338 = vmatpush.bf16.msrb.mxu1 %v4822_v61 }
 0xd24   :  { %v3010_v15 = vpop.f32.mrf.mxu0 }
 0xd25   :  { %v3023_v16 = vpop.f32.mrf.mxu1 }
 0xd2c   :  { %v3012_v18 = vpop.f32.mrf.mxu0 }
 0xd2d   :  { %v3025_v29 = vpop.f32.mrf.mxu1  ;;  %v4434_v18 = vld [vmem:[#allocation10 + $0x40] sm:$0xf] }
 0xd2e   :  { %v4438_v29 = vld [vmem:[#allocation10 + $0x48] sm:$0xf] }
 0xd2f   :  { %v2984_v30 = vpop.f32.mrf.mxu2 }
 0xd30   :  { %v2985_v31 = vadd.f32 %v2984_v30, %v2782_v19  ;;  %v2997_v32 = vpop.f32.mrf.mxu3  ;;  %v4799_v19 = vld [vmem:[#allocation10 + $0x4c] sm:$0xf0] }
 0xd31   :  { %v4435_v30 = vor.u32 %v4799_v19, %v4434_v18  ;;  %v117_v19 = vld [vmem:[%s5492_s9 + $0x10] sm:$0xff] }
 0xd32   :  { %v2998_v35 = vadd.f32 %v2997_v32, %v2985_v31  ;;  %v4800_v31 = vld [vmem:[#allocation10 + $0x54] sm:$0xf0]  ;;  %v4798_v32 = vld [vmem:[#allocation10 + $0x4c] sm:$0xf]  ;;  %v3288_v17 = vperm.slane %v117_v19, 0 }
 0xd33   :  { %3223 = vmatpush.bf16.msrb.mxu2 %v4435_v30 }
 0xd34   :  { %v3011_v54 = vadd.f32 %v3010_v15, %v2998_v35  ;;  %v4451_v15 = vor.u32 %v4803_v12, %v4450_v9  ;;  %v4440_v35 = vld [vmem:[#allocation10 + $0x58] sm:$0xf0] }
 0xd36   :  { %v3024_v36 = vadd.f32 %v3023_v16, %v3011_v54  ;;  %v4455_v16 = vor.u32 %v4801_v13, %v4452_v14  ;;  %3235 = vmatpush.bf16.msrb.mxu3 %v4451_v15  ;;  %v4439_v54 = vor.u32 %v4800_v31, %v4438_v29  ;;  %v3088_v31 = vperm.slane %v117_v19, 1 }
 0xd37   :  { %v2986_v27 = vpop.f32.mrf.mxu2 }
 0xd38   :  { %v2999_v7 = vpop.f32.mrf.mxu3  ;;  %v3027_v55 = vadd.f32 %v3024_v36, %v5422_v26  ;;  %3248 = vmatpush.bf16.msrb.mxu0 %v4455_v16  ;;  %v4443_v36 = vor.u32 %v4798_v32, %v4440_v35  ;;  %v4422_v27 = vld [vmem:[#allocation10 + $0x20] sm:$0xf] }
 0xd39   :  { %v4796_v7 = vld [vmem:[#allocation10 + $0x2c] sm:$0xf0] }
 0xd3a   :  { %v3028_v38 = vsel %vm2498_vm7, %v3027_v55, 0.0  ;;  %3236 = vmatpush.bf16.msrb.mxu3 %v4439_v54 }
 0xd3b   :  { %3029 = vadd.xlane.f32.xlu0 %v3028_v38  ;;  %v4423_v38 = vor.u32 %v4796_v7, %v4422_v27 }
 0xd3c   :  { %3249 = vmatpush.bf16.msrb.mxu0 %v4443_v36 }
 0xd3d   :  { %3224 = vmatpush.bf16.msrb.mxu2 %v4423_v38 }
 0xd40   :  { %3250 = vmatpush.bf16.msrb.mxu0 %v4431_v40 }
 0xd41   :  { %3225 = vmatpush.bf16.msrb.mxu2 %v4411_v42 }
 0xdae   :  { %v3030_v47 = vpop.xlane.xlu0 %3029 }
 0xdaf   :  { %v3031_v4 = vmul.f32 %v3030_v47, %v5171_v20  ;;  %v4794_v47 = vld [vmem:[#allocation10 + $0x14] sm:$0xf0] }
 0xdb1   :  { %v5434_v48 = vsub.f32 %v3027_v55, %v3031_v4  ;;  %v4426_v55 = vld [vmem:[#allocation10 + $0x28] sm:$0xf]  ;;  %v4792_v4 = vld [vmem:[#allocation10 + $0xc] sm:$0xf] }
 0xdb2   :  { %v4427_v10 = vor.u32 %v4797_v39, %v4426_v55 }
 0xdb3   :  { %v3033_v26 = vmul.f32 %v5434_v48, %v5434_v48 }
 0xdb4   :  { %3237 = vmatpush.bf16.msrb.mxu3 %v4427_v10 }
 0xdb5   :  { %v3034_v49 = vsel %vm2498_vm7, %v3033_v26, 0.0  ;;  %v4416_v26 = vld [vmem:[#allocation10 + $0x18] sm:$0xf0] }
 0xdb6   :  { %3035 = vadd.xlane.f32.xlu1 %v3034_v49  ;;  %v4415_v49 = vor.u32 %v4794_v47, %v4414_v3  ;;  %v4419_v25 = vor.u32 %v4792_v4, %v4416_v26 }
 0xdb8   :  { %3238 = vmatpush.bf16.msrb.mxu3 %v4415_v49  ;;  %3251 = vmatpush.bf16.msrb.mxu0 %v4419_v25 }
 0xe29   :  { %v3036_v56 = vpop.xlane.xlu1 %3035 }
 0xe2a   :  { %v3037_v44 = vmul.f32 %v3036_v56, %v5171_v20  ;;  %v4928_v20 = vld [vmem:[%s5489_s6 + $0x48] sm:$0xff] }
 0xe2b   :  { %v3052_v52 = vperm.slane %v4928_v20, 2 }
 0xe2c   :  { %v3038_v24 = vadd.f32 1e-12, %v3037_v44 }
 0xe2e   :  { %4909 = vrsqrt.f32 %v3038_v24  ;;  %vm3045_vm12 = vweird.f32 %v3038_v24 }
 0xe34   :  { %v4910_v33 = vpop.eup %4909 }
 0xe35   :  { %v3040_v28 = vmul.f32 %v4910_v33, %v3038_v24  ;;  %vm3046_vm11 = vweird.f32 %v4910_v33 }
 0xe36   :  { %vm3047_vm13 = vmor %vm3045_vm12, %vm3046_vm11 }
 0xe37   :  { %v3041_v50 = vmul.f32 %v4910_v33, %v3040_v28 }
 0xe39   :  { %v3042_v22 = vmul.f32 0.5, %v3041_v50 }
 0xe3b   :  { %v3043_v34 = vsub.f32 1.5, %v3042_v22 }
 0xe3d   :  { %v3044_v51 = vmul.f32 %v4910_v33, %v3043_v34 }
 0xe3f   :  { %v3048_v58 = vsel %vm3047_vm13, %v4910_v33, %v3044_v51 }
 0xe40   :  { %v3049_v59 = vmul.f32 %v3048_v58, %v5434_v48  ;;  %v4821_v48 = vld [vmem:[%s5491_s8 + $0x28] sm:$0xff]  ;;  %s5094_s8 = smov [#allocation11]  }
 0xe41   :  { %3339 = vmatpush.bf16.msrb.mxu1 %v4821_v48  ;;  %s3356_s9 = sshll.u32 %s5094_s8, 4  ;;  %s3357_s9 = int_to_ptr.vmem [resolvable:$true] %s3356_s9 }
 0xe42   :  { %v3051_v60 = vmul.f32 %v3050_v46, %v3049_v59 }
 0xe44   :  { %v3053_v62 = vadd.f32 %v3052_v52, %v3051_v60 }
 0xe45   :  { %3340 = vmatpush.bf16.msrb.mxu1 %v4820_v63 }
 0xe46   :  { %v3054_v21 = vpack.c.bf16 %v3053_v62, %v3053_v62 }
 0xe48   :  { %3226 = vmatmul.bf16.vlgmr.msrb.gmra.mxu2 %v3054_v21  ;;  %3239 = vmatmul.bf16.vlgmr.msrb.gmra.mxu3 %v3054_v21 }
 0xe49   :  { %3252 = vmatmul.bf16.vlgmr.msrb.gmra.mxu0 %v3054_v21  ;;  %3341 = vmatpush.bf16.msrb.mxu1 %v4819_v0 }
 0xe4d   :  { %3342 = vmatpush.bf16.msrb.mxu1 %v4818_v1 }
 0xe51   :  { %3343 = vmatpush.bf16.msrb.mxu1 %v4817_v5 }
 0xe55   :  { %3344 = vmatpush.bf16.msrb.mxu1 %v4816_v11 }
 0xec6   :  { %v3253_v23 = vpop.f32.mrf.mxu0 }
 0xec7   :  { %v3254_v9 = vadd.f32 %v3253_v23, %v3089_v2 }
 0xec9   :  { %v3263_v15 = vsub.f32 0.0, %v3254_v9 }
 0xecb   :  { %v3227_v12 = vpop.f32.mrf.mxu2  ;;  %v3240_v13 = vpop.f32.mrf.mxu3  ;;  %v3264_v30 = vmul.f32 1.442695, %v3263_v15 }
 0xecc   :  { %v3228_v14 = vadd.f32 %v3227_v12, %v3087_v8  ;;  %v3241_v54 = vadd.f32 %v3240_v13, %v3088_v31 }
 0xece   :  { %v3257_v16 = vsub.f32 0.0, %v3228_v14  ;;  %v3255_v18 = vpop.f32.mrf.mxu0 }
 0xed0   :  { %v3258_v29 = vmul.f32 1.442695, %v3257_v16 }
 0xed2   :  { %4911 = vpow2.f32 %v3258_v29 }
 0xed3   :  { %v3229_v32 = vpop.f32.mrf.mxu2  ;;  %v3242_v35 = vpop.f32.mrf.mxu3  ;;  %4913 = vpow2.f32 %v3264_v30 }
 0xed4   :  { %4915 = vtanh.f32 %v3241_v54 }
 0xed8   :  { %v4912_v36 = vpop.eup %4911 }
 0xed9   :  { %v3260_v27 = vadd.f32 1.0, %v4912_v36  ;;  %v4914_v7 = vpop.eup %4913 }
 0xeda   :  { %v3266_v55 = vadd.f32 1.0, %v4914_v7  ;;  %v4916_v38 = vpop.eup %4915 }
 0xedb   :  { %4917 = vrcp.f32 %v3260_v27 }
 0xedc   :  { %4919 = vrcp.f32 %v3266_v55 }
 0xee1   :  { %v4918_v39 = vpop.eup %4917 }
 0xee2   :  { %v3268_v41 = vmul.f32 %v4918_v39, %v4916_v38  ;;  %v4920_v43 = vpop.eup %4919 }
 0xee4   :  { %4921 = vtanh.f32 %v3268_v41 }
 0xeea   :  { %v4922_v10 = vpop.eup %4921 }
 0xeeb   :  { %v3270_v40 = vmul.f32 %v4922_v10, %v4920_v43 }
 0xeed   :  { %v3271_v53 = vpack.c.bf16 %v3270_v40, %v3270_v40 }
 0xeef   :  { %3345 = vmatmul.bf16.vlgmr.msrb.gmra.mxu1 %v3271_v53 }
 0xf6c   :  { %v3346_v3 = vpop.f32.mrf.mxu1 }
 0xf6d   :  { %v3347_v42 = vadd.f32 %v3346_v3, %v3288_v17 }
 0xf6f   :  { %3350 = vst [vmem:[#allocation11] sm:$0x3] %v3347_v42 }
 0xf70   :  { %3361 = dma.vmem_to_hbm [thread:$0]  %s3357_s9, 32, %s3359_s1, [#allocation4]  }
 0xf74   :  { %v3348_v47 = vpop.f32.mrf.mxu1 }
 0xf75   :  { %5080 = dma.done.wait [#allocation4], 32  }
 0xf76   :  { %5081 = vsyncadd [#allocation4], 4294967264 }
 0xf77   :  { %3366 = vsyncpa [#allocation3], 1 }
 0xf78   :  { %3367 = vsyncpa [#allocation6], 1 }
 0xf79   :  { %3368 = vsyncpa [#allocation9], 1 }
 0xf7a   :  { %3369 = vsyncpa [#allocation4], 1 }

</bundles_post_ra>
